<compile_context>
chip_gen: v7x
topology: tpu7x:2x2x1
jax: 0.10.0
libtpu: 0.0.40
codegen_flags: <defaults>
</compile_context>

<pallas_src>
import math
from functools import partial

import jax
import jax.numpy as jnp
from jax.experimental import pallas as pl
from jax.experimental.pallas import tpu as pltpu


# --------------------------------------------------------------------------
# Math helpers (pure jnp; `recip` lets the kernel route divides to the EUP)
# --------------------------------------------------------------------------
def _erf(x, recip=lambda z: 1.0 / z):
    # Abramowitz & Stegun 7.1.26 rational approximation, |err| <= 1.5e-7.
    a1, a2, a3, a4, a5 = 0.254829592, -0.284496736, 1.421413741, -1.453152027, 1.061405429
    p = 0.3275911
    ax = jnp.abs(x)
    t = recip(1.0 + p * ax)
    poly = ((((a5 * t + a4) * t + a3) * t + a2) * t + a1) * t
    y = 1.0 - poly * jnp.exp(-ax * ax)
    return jnp.where(x >= 0, y, -y)


def _gelu(x, recip=lambda z: 1.0 / z):
    # nn.GELU() default = exact erf-based GELU.
    # TODO(synk): on v5e a tanh-approx GELU would shift this VALU work to the EUP
    # (slight numerics deviation from nn.GELU()); kept exact-erf for parity.
    return 0.5 * x * (1.0 + _erf(x * 0.7071067811865476, recip))


def _layernorm(x, w, b, eps=1e-5):
    mu = jnp.mean(x, axis=-1, keepdims=True)
    var = jnp.mean((x - mu) ** 2, axis=-1, keepdims=True)
    return (x - mu) * jax.lax.rsqrt(var + eps) * w + b


def _softmax_last(s, recip=lambda z: 1.0 / z):
    s = s - jnp.max(s, axis=-1, keepdims=True)
    e = jnp.exp(s)
    return e * recip(jnp.sum(e, axis=-1, keepdims=True))


# --------------------------------------------------------------------------
# Pallas kernel: fused patch-embed + full encoder stack, batch-blocked
# --------------------------------------------------------------------------
def encoder_stack_kernel(p_ref, pw_ref, pb_ref, pos_ref,
                         ln1w_ref, ln1b_ref, wqkv_ref, bqkv_ref,
                         wo_ref, bo_ref, ln2w_ref, ln2b_ref,
                         w1_ref, b1_ref, w2_ref, b2_ref,
                         out_ref, *, heads):
    # grid = (batch_blocks, depth); depth is the inner ("arbitrary") axis.
    l = pl.program_id(1)
    bf16 = jnp.bfloat16
    recip = lambda z: pl.reciprocal(z, approx=True)

    Bt, N, D = out_ref.shape
    R = Bt * N
    hd = D // heads
    scale = 1.0 / math.sqrt(hd)

    # ---- fused patch-embed: initialise the VMEM-resident residual at layer 0 ----
    @pl.when(l == 0)
    def _():
        tok = jnp.dot(p_ref[...], pw_ref[...],
                      preferred_element_type=jnp.float32)          # (R, D)
        tok = tok + pb_ref[...]
        tok = tok.reshape(Bt, N, D) + pos_ref[...][None]           # + pos embed
        out_ref[...] = tok.astype(out_ref.dtype)

    x = out_ref[...].reshape(R, D)                                 # f32 residual stream

    # ---- self-attention branch -------------------------------------------------
    xn = _layernorm(x, ln1w_ref[0], ln1b_ref[0])
    qkv = jnp.dot(xn.astype(bf16), wqkv_ref[0],
                  preferred_element_type=jnp.float32) + bqkv_ref[0]   # (R, 3D)
    q = qkv[:, 0:D].reshape(Bt, N, D)
    k = qkv[:, D:2 * D].reshape(Bt, N, D)
    v = qkv[:, 2 * D:3 * D].reshape(Bt, N, D)

    wo = wo_ref[0]                                                 # (D, D) bf16
    attn = jnp.zeros((R, D), jnp.float32)
    for h in range(heads):                                         # static unroll (small)
        sl = slice(h * hd, (h + 1) * hd)
        qh = q[:, :, sl].astype(bf16)                              # (Bt, N, hd)
        kh = k[:, :, sl].astype(bf16)
        vh = v[:, :, sl].astype(bf16)
        s = jnp.einsum('bqd,bkd->bqk', qh, kh,
                       preferred_element_type=jnp.float32) * scale
        p = _softmax_last(s, recip)                                # attn dropout = identity (eval)
        oh = jnp.einsum('bqk,bkd->bqd', p.astype(bf16), vh,
                        preferred_element_type=jnp.float32)        # (Bt, N, hd)
        # Per-head accumulation of the output projection: no concat-of-heads
        # scratch, no lane-masked partial stores, output stays lane-dense (R, D).
        attn = attn + jnp.dot(oh.reshape(R, hd).astype(bf16), wo[sl, :],
                              preferred_element_type=jnp.float32)
    x = x + attn + bo_ref[0]

    # ---- MLP branch --------------------------------------------------------------
    xn2 = _layernorm(x, ln2w_ref[0], ln2b_ref[0])
    h1 = jnp.dot(xn2.astype(bf16), w1_ref[0],
                 preferred_element_type=jnp.float32) + b1_ref[0]
    h1 = _gelu(h1, recip)
    h2 = jnp.dot(h1.astype(bf16), w2_ref[0],
                 preferred_element_type=jnp.float32) + b2_ref[0]
    x = x + h2                                                     # MLP dropouts = identity (eval)

    out_ref[...] = x.reshape(Bt, N, D).astype(out_ref.dtype)


# --------------------------------------------------------------------------
# Wrapper (patch extraction, BlockSpec plumbing)
# --------------------------------------------------------------------------
def _pick_block_batch(B, N, target_rows=256):
    # Smallest divisor of B whose token-row count Bt*N reaches the MXU row target
    # (256 rows covers v6e/v7x passes; >=128 covers v5e).  Falls back to the
    # whole batch, which maximally amortizes per-layer weight streaming.
    for d in range(1, B + 1):
        if B % d == 0 and d * N >= target_rows:
            return d
    return B


def _vmem_limit_bytes():
    # Generation-aware VMEM budget: ~3/4 of physical, capped at 100 MiB
    # (=> ~48 MiB on v7x's 64 MiB/TC, ~96 MiB on v5e/v6e's 128 MiB).
    try:
        cap = int(pltpu.get_tpu_info().vmem_capacity_bytes)
    except Exception:
        cap = 64 * 1024 * 1024
    return max(32 * 1024 * 1024, min((cap * 3) // 4, 100 * 1024 * 1024))


def vit_encoder(x, params, *, patch_size, heads):
    B, C, H, W = x.shape
    P = patch_size
    Hp, Wp = H // P, W // P
    N = Hp * Wp
    K = C * P * P
    D = params["proj_w"].shape[1]
    depth = params["wqkv"].shape[0]
    mlp_dim = params["w1"].shape[2]
    assert params["pos"].shape == (N, D)

    # Conv2d(kernel=stride=P) == unfold into non-overlapping patches + matmul.
    # Patch vector ordering is (C, kh, kw), matching Conv2d weight layout.
    patches = x.reshape(B, C, Hp, P, Wp, P)
    patches = patches.transpose(0, 2, 4, 1, 3, 5).reshape(B * N, K).astype(jnp.bfloat16)

    Bt = _pick_block_batch(B, N)     # batch items per grid step
    R = Bt * N                       # token rows per grid step
    nb = B // Bt                     # batch blocks (prefer >=2 & even on v7x when B allows)

    # Per-layer weight slab (leading depth axis selected by the grid's depth index).
    def wspec(r, c):
        return pl.BlockSpec((1, r, c), lambda bi, l: (l, 0, 0))

    # Constant (grid-invariant) blocks: fetched once, kept resident.
    def cspec(r, c):
        return pl.BlockSpec((r, c), lambda bi, l: (0, 0))

    tok_spec = pl.BlockSpec((Bt, N, D), lambda bi, l: (bi, 0, 0))

    # TODO(synk): for ViT-Base-scale mlp_dim on v7x, split w1/w2 along mlp_dim with
    # an extra inner grid axis (or pl.Buffered) so only a chunk is VMEM-resident.
    out = pl.pallas_call(
        partial(encoder_stack_kernel, heads=heads),
        out_shape=jax.ShapeDtypeStruct((B, N, D), jnp.float32),
        grid=(nb, depth),
        in_specs=[
            pl.BlockSpec((R, K), lambda bi, l: (bi, 0)),   # patches (rows of this batch block)
            cspec(K, D),                                   # patch-proj weight
            cspec(1, D),                                   # patch-proj bias
            cspec(N, D),                                   # positional embedding
            wspec(1, D), wspec(1, D),                      # ln1 w/b
            wspec(D, 3 * D), wspec(1, 3 * D),              # fused qkv w/b
            wspec(D, D), wspec(1, D),                      # out proj w/b
            wspec(1, D), wspec(1, D),                      # ln2 w/b
            wspec(D, mlp_dim), wspec(1, mlp_dim),          # mlp fc1 w/b
            wspec(mlp_dim, D), wspec(1, D),                # mlp fc2 w/b
        ],
        out_specs=tok_spec,
        compiler_params=pltpu.CompilerParams(
            dimension_semantics=("parallel", "arbitrary"),
            vmem_limit_bytes=_vmem_limit_bytes()),
    )(patches, params["proj_w"], params["proj_b"], params["pos"],
      params["ln1w"], params["ln1b"], params["wqkv"], params["bqkv"],
      params["wo"], params["bo"], params["ln2w"], params["ln2b"],
      params["w1"], params["b1"], params["w2"], params["b2"])
    return out


# --------------------------------------------------------------------------
# Deterministic synthetic parameters (shapes follow the PyTorch module);
# matmul weights stored in bf16, biases / LN params / pos-embed in f32.
# --------------------------------------------------------------------------
def init_params(key, *, C, P, D, N, depth, heads, mlp_dim):
    k_conv, k_pos, k_blocks = jax.random.split(key, 3)
    K = C * P * P
    bf16 = jnp.bfloat16
    conv_w = jax.random.normal(k_conv, (D, C, P, P), jnp.float32) * 0.02  # torch (out,in,kh,kw)

    ln1w, ln1b, wqkv, bqkv, wo, bo = [], [], [], [], [], []
    ln2w, ln2b, w1, b1, w2, b2 = [], [], [], [], [], []
    for i in range(depth):
        bk = jax.random.split(jax.random.fold_in(k_blocks, i), 8)
        in_proj = jax.random.normal(bk[0], (3 * D, D)) * 0.02             # torch in_proj_weight
        ln1w.append(jnp.ones((1, D)));  ln1b.append(jnp.zeros((1, D)))
        wqkv.append(in_proj.T)                                            # (D, 3D)
        bqkv.append(jax.random.normal(bk[1], (1, 3 * D)) * 0.01)
        wo.append((jax.random.normal(bk[2], (D, D)) * 0.02).T)
        bo.append(jax.random.normal(bk[3], (1, D)) * 0.01)
        ln2w.append(jnp.ones((1, D)));  ln2b.append(jnp.zeros((1, D)))
        w1.append((jax.random.normal(bk[4], (mlp_dim, D)) * 0.02).T)      # (D, mlp)
        b1.append(jax.random.normal(bk[5], (1, mlp_dim)) * 0.01)
        w2.append((jax.random.normal(bk[6], (D, mlp_dim)) * 0.02).T)      # (mlp, D)
        b2.append(jax.random.normal(bk[7], (1, D)) * 0.01)

    return dict(
        proj_w=conv_w.reshape(D, K).T.astype(bf16),                       # (K, D)
        proj_b=jax.random.normal(jax.random.fold_in(k_conv, 1), (1, D)) * 0.01,
        pos=jax.random.normal(k_pos, (N, D)) * 0.02,                      # pos_embed (1,N,D) -> (N,D)
        ln1w=jnp.stack(ln1w), ln1b=jnp.stack(ln1b),
        wqkv=jnp.stack(wqkv).astype(bf16), bqkv=jnp.stack(bqkv),
        wo=jnp.stack(wo).astype(bf16), bo=jnp.stack(bo),
        ln2w=jnp.stack(ln2w), ln2b=jnp.stack(ln2b),
        w1=jnp.stack(w1).astype(bf16), b1=jnp.stack(b1),
        w2=jnp.stack(w2).astype(bf16), b2=jnp.stack(b2),
    )


# --------------------------------------------------------------------------
# Pure-JAX reference (mirrors the kernel's bf16 matmul-input rounding)
# --------------------------------------------------------------------------
def vit_reference(x, params, *, patch_size, heads):
    f32 = jnp.float32
    b16 = lambda a: a.astype(jnp.bfloat16).astype(f32)
    B, C, H, W = x.shape
    P = patch_size
    Hp, Wp = H // P, W // P
    N = Hp * Wp
    D = params["proj_w"].shape[1]
    depth = params["wqkv"].shape[0]
    hd = D // heads

    patches = x.reshape(B, C, Hp, P, Wp, P).transpose(0, 2, 4, 1, 3, 5).reshape(B, N, C * P * P)
    t = b16(patches) @ params["proj_w"].astype(f32) + params["proj_b"] + params["pos"]

    for l in range(depth):
        xn = _layernorm(t, params["ln1w"][l], params["ln1b"][l])
        qkv = b16(xn) @ params["wqkv"][l].astype(f32) + params["bqkv"][l]
        q, k, v = qkv[..., 0:D], qkv[..., D:2 * D], qkv[..., 2 * D:3 * D]
        q = q.reshape(B, N, heads, hd).transpose(0, 2, 1, 3)
        k = k.reshape(B, N, heads, hd).transpose(0, 2, 1, 3)
        v = v.reshape(B, N, heads, hd).transpose(0, 2, 1, 3)
        s = jnp.einsum("bhqd,bhkd->bhqk", b16(q), b16(k)) / math.sqrt(hd)
        p = jax.nn.softmax(s, axis=-1)
        o = jnp.einsum("bhqk,bhkd->bhqd", b16(p), b16(v)).transpose(0, 2, 1, 3).reshape(B, N, D)
        t = t + b16(o) @ params["wo"][l].astype(f32) + params["bo"][l]
        xn2 = _layernorm(t, params["ln2w"][l], params["ln2b"][l])
        h = _gelu(b16(xn2) @ params["w1"][l].astype(f32) + params["b1"][l])
        t = t + b16(h) @ params["w2"][l].astype(f32) + params["b2"][l]
    return t


if __name__ == "__main__":
    # Small, lane-dense config: img=32, patch=8 -> 16 patches; emb_dim=128 (D lane-dense),
    # 4 heads, mlp=2*D=256, depth=2, batch=4 (batch-blocked into one grid step).
    B, C, IMG, P = 4, 3, 32, 8
    D, HEADS, MLP, DEPTH = 128, 4, 256, 2
    N = (IMG // P) ** 2

    key = jax.random.PRNGKey(0)
    kx, kp = jax.random.split(key)
    x = jax.random.normal(kx, (B, C, IMG, IMG), jnp.float32)
    params = init_params(kp, C=C, P=P, D=D, N=N, depth=DEPTH, heads=HEADS, mlp_dim=MLP)

    out = vit_encoder(x, params, patch_size=P, heads=HEADS)
    out = jax.block_until_ready(out)

    ref = vit_reference(x, params, patch_size=P, heads=HEADS)
    assert out.shape == (B, N, D), out.shape
    max_err = float(jnp.max(jnp.abs(out - ref)))
    # Tolerance covers bf16 matmul inputs + approx-reciprocal softmax/GELU.
    assert jnp.allclose(out, ref, atol=2e-2, rtol=2e-2), max_err

    # TODO(synk): dropout layers (attn + MLP) are identity here (eval-mode semantics).
    print("KERNEL_OK")
</pallas_src>

<mosaic_0001>
module attributes {stable_mosaic.version = 11 : i64} {
  func.func @encoder_stack_kernel(%arg0: i32, %arg1: i32, %arg2: memref<64x192xbf16, #tpu.memory_space<vmem>>, %arg3: memref<192x128xbf16, #tpu.memory_space<vmem>>, %arg4: memref<1x128xf32, #tpu.memory_space<vmem>>, %arg5: memref<16x128xf32, #tpu.memory_space<vmem>>, %arg6: memref<1x1x128xf32, #tpu.memory_space<vmem>>, %arg7: memref<1x1x128xf32, #tpu.memory_space<vmem>>, %arg8: memref<1x128x384xbf16, #tpu.memory_space<vmem>>, %arg9: memref<1x1x384xf32, #tpu.memory_space<vmem>>, %arg10: memref<1x128x128xbf16, #tpu.memory_space<vmem>>, %arg11: memref<1x1x128xf32, #tpu.memory_space<vmem>>, %arg12: memref<1x1x128xf32, #tpu.memory_space<vmem>>, %arg13: memref<1x1x128xf32, #tpu.memory_space<vmem>>, %arg14: memref<1x128x256xbf16, #tpu.memory_space<vmem>>, %arg15: memref<1x1x256xf32, #tpu.memory_space<vmem>>, %arg16: memref<1x256x128xbf16, #tpu.memory_space<vmem>>, %arg17: memref<1x1x128xf32, #tpu.memory_space<vmem>>, %arg18: memref<4x16x128xf32, #tpu.memory_space<vmem>>) attributes {dimension_semantics = [#tpu.dimension_semantics<parallel>, #tpu.dimension_semantics<arbitrary>], iteration_bounds = array<i64: 1, 2>, scalar_prefetch = 0 : i64, scratch_operands = 0 : i64, tpu.core_type = #tpu.core_type<tc>, window_params = [{transform_indices = @transform_0, window_bounds = array<i64: 64, 192>}, {pipeline_mode = #tpu.pipeline_mode<synchronous>, transform_indices = @transform_1, window_bounds = array<i64: 192, 128>}, {pipeline_mode = #tpu.pipeline_mode<synchronous>, transform_indices = @transform_2, window_bounds = array<i64: 1, 128>}, {pipeline_mode = #tpu.pipeline_mode<synchronous>, transform_indices = @transform_3, window_bounds = array<i64: 16, 128>}, {transform_indices = @transform_4, window_bounds = array<i64: 1, 1, 128>}, {transform_indices = @transform_5, window_bounds = array<i64: 1, 1, 128>}, {transform_indices = @transform_6, window_bounds = array<i64: 1, 128, 384>}, {transform_indices = @transform_7, window_bounds = array<i64: 1, 1, 384>}, {transform_indices = @transform_8, window_bounds = array<i64: 1, 128, 128>}, {transform_indices = @transform_9, window_bounds = array<i64: 1, 1, 128>}, {transform_indices = @transform_10, window_bounds = array<i64: 1, 1, 128>}, {transform_indices = @transform_11, window_bounds = array<i64: 1, 1, 128>}, {transform_indices = @transform_12, window_bounds = array<i64: 1, 128, 256>}, {transform_indices = @transform_13, window_bounds = array<i64: 1, 1, 256>}, {transform_indices = @transform_14, window_bounds = array<i64: 1, 256, 128>}, {transform_indices = @transform_15, window_bounds = array<i64: 1, 1, 128>}, {transform_indices = @transform_16, window_bounds = array<i64: 4, 16, 128>}]} {
    %c0_i32 = arith.constant 0 : i32
    %0 = arith.cmpi eq, %arg1, %c0_i32 : i32
    %1 = arith.extui %0 : i1 to i32
    %c0_i32_0 = arith.constant 0 : i32
    %2 = arith.cmpi ne, %1, %c0_i32_0 : i32
    scf.if %2 {
      %c0_93 = arith.constant 0 : index
      %c0_94 = arith.constant 0 : index
      %241 = vector.load %arg2[%c0_93, %c0_94] : memref<64x192xbf16, #tpu.memory_space<vmem>>, vector<64x192xbf16>
      %c0_95 = arith.constant 0 : index
      %c0_96 = arith.constant 0 : index
      %242 = vector.load %arg3[%c0_95, %c0_96] : memref<192x128xbf16, #tpu.memory_space<vmem>>, vector<192x128xbf16>
      %cst_97 = arith.constant dense<0.000000e+00> : vector<64x128xf32>
      %243 = tpu.matmul %241, %242, %cst_97 {dimension_numbers = #tpu.dot_dimension_numbers<[1], [0], [0], [1], [0, 0, 1, 1], [], []>} : vector<64x192xbf16>, vector<192x128xbf16>, vector<64x128xf32> -> vector<64x128xf32>
      %c0_98 = arith.constant 0 : index
      %c0_99 = arith.constant 0 : index
      %244 = vector.load %arg4[%c0_98, %c0_99] : memref<1x128xf32, #tpu.memory_space<vmem>>, vector<1x128xf32>
      %245 = vector.broadcast %244 : vector<1x128xf32> to vector<64x128xf32>
      %246 = arith.addf %243, %245 : vector<64x128xf32>
      %247 = vector.shape_cast %246 : vector<64x128xf32> to vector<4x16x128xf32>
      %c0_100 = arith.constant 0 : index
      %c0_101 = arith.constant 0 : index
      %248 = vector.load %arg5[%c0_100, %c0_101] : memref<16x128xf32, #tpu.memory_space<vmem>>, vector<16x128xf32>
      %249 = vector.shape_cast %248 : vector<16x128xf32> to vector<1x16x128xf32>
      %250 = vector.broadcast %249 : vector<1x16x128xf32> to vector<4x16x128xf32>
      %251 = arith.addf %247, %250 : vector<4x16x128xf32>
      %c0_102 = arith.constant 0 : index
      %c0_103 = arith.constant 0 : index
      %c0_104 = arith.constant 0 : index
      %252 = vector.load %arg18[%c0_102, %c0_103, %c0_104] : memref<4x16x128xf32, #tpu.memory_space<vmem>>, vector<4x16x128xf32>
      tpu.vector_store %arg18[%c0_102, %c0_103, %c0_104], %251 {strides = array<i32>} : memref<4x16x128xf32, #tpu.memory_space<vmem>>, vector<4x16x128xf32>,
    } else {
    }
    %c0 = arith.constant 0 : index
    %c0_1 = arith.constant 0 : index
    %c0_2 = arith.constant 0 : index
    %3 = vector.load %arg18[%c0, %c0_1, %c0_2] : memref<4x16x128xf32, #tpu.memory_space<vmem>>, vector<4x16x128xf32>
    %4 = vector.shape_cast %3 : vector<4x16x128xf32> to vector<64x128xf32>
    %c0_3 = arith.constant 0 : index
    %c0_4 = arith.constant 0 : index
    %c0_5 = arith.constant 0 : index
    %5 = vector.load %arg6[%c0_3, %c0_4, %c0_5] : memref<1x1x128xf32, #tpu.memory_space<vmem>>, vector<1x1x128xf32>
    %6 = vector.shape_cast %5 : vector<1x1x128xf32> to vector<1x128xf32>
    %c0_6 = arith.constant 0 : index
    %c0_7 = arith.constant 0 : index
    %c0_8 = arith.constant 0 : index
    %7 = vector.load %arg7[%c0_6, %c0_7, %c0_8] : memref<1x1x128xf32, #tpu.memory_space<vmem>>, vector<1x1x128xf32>
    %8 = vector.shape_cast %7 : vector<1x1x128xf32> to vector<1x128xf32>
    %cst = arith.constant dense<0.000000e+00> : vector<64xf32>
    %9 = vector.multi_reduction <add>, %4, %cst [1] : vector<64x128xf32> to vector<64xf32>
    %10 = vector.shape_cast %9 : vector<64xf32> to vector<64x1xf32>
    %cst_9 = arith.constant 1.280000e+02 : f32
    %11 = vector.broadcast %cst_9 : f32 to vector<64x1xf32>
    %12 = arith.divf %10, %11 : vector<64x1xf32>
    %13 = vector.broadcast %12 : vector<64x1xf32> to vector<64x128xf32>
    %14 = arith.subf %4, %13 : vector<64x128xf32>
    %15 = arith.mulf %14, %14 : vector<64x128xf32>
    %cst_10 = arith.constant dense<0.000000e+00> : vector<64xf32>
    %16 = vector.multi_reduction <add>, %15, %cst_10 [1] : vector<64x128xf32> to vector<64xf32>
    %17 = vector.shape_cast %16 : vector<64xf32> to vector<64x1xf32>
    %cst_11 = arith.constant 1.280000e+02 : f32
    %18 = vector.broadcast %cst_11 : f32 to vector<64x1xf32>
    %19 = arith.divf %17, %18 : vector<64x1xf32>
    %20 = vector.broadcast %12 : vector<64x1xf32> to vector<64x128xf32>
    %21 = arith.subf %4, %20 : vector<64x128xf32>
    %cst_12 = arith.constant 9.99999974E-6 : f32
    %22 = vector.broadcast %cst_12 : f32 to vector<64x1xf32>
    %23 = arith.addf %19, %22 : vector<64x1xf32>
    %24 = math.rsqrt %23 : vector<64x1xf32>
    %25 = vector.broadcast %24 : vector<64x1xf32> to vector<64x128xf32>
    %26 = arith.mulf %21, %25 : vector<64x128xf32>
    %27 = vector.broadcast %6 : vector<1x128xf32> to vector<64x128xf32>
    %28 = arith.mulf %26, %27 : vector<64x128xf32>
    %29 = vector.broadcast %8 : vector<1x128xf32> to vector<64x128xf32>
    %30 = arith.addf %28, %29 : vector<64x128xf32>
    %31 = arith.truncf %30 : vector<64x128xf32> to vector<64x128xbf16>
    %c0_13 = arith.constant 0 : index
    %c0_14 = arith.constant 0 : index
    %c0_15 = arith.constant 0 : index
    %32 = vector.load %arg8[%c0_13, %c0_14, %c0_15] : memref<1x128x384xbf16, #tpu.memory_space<vmem>>, vector<1x128x384xbf16>
    %33 = vector.shape_cast %32 : vector<1x128x384xbf16> to vector<128x384xbf16>
    %cst_16 = arith.constant dense<0.000000e+00> : vector<64x384xf32>
    %34 = tpu.matmul %31, %33, %cst_16 {dimension_numbers = #tpu.dot_dimension_numbers<[1], [0], [0], [1], [0, 0, 1, 1], [], []>} : vector<64x128xbf16>, vector<128x384xbf16>, vector<64x384xf32> -> vector<64x384xf32>
    %c0_17 = arith.constant 0 : index
    %c0_18 = arith.constant 0 : index
    %c0_19 = arith.constant 0 : index
    %35 = vector.load %arg9[%c0_17, %c0_18, %c0_19] : memref<1x1x384xf32, #tpu.memory_space<vmem>>, vector<1x1x384xf32>
    %36 = vector.shape_cast %35 : vector<1x1x384xf32> to vector<1x384xf32>
    %37 = vector.broadcast %36 : vector<1x384xf32> to vector<64x384xf32>
    %38 = arith.addf %34, %37 : vector<64x384xf32>
    %39 = vector.extract_strided_slice %38 {offsets = [0, 0], sizes = [64, 128], strides = [1, 1]} : vector<64x384xf32> to vector<64x128xf32>
    %40 = vector.shape_cast %39 : vector<64x128xf32> to vector<4x16x128xf32>
    %41 = vector.extract_strided_slice %38 {offsets = [0, 128], sizes = [64, 128], strides = [1, 1]} : vector<64x384xf32> to vector<64x128xf32>
    %42 = vector.shape_cast %41 : vector<64x128xf32> to vector<4x16x128xf32>
    %43 = vector.extract_strided_slice %38 {offsets = [0, 256], sizes = [64, 128], strides = [1, 1]} : vector<64x384xf32> to vector<64x128xf32>
    %44 = vector.shape_cast %43 : vector<64x128xf32> to vector<4x16x128xf32>
    %c0_20 = arith.constant 0 : index
    %c0_21 = arith.constant 0 : index
    %c0_22 = arith.constant 0 : index
    %45 = vector.load %arg10[%c0_20, %c0_21, %c0_22] : memref<1x128x128xbf16, #tpu.memory_space<vmem>>, vector<1x128x128xbf16>
    %46 = vector.shape_cast %45 : vector<1x128x128xbf16> to vector<128x128xbf16>
    %cst_23 = arith.constant 0.000000e+00 : f32
    %47 = vector.broadcast %cst_23 : f32 to vector<64x128xf32>
    %48 = vector.extract_strided_slice %40 {offsets = [0, 0, 0], sizes = [4, 16, 32], strides = [1, 1, 1]} : vector<4x16x128xf32> to vector<4x16x32xf32>
    %49 = arith.truncf %48 : vector<4x16x32xf32> to vector<4x16x32xbf16>
    %50 = vector.extract_strided_slice %42 {offsets = [0, 0, 0], sizes = [4, 16, 32], strides = [1, 1, 1]} : vector<4x16x128xf32> to vector<4x16x32xf32>
    %51 = arith.truncf %50 : vector<4x16x32xf32> to vector<4x16x32xbf16>
    %52 = vector.extract_strided_slice %44 {offsets = [0, 0, 0], sizes = [4, 16, 32], strides = [1, 1, 1]} : vector<4x16x128xf32> to vector<4x16x32xf32>
    %53 = arith.truncf %52 : vector<4x16x32xf32> to vector<4x16x32xbf16>
    "tpu.trace_start"() <{level = 10 : i32, message = "bqd,bkd->bqk"}> : () -> ()
    %cst_24 = arith.constant dense<0.000000e+00> : vector<4x16x16xf32>
    %54 = tpu.matmul %49, %51, %cst_24 {dimension_numbers = #tpu.dot_dimension_numbers<[2], [2], [1], [1], [0, 0, 0, 1, 1, 1], [0], [0]>} : vector<4x16x32xbf16>, vector<4x16x32xbf16>, vector<4x16x16xf32> -> vector<4x16x16xf32>
    "tpu.trace_stop"() : () -> ()
    %cst_25 = arith.constant 0.176776692 : f32
    %55 = vector.broadcast %cst_25 : f32 to vector<4x16x16xf32>
    %56 = arith.mulf %54, %55 : vector<4x16x16xf32>
    %cst_26 = arith.constant dense<0xFF800000> : vector<4x16xf32>
    %57 = vector.multi_reduction <maximumf>, %56, %cst_26 [2] : vector<4x16x16xf32> to vector<4x16xf32>
    %58 = vector.shape_cast %57 : vector<4x16xf32> to vector<4x16x1xf32>
    %59 = vector.broadcast %58 : vector<4x16x1xf32> to vector<4x16x16xf32>
    %60 = arith.subf %56, %59 : vector<4x16x16xf32>
    %61 = math.exp %60 : vector<4x16x16xf32>
    %cst_27 = arith.constant dense<0.000000e+00> : vector<4x16xf32>
    %62 = vector.multi_reduction <add>, %61, %cst_27 [2] : vector<4x16x16xf32> to vector<4x16xf32>
    %63 = vector.shape_cast %62 : vector<4x16xf32> to vector<4x16x1xf32>
    %64 = tpu.reciprocal %63 {approx = true} : vector<4x16x1xf32> -> vector<4x16x1xf32>
    %65 = vector.broadcast %64 : vector<4x16x1xf32> to vector<4x16x16xf32>
    %66 = arith.mulf %61, %65 : vector<4x16x16xf32>
    %67 = arith.truncf %66 : vector<4x16x16xf32> to vector<4x16x16xbf16>
    "tpu.trace_start"() <{level = 10 : i32, message = "bqk,bkd->bqd"}> : () -> ()
    %cst_28 = arith.constant dense<0.000000e+00> : vector<4x16x32xf32>
    %68 = tpu.matmul %67, %53, %cst_28 {dimension_numbers = #tpu.dot_dimension_numbers<[2], [1], [1], [2], [0, 0, 0, 1, 1, 2], [0], [0]>} : vector<4x16x16xbf16>, vector<4x16x32xbf16>, vector<4x16x32xf32> -> vector<4x16x32xf32>
    "tpu.trace_stop"() : () -> ()
    %69 = vector.shape_cast %68 : vector<4x16x32xf32> to vector<64x32xf32>
    %70 = arith.truncf %69 : vector<64x32xf32> to vector<64x32xbf16>
    %71 = vector.extract_strided_slice %46 {offsets = [0, 0], sizes = [32, 128], strides = [1, 1]} : vector<128x128xbf16> to vector<32x128xbf16>
    %cst_29 = arith.constant dense<0.000000e+00> : vector<64x128xf32>
    %72 = tpu.matmul %70, %71, %cst_29 {dimension_numbers = #tpu.dot_dimension_numbers<[1], [0], [0], [1], [0, 0, 1, 1], [], []>} : vector<64x32xbf16>, vector<32x128xbf16>, vector<64x128xf32> -> vector<64x128xf32>
    %73 = arith.addf %47, %72 : vector<64x128xf32>
    %74 = vector.extract_strided_slice %40 {offsets = [0, 0, 32], sizes = [4, 16, 32], strides = [1, 1, 1]} : vector<4x16x128xf32> to vector<4x16x32xf32>
    %75 = arith.truncf %74 : vector<4x16x32xf32> to vector<4x16x32xbf16>
    %76 = vector.extract_strided_slice %42 {offsets = [0, 0, 32], sizes = [4, 16, 32], strides = [1, 1, 1]} : vector<4x16x128xf32> to vector<4x16x32xf32>
    %77 = arith.truncf %76 : vector<4x16x32xf32> to vector<4x16x32xbf16>
    %78 = vector.extract_strided_slice %44 {offsets = [0, 0, 32], sizes = [4, 16, 32], strides = [1, 1, 1]} : vector<4x16x128xf32> to vector<4x16x32xf32>
    %79 = arith.truncf %78 : vector<4x16x32xf32> to vector<4x16x32xbf16>
    "tpu.trace_start"() <{level = 10 : i32, message = "bqd,bkd->bqk"}> : () -> ()
    %cst_30 = arith.constant dense<0.000000e+00> : vector<4x16x16xf32>
    %80 = tpu.matmul %75, %77, %cst_30 {dimension_numbers = #tpu.dot_dimension_numbers<[2], [2], [1], [1], [0, 0, 0, 1, 1, 1], [0], [0]>} : vector<4x16x32xbf16>, vector<4x16x32xbf16>, vector<4x16x16xf32> -> vector<4x16x16xf32>
    "tpu.trace_stop"() : () -> ()
    %cst_31 = arith.constant 0.176776692 : f32
    %81 = vector.broadcast %cst_31 : f32 to vector<4x16x16xf32>
    %82 = arith.mulf %80, %81 : vector<4x16x16xf32>
    %cst_32 = arith.constant dense<0xFF800000> : vector<4x16xf32>
    %83 = vector.multi_reduction <maximumf>, %82, %cst_32 [2] : vector<4x16x16xf32> to vector<4x16xf32>
    %84 = vector.shape_cast %83 : vector<4x16xf32> to vector<4x16x1xf32>
    %85 = vector.broadcast %84 : vector<4x16x1xf32> to vector<4x16x16xf32>
    %86 = arith.subf %82, %85 : vector<4x16x16xf32>
    %87 = math.exp %86 : vector<4x16x16xf32>
    %cst_33 = arith.constant dense<0.000000e+00> : vector<4x16xf32>
    %88 = vector.multi_reduction <add>, %87, %cst_33 [2] : vector<4x16x16xf32> to vector<4x16xf32>
    %89 = vector.shape_cast %88 : vector<4x16xf32> to vector<4x16x1xf32>
    %90 = tpu.reciprocal %89 {approx = true} : vector<4x16x1xf32> -> vector<4x16x1xf32>
    %91 = vector.broadcast %90 : vector<4x16x1xf32> to vector<4x16x16xf32>
    %92 = arith.mulf %87, %91 : vector<4x16x16xf32>
    %93 = arith.truncf %92 : vector<4x16x16xf32> to vector<4x16x16xbf16>
    "tpu.trace_start"() <{level = 10 : i32, message = "bqk,bkd->bqd"}> : () -> ()
    %cst_34 = arith.constant dense<0.000000e+00> : vector<4x16x32xf32>
    %94 = tpu.matmul %93, %79, %cst_34 {dimension_numbers = #tpu.dot_dimension_numbers<[2], [1], [1], [2], [0, 0, 0, 1, 1, 2], [0], [0]>} : vector<4x16x16xbf16>, vector<4x16x32xbf16>, vector<4x16x32xf32> -> vector<4x16x32xf32>
    "tpu.trace_stop"() : () -> ()
    %95 = vector.shape_cast %94 : vector<4x16x32xf32> to vector<64x32xf32>
    %96 = arith.truncf %95 : vector<64x32xf32> to vector<64x32xbf16>
    %97 = vector.extract_strided_slice %46 {offsets = [32, 0], sizes = [32, 128], strides = [1, 1]} : vector<128x128xbf16> to vector<32x128xbf16>
    %cst_35 = arith.constant dense<0.000000e+00> : vector<64x128xf32>
    %98 = tpu.matmul %96, %97, %cst_35 {dimension_numbers = #tpu.dot_dimension_numbers<[1], [0], [0], [1], [0, 0, 1, 1], [], []>} : vector<64x32xbf16>, vector<32x128xbf16>, vector<64x128xf32> -> vector<64x128xf32>
    %99 = arith.addf %73, %98 : vector<64x128xf32>
    %100 = vector.extract_strided_slice %40 {offsets = [0, 0, 64], sizes = [4, 16, 32], strides = [1, 1, 1]} : vector<4x16x128xf32> to vector<4x16x32xf32>
    %101 = arith.truncf %100 : vector<4x16x32xf32> to vector<4x16x32xbf16>
    %102 = vector.extract_strided_slice %42 {offsets = [0, 0, 64], sizes = [4, 16, 32], strides = [1, 1, 1]} : vector<4x16x128xf32> to vector<4x16x32xf32>
    %103 = arith.truncf %102 : vector<4x16x32xf32> to vector<4x16x32xbf16>
    %104 = vector.extract_strided_slice %44 {offsets = [0, 0, 64], sizes = [4, 16, 32], strides = [1, 1, 1]} : vector<4x16x128xf32> to vector<4x16x32xf32>
    %105 = arith.truncf %104 : vector<4x16x32xf32> to vector<4x16x32xbf16>
    "tpu.trace_start"() <{level = 10 : i32, message = "bqd,bkd->bqk"}> : () -> ()
    %cst_36 = arith.constant dense<0.000000e+00> : vector<4x16x16xf32>
    %106 = tpu.matmul %101, %103, %cst_36 {dimension_numbers = #tpu.dot_dimension_numbers<[2], [2], [1], [1], [0, 0, 0, 1, 1, 1], [0], [0]>} : vector<4x16x32xbf16>, vector<4x16x32xbf16>, vector<4x16x16xf32> -> vector<4x16x16xf32>
    "tpu.trace_stop"() : () -> ()
    %cst_37 = arith.constant 0.176776692 : f32
    %107 = vector.broadcast %cst_37 : f32 to vector<4x16x16xf32>
    %108 = arith.mulf %106, %107 : vector<4x16x16xf32>
    %cst_38 = arith.constant dense<0xFF800000> : vector<4x16xf32>
    %109 = vector.multi_reduction <maximumf>, %108, %cst_38 [2] : vector<4x16x16xf32> to vector<4x16xf32>
    %110 = vector.shape_cast %109 : vector<4x16xf32> to vector<4x16x1xf32>
    %111 = vector.broadcast %110 : vector<4x16x1xf32> to vector<4x16x16xf32>
    %112 = arith.subf %108, %111 : vector<4x16x16xf32>
    %113 = math.exp %112 : vector<4x16x16xf32>
    %cst_39 = arith.constant dense<0.000000e+00> : vector<4x16xf32>
    %114 = vector.multi_reduction <add>, %113, %cst_39 [2] : vector<4x16x16xf32> to vector<4x16xf32>
    %115 = vector.shape_cast %114 : vector<4x16xf32> to vector<4x16x1xf32>
    %116 = tpu.reciprocal %115 {approx = true} : vector<4x16x1xf32> -> vector<4x16x1xf32>
    %117 = vector.broadcast %116 : vector<4x16x1xf32> to vector<4x16x16xf32>
    %118 = arith.mulf %113, %117 : vector<4x16x16xf32>
    %119 = arith.truncf %118 : vector<4x16x16xf32> to vector<4x16x16xbf16>
    "tpu.trace_start"() <{level = 10 : i32, message = "bqk,bkd->bqd"}> : () -> ()
    %cst_40 = arith.constant dense<0.000000e+00> : vector<4x16x32xf32>
    %120 = tpu.matmul %119, %105, %cst_40 {dimension_numbers = #tpu.dot_dimension_numbers<[2], [1], [1], [2], [0, 0, 0, 1, 1, 2], [0], [0]>} : vector<4x16x16xbf16>, vector<4x16x32xbf16>, vector<4x16x32xf32> -> vector<4x16x32xf32>
    "tpu.trace_stop"() : () -> ()
    %121 = vector.shape_cast %120 : vector<4x16x32xf32> to vector<64x32xf32>
    %122 = arith.truncf %121 : vector<64x32xf32> to vector<64x32xbf16>
    %123 = vector.extract_strided_slice %46 {offsets = [64, 0], sizes = [32, 128], strides = [1, 1]} : vector<128x128xbf16> to vector<32x128xbf16>
    %cst_41 = arith.constant dense<0.000000e+00> : vector<64x128xf32>
    %124 = tpu.matmul %122, %123, %cst_41 {dimension_numbers = #tpu.dot_dimension_numbers<[1], [0], [0], [1], [0, 0, 1, 1], [], []>} : vector<64x32xbf16>, vector<32x128xbf16>, vector<64x128xf32> -> vector<64x128xf32>
    %125 = arith.addf %99, %124 : vector<64x128xf32>
    %126 = vector.extract_strided_slice %40 {offsets = [0, 0, 96], sizes = [4, 16, 32], strides = [1, 1, 1]} : vector<4x16x128xf32> to vector<4x16x32xf32>
    %127 = arith.truncf %126 : vector<4x16x32xf32> to vector<4x16x32xbf16>
    %128 = vector.extract_strided_slice %42 {offsets = [0, 0, 96], sizes = [4, 16, 32], strides = [1, 1, 1]} : vector<4x16x128xf32> to vector<4x16x32xf32>
    %129 = arith.truncf %128 : vector<4x16x32xf32> to vector<4x16x32xbf16>
    %130 = vector.extract_strided_slice %44 {offsets = [0, 0, 96], sizes = [4, 16, 32], strides = [1, 1, 1]} : vector<4x16x128xf32> to vector<4x16x32xf32>
    %131 = arith.truncf %130 : vector<4x16x32xf32> to vector<4x16x32xbf16>
    "tpu.trace_start"() <{level = 10 : i32, message = "bqd,bkd->bqk"}> : () -> ()
    %cst_42 = arith.constant dense<0.000000e+00> : vector<4x16x16xf32>
    %132 = tpu.matmul %127, %129, %cst_42 {dimension_numbers = #tpu.dot_dimension_numbers<[2], [2], [1], [1], [0, 0, 0, 1, 1, 1], [0], [0]>} : vector<4x16x32xbf16>, vector<4x16x32xbf16>, vector<4x16x16xf32> -> vector<4x16x16xf32>
    "tpu.trace_stop"() : () -> ()
    %cst_43 = arith.constant 0.176776692 : f32
    %133 = vector.broadcast %cst_43 : f32 to vector<4x16x16xf32>
    %134 = arith.mulf %132, %133 : vector<4x16x16xf32>
    %cst_44 = arith.constant dense<0xFF800000> : vector<4x16xf32>
    %135 = vector.multi_reduction <maximumf>, %134, %cst_44 [2] : vector<4x16x16xf32> to vector<4x16xf32>
    %136 = vector.shape_cast %135 : vector<4x16xf32> to vector<4x16x1xf32>
    %137 = vector.broadcast %136 : vector<4x16x1xf32> to vector<4x16x16xf32>
    %138 = arith.subf %134, %137 : vector<4x16x16xf32>
    %139 = math.exp %138 : vector<4x16x16xf32>
    %cst_45 = arith.constant dense<0.000000e+00> : vector<4x16xf32>
    %140 = vector.multi_reduction <add>, %139, %cst_45 [2] : vector<4x16x16xf32> to vector<4x16xf32>
    %141 = vector.shape_cast %140 : vector<4x16xf32> to vector<4x16x1xf32>
    %142 = tpu.reciprocal %141 {approx = true} : vector<4x16x1xf32> -> vector<4x16x1xf32>
    %143 = vector.broadcast %142 : vector<4x16x1xf32> to vector<4x16x16xf32>
    %144 = arith.mulf %139, %143 : vector<4x16x16xf32>
    %145 = arith.truncf %144 : vector<4x16x16xf32> to vector<4x16x16xbf16>
    "tpu.trace_start"() <{level = 10 : i32, message = "bqk,bkd->bqd"}> : () -> ()
    %cst_46 = arith.constant dense<0.000000e+00> : vector<4x16x32xf32>
    %146 = tpu.matmul %145, %131, %cst_46 {dimension_numbers = #tpu.dot_dimension_numbers<[2], [1], [1], [2], [0, 0, 0, 1, 1, 2], [0], [0]>} : vector<4x16x16xbf16>, vector<4x16x32xbf16>, vector<4x16x32xf32> -> vector<4x16x32xf32>
    "tpu.trace_stop"() : () -> ()
    %147 = vector.shape_cast %146 : vector<4x16x32xf32> to vector<64x32xf32>
    %148 = arith.truncf %147 : vector<64x32xf32> to vector<64x32xbf16>
    %149 = vector.extract_strided_slice %46 {offsets = [96, 0], sizes = [32, 128], strides = [1, 1]} : vector<128x128xbf16> to vector<32x128xbf16>
    %cst_47 = arith.constant dense<0.000000e+00> : vector<64x128xf32>
    %150 = tpu.matmul %148, %149, %cst_47 {dimension_numbers = #tpu.dot_dimension_numbers<[1], [0], [0], [1], [0, 0, 1, 1], [], []>} : vector<64x32xbf16>, vector<32x128xbf16>, vector<64x128xf32> -> vector<64x128xf32>
    %151 = arith.addf %125, %150 : vector<64x128xf32>
    %152 = arith.addf %4, %151 : vector<64x128xf32>
    %c0_48 = arith.constant 0 : index
    %c0_49 = arith.constant 0 : index
    %c0_50 = arith.constant 0 : index
    %153 = vector.load %arg11[%c0_48, %c0_49, %c0_50] : memref<1x1x128xf32, #tpu.memory_space<vmem>>, vector<1x1x128xf32>
    %154 = vector.shape_cast %153 : vector<1x1x128xf32> to vector<1x128xf32>
    %155 = vector.broadcast %154 : vector<1x128xf32> to vector<64x128xf32>
    %156 = arith.addf %152, %155 : vector<64x128xf32>
    %c0_51 = arith.constant 0 : index
    %c0_52 = arith.constant 0 : index
    %c0_53 = arith.constant 0 : index
    %157 = vector.load %arg12[%c0_51, %c0_52, %c0_53] : memref<1x1x128xf32, #tpu.memory_space<vmem>>, vector<1x1x128xf32>
    %158 = vector.shape_cast %157 : vector<1x1x128xf32> to vector<1x128xf32>
    %c0_54 = arith.constant 0 : index
    %c0_55 = arith.constant 0 : index
    %c0_56 = arith.constant 0 : index
    %159 = vector.load %arg13[%c0_54, %c0_55, %c0_56] : memref<1x1x128xf32, #tpu.memory_space<vmem>>, vector<1x1x128xf32>
    %160 = vector.shape_cast %159 : vector<1x1x128xf32> to vector<1x128xf32>
    %cst_57 = arith.constant dense<0.000000e+00> : vector<64xf32>
    %161 = vector.multi_reduction <add>, %156, %cst_57 [1] : vector<64x128xf32> to vector<64xf32>
    %162 = vector.shape_cast %161 : vector<64xf32> to vector<64x1xf32>
    %cst_58 = arith.constant 1.280000e+02 : f32
    %163 = vector.broadcast %cst_58 : f32 to vector<64x1xf32>
    %164 = arith.divf %162, %163 : vector<64x1xf32>
    %165 = vector.broadcast %164 : vector<64x1xf32> to vector<64x128xf32>
    %166 = arith.subf %156, %165 : vector<64x128xf32>
    %167 = arith.mulf %166, %166 : vector<64x128xf32>
    %cst_59 = arith.constant dense<0.000000e+00> : vector<64xf32>
    %168 = vector.multi_reduction <add>, %167, %cst_59 [1] : vector<64x128xf32> to vector<64xf32>
    %169 = vector.shape_cast %168 : vector<64xf32> to vector<64x1xf32>
    %cst_60 = arith.constant 1.280000e+02 : f32
    %170 = vector.broadcast %cst_60 : f32 to vector<64x1xf32>
    %171 = arith.divf %169, %170 : vector<64x1xf32>
    %172 = vector.broadcast %164 : vector<64x1xf32> to vector<64x128xf32>
    %173 = arith.subf %156, %172 : vector<64x128xf32>
    %cst_61 = arith.constant 9.99999974E-6 : f32
    %174 = vector.broadcast %cst_61 : f32 to vector<64x1xf32>
    %175 = arith.addf %171, %174 : vector<64x1xf32>
    %176 = math.rsqrt %175 : vector<64x1xf32>
    %177 = vector.broadcast %176 : vector<64x1xf32> to vector<64x128xf32>
    %178 = arith.mulf %173, %177 : vector<64x128xf32>
    %179 = vector.broadcast %158 : vector<1x128xf32> to vector<64x128xf32>
    %180 = arith.mulf %178, %179 : vector<64x128xf32>
    %181 = vector.broadcast %160 : vector<1x128xf32> to vector<64x128xf32>
    %182 = arith.addf %180, %181 : vector<64x128xf32>
    %183 = arith.truncf %182 : vector<64x128xf32> to vector<64x128xbf16>
    %c0_62 = arith.constant 0 : index
    %c0_63 = arith.constant 0 : index
    %c0_64 = arith.constant 0 : index
    %184 = vector.load %arg14[%c0_62, %c0_63, %c0_64] : memref<1x128x256xbf16, #tpu.memory_space<vmem>>, vector<1x128x256xbf16>
    %185 = vector.shape_cast %184 : vector<1x128x256xbf16> to vector<128x256xbf16>
    %cst_65 = arith.constant dense<0.000000e+00> : vector<64x256xf32>
    %186 = tpu.matmul %183, %185, %cst_65 {dimension_numbers = #tpu.dot_dimension_numbers<[1], [0], [0], [1], [0, 0, 1, 1], [], []>} : vector<64x128xbf16>, vector<128x256xbf16>, vector<64x256xf32> -> vector<64x256xf32>
    %c0_66 = arith.constant 0 : index
    %c0_67 = arith.constant 0 : index
    %c0_68 = arith.constant 0 : index
    %187 = vector.load %arg15[%c0_66, %c0_67, %c0_68] : memref<1x1x256xf32, #tpu.memory_space<vmem>>, vector<1x1x256xf32>
    %188 = vector.shape_cast %187 : vector<1x1x256xf32> to vector<1x256xf32>
    %189 = vector.broadcast %188 : vector<1x256xf32> to vector<64x256xf32>
    %190 = arith.addf %186, %189 : vector<64x256xf32>
    %cst_69 = arith.constant 5.000000e-01 : f32
    %191 = vector.broadcast %cst_69 : f32 to vector<64x256xf32>
    %192 = arith.mulf %191, %190 : vector<64x256xf32>
    %cst_70 = arith.constant 0.707106769 : f32
    %193 = vector.broadcast %cst_70 : f32 to vector<64x256xf32>
    %194 = arith.mulf %190, %193 : vector<64x256xf32>
    %195 = math.absf %194 : vector<64x256xf32>
    %cst_71 = arith.constant 0.327591091 : f32
    %196 = vector.broadcast %cst_71 : f32 to vector<64x256xf32>
    %197 = arith.mulf %196, %195 : vector<64x256xf32>
    %cst_72 = arith.constant 1.000000e+00 : f32
    %198 = vector.broadcast %cst_72 : f32 to vector<64x256xf32>
    %199 = arith.addf %198, %197 : vector<64x256xf32>
    %200 = tpu.reciprocal %199 {approx = true} : vector<64x256xf32> -> vector<64x256xf32>
    %cst_73 = arith.constant 1.06140542 : f32
    %201 = vector.broadcast %cst_73 : f32 to vector<64x256xf32>
    %202 = arith.mulf %201, %200 : vector<64x256xf32>
    %cst_74 = arith.constant -1.45315206 : f32
    %203 = vector.broadcast %cst_74 : f32 to vector<64x256xf32>
    %204 = arith.addf %202, %203 : vector<64x256xf32>
    %205 = arith.mulf %204, %200 : vector<64x256xf32>
    %cst_75 = arith.constant 1.42141378 : f32
    %206 = vector.broadcast %cst_75 : f32 to vector<64x256xf32>
    %207 = arith.addf %205, %206 : vector<64x256xf32>
    %208 = arith.mulf %207, %200 : vector<64x256xf32>
    %cst_76 = arith.constant -0.284496725 : f32
    %209 = vector.broadcast %cst_76 : f32 to vector<64x256xf32>
    %210 = arith.addf %208, %209 : vector<64x256xf32>
    %211 = arith.mulf %210, %200 : vector<64x256xf32>
    %cst_77 = arith.constant 0.254829586 : f32
    %212 = vector.broadcast %cst_77 : f32 to vector<64x256xf32>
    %213 = arith.addf %211, %212 : vector<64x256xf32>
    %214 = arith.mulf %213, %200 : vector<64x256xf32>
    %cst_78 = arith.constant 0.000000e+00 : f32
    %215 = vector.broadcast %cst_78 : f32 to vector<64x256xf32>
    %216 = arith.subf %215, %195 : vector<64x256xf32>
    %217 = arith.mulf %216, %195 : vector<64x256xf32>
    %218 = math.exp %217 : vector<64x256xf32>
    %219 = arith.mulf %214, %218 : vector<64x256xf32>
    %cst_79 = arith.constant 1.000000e+00 : f32
    %220 = vector.broadcast %cst_79 : f32 to vector<64x256xf32>
    %221 = arith.subf %220, %219 : vector<64x256xf32>
    %cst_80 = arith.constant 0.000000e+00 : f32
    %222 = vector.broadcast %cst_80 : f32 to vector<64x256xf32>
    %223 = arith.cmpf oge, %194, %222 : vector<64x256xf32>
    %cst_81 = arith.constant 0.000000e+00 : f32
    %224 = vector.broadcast %cst_81 : f32 to vector<64x256xf32>
    %225 = arith.subf %224, %221 : vector<64x256xf32>
    %226 = arith.select %223, %221, %225 : vector<64x256xi1>, vector<64x256xf32>
    %cst_82 = arith.constant 1.000000e+00 : f32
    %227 = vector.broadcast %cst_82 : f32 to vector<64x256xf32>
    %228 = arith.addf %227, %226 : vector<64x256xf32>
    %229 = arith.mulf %192, %228 : vector<64x256xf32>
    %230 = arith.truncf %229 : vector<64x256xf32> to vector<64x256xbf16>
    %c0_83 = arith.constant 0 : index
    %c0_84 = arith.constant 0 : index
    %c0_85 = arith.constant 0 : index
    %231 = vector.load %arg16[%c0_83, %c0_84, %c0_85] : memref<1x256x128xbf16, #tpu.memory_space<vmem>>, vector<1x256x128xbf16>
    %232 = vector.shape_cast %231 : vector<1x256x128xbf16> to vector<256x128xbf16>
    %cst_86 = arith.constant dense<0.000000e+00> : vector<64x128xf32>
    %233 = tpu.matmul %230, %232, %cst_86 {dimension_numbers = #tpu.dot_dimension_numbers<[1], [0], [0], [1], [0, 0, 1, 1], [], []>} : vector<64x256xbf16>, vector<256x128xbf16>, vector<64x128xf32> -> vector<64x128xf32>
    %c0_87 = arith.constant 0 : index
    %c0_88 = arith.constant 0 : index
    %c0_89 = arith.constant 0 : index
    %234 = vector.load %arg17[%c0_87, %c0_88, %c0_89] : memref<1x1x128xf32, #tpu.memory_space<vmem>>, vector<1x1x128xf32>
    %235 = vector.shape_cast %234 : vector<1x1x128xf32> to vector<1x128xf32>
    %236 = vector.broadcast %235 : vector<1x128xf32> to vector<64x128xf32>
    %237 = arith.addf %233, %236 : vector<64x128xf32>
    %238 = arith.addf %156, %237 : vector<64x128xf32>
    %239 = vector.shape_cast %238 : vector<64x128xf32> to vector<4x16x128xf32>
    %c0_90 = arith.constant 0 : index
    %c0_91 = arith.constant 0 : index
    %c0_92 = arith.constant 0 : index
    %240 = vector.load %arg18[%c0_90, %c0_91, %c0_92] : memref<4x16x128xf32, #tpu.memory_space<vmem>>, vector<4x16x128xf32>
    tpu.vector_store %arg18[%c0_90, %c0_91, %c0_92], %239 {strides = array<i32>} : memref<4x16x128xf32, #tpu.memory_space<vmem>>, vector<4x16x128xf32>,
    return
  }
  func.func @transform_0(%arg0: i32, %arg1: i32) -> (i32, i32) {
    %c0_i32 = arith.constant 0 : i32
    %c0_i32_0 = arith.constant 0 : i32
    return %arg0, %c0_i32 : i32, i32
  }
  func.func @transform_1(%arg0: i32, %arg1: i32) -> (i32, i32) {
    %c0_i32 = arith.constant 0 : i32
    %c0_i32_0 = arith.constant 0 : i32
    %c0_i32_1 = arith.constant 0 : i32
    return %c0_i32, %c0_i32_0 : i32, i32
  }
  func.func @transform_2(%arg0: i32, %arg1: i32) -> (i32, i32) {
    %c0_i32 = arith.constant 0 : i32
    %c0_i32_0 = arith.constant 0 : i32
    %c0_i32_1 = arith.constant 0 : i32
    return %c0_i32, %c0_i32_0 : i32, i32
  }
  func.func @transform_3(%arg0: i32, %arg1: i32) -> (i32, i32) {
    %c0_i32 = arith.constant 0 : i32
    %c0_i32_0 = arith.constant 0 : i32
    %c0_i32_1 = arith.constant 0 : i32
    return %c0_i32, %c0_i32_0 : i32, i32
  }
  func.func @transform_4(%arg0: i32, %arg1: i32) -> (i32, i32, i32) {
    %c0_i32 = arith.constant 0 : i32
    %c0_i32_0 = arith.constant 0 : i32
    %c0_i32_1 = arith.constant 0 : i32
    return %arg1, %c0_i32, %c0_i32_0 : i32, i32, i32
  }
  func.func @transform_5(%arg0: i32, %arg1: i32) -> (i32, i32, i32) {
    %c0_i32 = arith.constant 0 : i32
    %c0_i32_0 = arith.constant 0 : i32
    %c0_i32_1 = arith.constant 0 : i32
    return %arg1, %c0_i32, %c0_i32_0 : i32, i32, i32
  }
  func.func @transform_6(%arg0: i32, %arg1: i32) -> (i32, i32, i32) {
    %c0_i32 = arith.constant 0 : i32
    %c0_i32_0 = arith.constant 0 : i32
    %c0_i32_1 = arith.constant 0 : i32
    return %arg1, %c0_i32, %c0_i32_0 : i32, i32, i32
  }
  func.func @transform_7(%arg0: i32, %arg1: i32) -> (i32, i32, i32) {
    %c0_i32 = arith.constant 0 : i32
    %c0_i32_0 = arith.constant 0 : i32
    %c0_i32_1 = arith.constant 0 : i32
    return %arg1, %c0_i32, %c0_i32_0 : i32, i32, i32
  }
  func.func @transform_8(%arg0: i32, %arg1: i32) -> (i32, i32, i32) {
    %c0_i32 = arith.constant 0 : i32
    %c0_i32_0 = arith.constant 0 : i32
    %c0_i32_1 = arith.constant 0 : i32
    return %arg1, %c0_i32, %c0_i32_0 : i32, i32, i32
  }
  func.func @transform_9(%arg0: i32, %arg1: i32) -> (i32, i32, i32) {
    %c0_i32 = arith.constant 0 : i32
    %c0_i32_0 = arith.constant 0 : i32
    %c0_i32_1 = arith.constant 0 : i32
    return %arg1, %c0_i32, %c0_i32_0 : i32, i32, i32
  }
  func.func @transform_10(%arg0: i32, %arg1: i32) -> (i32, i32, i32) {
    %c0_i32 = arith.constant 0 : i32
    %c0_i32_0 = arith.constant 0 : i32
    %c0_i32_1 = arith.constant 0 : i32
    return %arg1, %c0_i32, %c0_i32_0 : i32, i32, i32
  }
  func.func @transform_11(%arg0: i32, %arg1: i32) -> (i32, i32, i32) {
    %c0_i32 = arith.constant 0 : i32
    %c0_i32_0 = arith.constant 0 : i32
    %c0_i32_1 = arith.constant 0 : i32
    return %arg1, %c0_i32, %c0_i32_0 : i32, i32, i32
  }
  func.func @transform_12(%arg0: i32, %arg1: i32) -> (i32, i32, i32) {
    %c0_i32 = arith.constant 0 : i32
    %c0_i32_0 = arith.constant 0 : i32
    %c0_i32_1 = arith.constant 0 : i32
    return %arg1, %c0_i32, %c0_i32_0 : i32, i32, i32
  }
  func.func @transform_13(%arg0: i32, %arg1: i32) -> (i32, i32, i32) {
    %c0_i32 = arith.constant 0 : i32
    %c0_i32_0 = arith.constant 0 : i32
    %c0_i32_1 = arith.constant 0 : i32
    return %arg1, %c0_i32, %c0_i32_0 : i32, i32, i32
  }
  func.func @transform_14(%arg0: i32, %arg1: i32) -> (i32, i32, i32) {
    %c0_i32 = arith.constant 0 : i32
    %c0_i32_0 = arith.constant 0 : i32
    %c0_i32_1 = arith.constant 0 : i32
    return %arg1, %c0_i32, %c0_i32_0 : i32, i32, i32
  }
  func.func @transform_15(%arg0: i32, %arg1: i32) -> (i32, i32, i32) {
    %c0_i32 = arith.constant 0 : i32
    %c0_i32_0 = arith.constant 0 : i32
    %c0_i32_1 = arith.constant 0 : i32
    return %arg1, %c0_i32, %c0_i32_0 : i32, i32, i32
  }
  func.func @transform_16(%arg0: i32, %arg1: i32) -> (i32, i32, i32) {
    %c0_i32 = arith.constant 0 : i32
    %c0_i32_0 = arith.constant 0 : i32
    %c0_i32_1 = arith.constant 0 : i32
    return %arg0, %c0_i32, %c0_i32_0 : i32, i32, i32
  }
}

</mosaic_0001>

<bundles_post_ra>
// kernel: tpu_custom_call.1
= control target key start
LH: loop header
LB: loop body
LE: loop exit
PB: predicated region body
PF: predicated region fallthrough
CT: control target
= control target key end

     0   :  { %s8116_s0 = inlined_call_operand.hbm [shape: bf16[64,192], index: 0, kind: input, shape index: {}]   ;;  %s8117_s1 = inlined_call_operand.hbm [shape: bf16[192,128], index: 1, kind: input, shape index: {}]   ;;  %s8118_s2 = inlined_call_operand.hbm [shape: f32[1,128], index: 2, kind: input, shape index: {}]   ;;  %s8119_s3 = inlined_call_operand.hbm [shape: f32[16,128], index: 3, kind: input, shape index: {}]   ;;  %s8120_s4 = inlined_call_operand.vmem [shape: f32[2,1,128], index: 4, kind: input, shape index: {}]   ;;  %s8121_s5 = inlined_call_operand.vmem [shape: f32[2,1,128], index: 5, kind: input, shape index: {}]   ;;  %s8122_s6 = inlined_call_operand.hbm [shape: bf16[2,128,384], index: 6, kind: input, shape index: {}]   ;;  %s8123_s7 = inlined_call_operand.vmem [shape: f32[2,1,384], index: 7, kind: input, shape index: {}]   ;;  %s8124_s8 = inlined_call_operand.hbm [shape: bf16[2,128,128], index: 8, kind: input, shape index: {}]   ;;  %s8125_s9 = inlined_call_operand.vmem [shape: f32[2,1,128], index: 9, kind: input, shape index: {}]   ;;  %s8126_s10 = inlined_call_operand.vmem [shape: f32[2,1,128], index: 10, kind: input, shape index: {}]   ;;  %s8127_s11 = inlined_call_operand.vmem [shape: f32[2,1,128], index: 11, kind: input, shape index: {}]   ;;  %s8128_s12 = inlined_call_operand.hbm [shape: bf16[2,128,256], index: 12, kind: input, shape index: {}]   ;;  %s8129_s13 = inlined_call_operand.vmem [shape: f32[2,1,256], index: 13, kind: input, shape index: {}]   ;;  %s8130_s14 = inlined_call_operand.hbm [shape: bf16[2,256,128], index: 14, kind: input, shape index: {}]   ;;  %s8131_s15 = inlined_call_operand.vmem [shape: f32[2,1,128], index: 15, kind: input, shape index: {}]   ;;  %s8132_s16 = inlined_call_operand.hbm [shape: f32[4,16,128], index: 16, kind: output, shape index: {}]  }
   0x1   :  { %8156 = sst [smem:[#allocation24_spill]] %s8116_s0 }
   0x2   :  { %8157 = sst [smem:[#allocation25_spill]] %s8117_s1 }
   0x3   :  { %8158 = sst [smem:[#allocation26_spill]] %s8118_s2 }
   0x4   :  { %8159 = sst [smem:[#allocation27_spill]] %s8119_s3 }
   0x5   :  { %8160 = sst [smem:[#allocation28_spill]] %s8120_s4 }
   0x6   :  { %8161 = sst [smem:[#allocation29_spill]] %s8121_s5 }
   0x7   :  { %8162 = sst [smem:[#allocation30_spill]] %s8122_s6 }
   0x8   :  { %8163 = sst [smem:[#allocation31_spill]] %s8123_s7 }
   0x9   :  { %8164 = sst [smem:[#allocation32_spill]] %s8124_s8 }
   0xa   :  { %8165 = sst [smem:[#allocation33_spill]] %s8125_s9 }
   0xb   :  { %8166 = sst [smem:[#allocation34_spill]] %s8126_s10 }
   0xc   :  { %8167 = sst [smem:[#allocation35_spill]] %s8127_s11 }
   0xd   :  { %8168 = sst [smem:[#allocation36_spill]] %s8128_s12 }
   0xe   :  { %8169 = sst [smem:[#allocation37_spill]] %s8129_s13 }
   0xf   :  { %8170 = sst [smem:[#allocation38_spill]] %s8131_s15 }
  0x10   :  { %8171 = sst [smem:[#allocation39_spill]] %s8132_s16 }
  0x11   :  { %21 = vsyncpa [#allocation3], 0 }
  0x12   :  { %22 = vsyncpa [#allocation6], 0 }
  0x13   :  { %23 = vsyncpa [#allocation9], 0 }
  0x14   :  { %24 = vsyncpa [#allocation4], 0  ;;  %s6658_s21 = smov 0   ;;  %s6660_s22 = smov 0  }
  0x15   :  { %s6662_s23 = smov 0   ;;  %s6664_s24 = smov 0  }
  0x16   :  { %s6666_s25 = smov 0   ;;  %s6668_s26 = smov 0  }
  0x17 LB: > { %8172 = sst [smem:[#allocation20_spill]] %s6535_s23  ;;  %s6687_s27 = sadd.s32 4294967295, %s6547_s26   ;;  %s6547_s26 = sphi %s6668_s26, %s30_s26   ;;  %s6543_s25 = sphi %s6666_s25, %s8233_s25   ;;  %s6539_s24 = sphi %s6664_s24, %s8232_s24   ;;  %s6535_s23 = sphi %s6662_s23, %s8228_s23   ;;  %s6531_s22 = sphi %s6660_s22, %s8231_s22   ;;  %s6527_s21 = sphi %s6658_s21, %s8230_s21  }
  0x18   : > { %8173 = sst [smem:[#allocation21_spill]] %s6547_s26  ;;  %p203_p0 = scmp.ne.s32.totalorder %s6531_s22, %s6527_s21 }
  0x19   : > { %p8135_p1 = scmp.eq.s32.totalorder %s6687_s27, 0  ;;  %p5122_p2 = scmp.ge.s32.totalorder %s6547_s26, 1 }
  0x1a   : > { %p474_p3 = scmp.lt.s32.totalorder %s6547_s26, 3  ;;  %s6549_s30 = smov [#allocation2]  }
  0x1b   : > { %p6695_p4 = por %p8135_p1, %p203_p0  ;;  %s490_s0 = sshll.u32 %s6549_s30, 4  ;;  %s491_s0 = int_to_ptr.vmem [resolvable:$true] %s490_s0 }
  0x1c   : > { %p6699_p5 = pnand %p5122_p2, %p474_p3  ;;  %s39_s18 = sadd.s32 1, %s6543_s25 }
  0x1d   : > { %s8174_s28 = scalar_select %p6695_p4, 1, 0 }
  0x1e   : > { %s8175_s29 = scalar_select %p6699_p5, 1, 0 }
  0x1f   : > { %p5782_p6 = pneg %p6699_p5  ;;  %s8177_s21 = sld [smem:[#allocation24_spill]] }
  0x21   : > { %p6707_p7 = pnand %p5782_p6, %p8135_p1 }
  0x23   : > { %s8176_s17 = scalar_select %p6707_p7, 1, 0 }
  0x24   : > { %p6720_p9 = pneg %p6707_p7 }
  0x25   : > { %s8178_s16 = smov %s8177_s21  ;;  %s6223_s15 = scalar_lea.hbm %s8177_s21, 1024 }
  0x26   : > { %p6224_p8 = scmp.ne.s32.totalorder %s8178_s16, %s6223_s15  ;;  %p6230_p12 = scmp.lt.u32.totalorder %s6223_s15, %s8178_s16 }
  0x27   : > { %s8179_s30 = scalar_select %p6720_p9, 1, 0 }
  0x28   : > { %p6226_p10 = pnand %p6720_p9, %p6224_p8 }
  0x2a   : > { %p6227_p11 = pneg %p6226_p10 }
  0x2c   : > { %p6232_p13 = pnand %p6230_p12, %p6227_p11 }
  0x2e   : > { %6235 = shalt.err (!%p6232_p13)
}
  0x2f   : > { %s6236_s19 = scalar_lea.vmem %s491_s0, 1024  ;;  %p6244_p6 = scmp.lt.s32.totalorder %s491_s0, %s491_s0 }
  0x30   : > { %p6237_p0 = scmp.ne.s32.totalorder %s491_s0, %s6236_s19  ;;  %p6245_p1 = scmp.lt.s32.totalorder %s6236_s19, %s6236_s19 }
  0x32   : > { %p6239_p2 = pnand %p6237_p0, %p6720_p9  ;;  %p6246_p4 = por %p6245_p1, %p6244_p6 }
  0x34   : > { %p6240_p3 = pneg %p6239_p2 }
  0x36   : > { %p6247_p5 = pnand %p6246_p4, %p6240_p3 }
  0x38   : > { %6250 = shalt.err (!%p6247_p5)
}
  0x39   : > { %s8138_s7 = smov 128   ;;  %s8140_s10 = smov 8  }
  0x3a   : > { %5785 = dma.hbm_to_vmem [thread:$0]  (!%p6707_p7), %s8178_s16, 1024, %s491_s0, [#allocation3], %s8138_s7, %s8138_s7, %s8140_s10  }
  0x3b   : > { %p40_p1 = scmp.ge.s32.totalorder %s39_s18, 2  ;;  %s190_s15 = sadd.s32 1, %s6535_s23 }
  0x3c   : > { %p197_p4 = scmp.ne.s32.totalorder %s6535_s23, %s6531_s22  ;;  %p198_p5 = scmp.eq.s32.totalorder %s6547_s26, 0 }
  0x3d   : > { %s8235_s18 = smov (%p40_p1, %s39_s18), 0  ;;  %p5812_p10 = scmp.lt.s32.totalorder %s6547_s26, 2 }
  0x3e   : > { %8180 = sst [smem:[#allocation22_spill]] %s8235_s18  ;;  %p199_p8 = por %p198_p5, %p197_p4 }
  0x3f   : > { %s187_s20 = ssub.s32 %s6543_s25, %s8235_s18  ;;  %s553_s21 = sand.u32 1, %s6547_s26  }
  0x40   : > { %p188_p11 = scmp.eq.s32.totalorder %s187_s20, 0  ;;  %s6750_s19 = sand.u32 1, %s6535_s23  }
  0x41   : > { %s5751_s9 = smul.u32 3072, %s6543_s25  ;;  %s8182_s6 = sld [smem:[#allocation30_spill]] }
  0x42   : > { %s6754_s5 = scalar_select %p188_p11, %s6535_s23, %s190_s15  }
  0x43   : > { %s5750_s11 = smul.u32 192, %s6750_s19  ;;  %p6762_p12 = pnand %p5812_p10, %p199_p8 }
  0x44   : > { %8181 = sst [smem:[#allocation23_spill]] %s6754_s5  ;;  %s6768_s15 = scalar_lea.sflag [#allocation3], %s553_s21 }
  0x45   : > { %s8183_s10 = scalar_select %p6762_p12, 1, 0 }
  0x46   : > { %s557_s20 = scalar_lea.vmem [#allocation10], %s5750_s11  ;;  %p6774_p0 = pneg %p6762_p12 }
  0x47   : > { %s6760_s7 = scalar_lea.hbm %s8182_s6, %s5751_s9  ;;  %s564_s16 = sshll.u32 %s557_s20, 4  ;;  %s6766_s16 = int_to_ptr.vmem [resolvable:$true] %s564_s16 }
  0x48   : > { %s6251_s18 = scalar_lea.hbm %s6760_s7, 3072  ;;  %s6256_s11 = scalar_lea.hbm %s8182_s6, 6144 }
  0x49   : > { %p6252_p13 = scmp.ne.s32.totalorder %s6760_s7, %s6251_s18  ;;  %p6257_p6 = scmp.lt.u32.totalorder %s6760_s7, %s8182_s6 }
  0x4a   : > { %p6258_p1 = scmp.lt.u32.totalorder %s6256_s11, %s6251_s18  ;;  %p6260_p5 = scmp.lt.u32.totalorder %s6251_s18, %s6760_s7 }
  0x4b   : > { %p6254_p2 = pnand %p6774_p0, %p6252_p13 }
  0x4c   : > { %p6259_p4 = por %p6258_p1, %p6257_p6 }
  0x4d   : > { %p6255_p3 = pneg %p6254_p2 }
  0x4e   : > { %p6261_p8 = por %p6260_p5, %p6259_p4 }
  0x50   : > { %p6262_p10 = pnand %p6261_p8, %p6255_p3 }
  0x52   : > { %6265 = shalt.err (!%p6262_p10)
}
  0x53   : > { %s6266_s21 = scalar_lea.vmem %s6766_s16, 3072  ;;  %s6552_s0 = smov [#allocation10]  }
  0x54   : > { %p6267_p11 = scmp.ne.s32.totalorder %s6766_s16, %s6266_s21  ;;  %s6271_s13 = sshll.u32 %s6552_s0, 4  ;;  %s6272_s13 = int_to_ptr.vmem [resolvable:$false] %s6271_s13 }
  0x55   : > { %s6273_s5 = scalar_lea.vmem %s6272_s13, 6144  ;;  %p6274_p7 = scmp.lt.s32.totalorder %s6766_s16, %s6272_s13 }
  0x56   : > { %p6269_p13 = pnand %p6267_p11, %p6774_p0  ;;  %p6275_p9 = scmp.lt.s32.totalorder %s6273_s5, %s6266_s21 }
  0x58   : > { %p6270_p2 = pneg %p6269_p13  ;;  %p6276_p6 = por %p6275_p9, %p6274_p7 }
  0x5a   : > { %p6277_p1 = pnand %p6276_p6, %p6270_p2 }
  0x5c   : > { %6280 = shalt.err (!%p6277_p1)
}
  0x5d   : > { %s6553_s18 = smov 192   ;;  %s6554_s11 = smov 12  }
  0x5e   : > { %5798 = dma.hbm_to_vmem [thread:$0]  (!%p6762_p12), %s6760_s7, 3072, %s6766_s16, %s6768_s15, %s6553_s18, %s6553_s18, %s6554_s11  }
  0x5f   : > { %s5129_s20 = sshll.u32 %s6750_s19, 6  ;;  %s5295_s0 = sshll.u32 %s6543_s25, 10 }
  0x60   : > { %s8185_s8 = sld [smem:[#allocation32_spill]]  ;;  %s585_s13 = scalar_lea.vmem [#allocation11], %s5129_s20 }
  0x61   : > { %s592_s5 = sshll.u32 %s585_s13, 4  ;;  %s6805_s5 = int_to_ptr.vmem [resolvable:$true] %s592_s5 }
  0x66   : > { %s6803_s21 = scalar_lea.hbm %s8185_s8, %s5295_s0  ;;  %s6286_s18 = scalar_lea.hbm %s8185_s8, 2048 }
  0x67   : > { %s6281_s26 = scalar_lea.hbm %s6803_s21, 1024  ;;  %p6287_p4 = scmp.lt.u32.totalorder %s6803_s21, %s8185_s8 }
  0x68   : > { %p6282_p7 = scmp.ne.s32.totalorder %s6803_s21, %s6281_s26  ;;  %p6288_p5 = scmp.lt.u32.totalorder %s6286_s18, %s6281_s26 }
  0x69   : > { %p6290_p10 = scmp.lt.u32.totalorder %s6281_s26, %s6803_s21 }
  0x6a   : > { %p6284_p9 = pnand %p6282_p7, %p6774_p0  ;;  %p6289_p8 = por %p6288_p5, %p6287_p4 }
  0x6c   : > { %p6285_p3 = pneg %p6284_p9  ;;  %p6291_p11 = por %p6290_p10, %p6289_p8 }
  0x6e   : > { %p6292_p13 = pnand %p6291_p11, %p6285_p3 }
  0x70   : > { %6295 = shalt.err (!%p6292_p13)
}
  0x71   : > { %s6296_s11 = scalar_lea.vmem %s6805_s5, 1024  ;;  %s6555_s20 = smov [#allocation11]  }
  0x72   : > { %p6297_p2 = scmp.ne.s32.totalorder %s6805_s5, %s6296_s11  ;;  %s6301_s0 = sshll.u32 %s6555_s20, 4  ;;  %s6302_s0 = int_to_ptr.vmem [resolvable:$false] %s6301_s0 }
  0x73   : > { %s6303_s13 = scalar_lea.vmem %s6302_s0, 2048  ;;  %p6304_p7 = scmp.lt.s32.totalorder %s6805_s5, %s6302_s0 }
  0x74   : > { %p6299_p6 = pnand %p6297_p2, %p6774_p0  ;;  %p6305_p9 = scmp.lt.s32.totalorder %s6303_s13, %s6296_s11 }
  0x76   : > { %p6300_p1 = pneg %p6299_p6  ;;  %p6306_p4 = por %p6305_p9, %p6304_p7 }
  0x78   : > { %p6307_p5 = pnand %p6306_p4, %p6300_p1 }
  0x7a   : > { %6310 = shalt.err (!%p6307_p5)
}
  0x7b   : > { %s8152_s26 = smov 64   ;;  %s8153_s16 = smov 4  }
  0x7c   : > { %5801 = dma.hbm_to_vmem [thread:$0]  (!%p6762_p12), %s6803_s21, 1024, %s6805_s5, %s6768_s15, %s8152_s26, %s8152_s26, %s8153_s16  }
  0x7d   : > { %s6558_s7 = smov [#allocation5]   ;;  %s8154_s6 = sshll.u32 %s6750_s19, 7 }
  0x7e   : > { %s503_s18 = sshll.u32 %s6558_s7, 4  ;;  %s8186_s1 = sld [smem:[#allocation25_spill]]  ;;  %s504_s18 = int_to_ptr.vmem [resolvable:$true] %s503_s18 }
  0x7f   : > { %p8187_p8 = scmp.ne.s32.totalorder %s8179_s30, 0 }
  0x84   : > { %s6311_s20 = scalar_lea.hbm %s8186_s1, 1536 }
  0x85   : > { %p6312_p3 = scmp.ne.s32.totalorder %s8186_s1, %s6311_s20  ;;  %p6318_p13 = scmp.lt.u32.totalorder %s6311_s20, %s8186_s1 }
  0x87   : > { %p6314_p10 = pnand %p6312_p3, %p8187_p8 }
  0x89   : > { %p6315_p11 = pneg %p6314_p10 }
  0x8b   : > { %p6320_p2 = pnand %p6318_p13, %p6315_p11 }
  0x8d   : > { %6323 = shalt.err (!%p6320_p2)
}
  0x8e   : > { %s6324_s21 = scalar_lea.vmem %s504_s18, 1536  ;;  %p6332_p9 = scmp.lt.s32.totalorder %s504_s18, %s504_s18 }
  0x8f   : > { %p6325_p6 = scmp.ne.s32.totalorder %s504_s18, %s6324_s21  ;;  %p6333_p4 = scmp.lt.s32.totalorder %s6324_s21, %s6324_s21 }
  0x91   : > { %p6327_p1 = pnand %p6325_p6, %p8187_p8  ;;  %p6334_p5 = por %p6333_p4, %p6332_p9 }
  0x93   : > { %p6328_p7 = pneg %p6327_p1 }
  0x95   : > { %p6335_p12 = pnand %p6334_p5, %p6328_p7 }
  0x97   : > { %6338 = shalt.err (!%p6335_p12)
}
  0x98   : > { %p8188_p3 = scmp.ne.s32.totalorder %s8176_s17, 0  ;;  %s8155_s5 = sshll.u32 %s6543_s25, 11 }
  0x99   : > { %s624_s7 = scalar_lea.vmem [#allocation12], %s8154_s6  ;;  %s8189_s12 = sld [smem:[#allocation36_spill]] }
  0x9a   : > { %5788 = dma.hbm_to_vmem [thread:$0]  (!%p8188_p3), %s8186_s1, 1536, %s504_s18, [#allocation6], %s8152_s26, %s8152_s26, %s8153_s16  }
  0x9b   : > { %s631_s23 = sshll.u32 %s624_s7, 4  ;;  %s6864_s23 = int_to_ptr.vmem [resolvable:$true] %s631_s23 }
  0x9f   : > { %s6862_s0 = scalar_lea.hbm %s8189_s12, %s8155_s5  ;;  %s6344_s4 = scalar_lea.hbm %s8189_s12, 4096 }
  0xa0   : > { %s6339_s13 = scalar_lea.hbm %s6862_s0, 2048  ;;  %p6345_p13 = scmp.lt.u32.totalorder %s6862_s0, %s8189_s12 }
  0xa1   : > { %p6340_p12 = scmp.ne.s32.totalorder %s6862_s0, %s6339_s13  ;;  %p6346_p2 = scmp.lt.u32.totalorder %s6344_s4, %s6339_s13 }
  0xa2   : > { %p6348_p1 = scmp.lt.u32.totalorder %s6339_s13, %s6862_s0 }
  0xa3   : > { %p6342_p10 = pnand %p6340_p12, %p6774_p0  ;;  %p6347_p6 = por %p6346_p2, %p6345_p13 }
  0xa5   : > { %p6343_p11 = pneg %p6342_p10  ;;  %p6349_p7 = por %p6348_p1, %p6347_p6 }
  0xa7   : > { %p6350_p9 = pnand %p6349_p7, %p6343_p11 }
  0xa9   : > { %6353 = shalt.err (!%p6350_p9)
}
  0xaa   : > { %s6354_s11 = scalar_lea.vmem %s6864_s23, 2048  ;;  %s6559_s20 = smov [#allocation12]  }
  0xab   : > { %p6355_p4 = scmp.ne.s32.totalorder %s6864_s23, %s6354_s11  ;;  %s6359_s18 = sshll.u32 %s6559_s20, 4  ;;  %s6360_s18 = int_to_ptr.vmem [resolvable:$false] %s6359_s18 }
  0xac   : > { %s6361_s21 = scalar_lea.vmem %s6360_s18, 4096  ;;  %p6362_p10 = scmp.lt.s32.totalorder %s6864_s23, %s6360_s18 }
  0xad   : > { %p6357_p5 = pnand %p6355_p4, %p6774_p0  ;;  %p6363_p3 = scmp.lt.s32.totalorder %s6361_s21, %s6354_s11 }
  0xaf   : > { %p6358_p12 = pneg %p6357_p5  ;;  %p6364_p13 = por %p6363_p3, %p6362_p10 }
  0xb1   : > { %p6365_p2 = pnand %p6364_p13, %p6358_p12 }
  0xb3   : > { %6368 = shalt.err (!%p6365_p2)
}
  0xb4   : > { %p8190_p11 = scmp.ne.s32.totalorder %s8183_s10, 0  ;;  %s8191_s13 = smov 8  }
  0xb5   : > { %s8192_s4 = smov 128   ;;  %s6560_s8 = smov [#allocation7]  }
  0xb6   : > { %5804 = dma.hbm_to_vmem [thread:$0]  (!%p8190_p11), %s6862_s0, 2048, %s6864_s23, %s6768_s15, %s8192_s4, %s8192_s4, %s8191_s13  }
  0xb7   : > { %s517_s7 = sshll.u32 %s6560_s8, 4  ;;  %s6561_s20 = smov [#allocation8]   ;;  %s518_s7 = int_to_ptr.vmem [resolvable:$true] %s517_s7 }
  0xb8   : > { %s527_s26 = sshll.u32 %s6561_s20, 4  ;;  %s8193_s2 = sld [smem:[#allocation26_spill]]  ;;  %s6891_s26 = int_to_ptr.vmem [resolvable:$true] %s527_s26 }
  0xbe   : > { %s6369_s21 = scalar_lea.hbm %s8193_s2, 16 }
  0xbf   : > { %p6370_p3 = scmp.ne.s32.totalorder %s8193_s2, %s6369_s21  ;;  %p6376_p7 = scmp.lt.u32.totalorder %s6369_s21, %s8193_s2 }
  0xc1   : > { %p6372_p6 = pnand %p6370_p3, %p8187_p8 }
  0xc3   : > { %p6373_p1 = pneg %p6372_p6 }
  0xc5   : > { %p6378_p9 = pnand %p6376_p7, %p6373_p1 }
  0xc7   : > { %6381 = shalt.err (!%p6378_p9)
}
  0xc8   : > { %s6382_s0 = scalar_lea.vmem %s518_s7, 16  ;;  %s6389_s8 = scalar_lea.vmem %s518_s7, 32 }
  0xc9   : > { %p6383_p4 = scmp.ne.s32.totalorder %s518_s7, %s6382_s0  ;;  %p6390_p10 = scmp.lt.s32.totalorder %s518_s7, %s518_s7 }
  0xca   : > { %p6391_p13 = scmp.lt.s32.totalorder %s6389_s8, %s6382_s0 }
  0xcb   : > { %p6385_p5 = pnand %p6383_p4, %p8187_p8 }
  0xcc   : > { %p6392_p2 = por %p6391_p13, %p6390_p10 }
  0xcd   : > { %p6386_p12 = pneg %p6385_p5 }
  0xcf   : > { %p6393_p11 = pnand %p6392_p2, %p6386_p12 }
  0xd1   : > { %6396 = shalt.err (!%p6393_p11)
}
  0xd2   : > { %p8194_p3 = scmp.ne.s32.totalorder %s8176_s17, 0  ;;  %s8195_s3 = sld [smem:[#allocation27_spill]] }
  0xd4   : > { %5791 = dma.hbm_to_vmem [thread:$0]  (!%p8194_p3), %s8193_s2, 16, %s518_s7, [#allocation6]  }
  0xd8   : > { %s6397_s11 = scalar_lea.hbm %s8195_s3, 256 }
  0xd9   : > { %p6398_p6 = scmp.ne.s32.totalorder %s8195_s3, %s6397_s11  ;;  %p6404_p11 = scmp.lt.u32.totalorder %s6397_s11, %s8195_s3 }
  0xdb   : > { %p6400_p1 = pnand %p6398_p6, %p8187_p8 }
  0xdd   : > { %p6401_p7 = pneg %p6400_p1 }
  0xdf   : > { %p6406_p9 = pnand %p6404_p11, %p6401_p7 }
  0xe1   : > { %6409 = shalt.err (!%p6406_p9)
}
  0xe2   : > { %s6410_s7 = scalar_lea.vmem %s6891_s26, 256  ;;  %p6418_p10 = scmp.lt.s32.totalorder %s6891_s26, %s6891_s26 }
  0xe3   : > { %p6411_p4 = scmp.ne.s32.totalorder %s6891_s26, %s6410_s7  ;;  %p6419_p13 = scmp.lt.s32.totalorder %s6410_s7, %s6410_s7 }
  0xe5   : > { %p6413_p5 = pnand %p6411_p4, %p8187_p8  ;;  %p6420_p2 = por %p6419_p13, %p6418_p10 }
  0xe7   : > { %p6414_p12 = pneg %p6413_p5 }
  0xe9   : > { %p6421_p6 = pnand %p6420_p2, %p6414_p12 }
  0xeb   : > { %6424 = shalt.err (!%p6421_p6)
}
  0xec   : > { %5794 = dma.hbm_to_vmem [thread:$0]  (!%p8194_p3), %s8195_s3, 256, %s6891_s26, [#allocation9], %s8192_s4, %s8192_s4, %s8191_s13  }
  0xed   : > { %s8196_s30 = sshll.u32 %s6543_s25, 11  ;;  %s8197_s11 = sshll.u32 %s6750_s19, 7 }
  0xee   : > { %s6942_s20 = scalar_lea.hbm %s8130_s14, %s8196_s30  ;;  %s652_s17 = scalar_lea.vmem [#allocation13], %s8197_s11 }
  0xef   : > { %s659_s18 = sshll.u32 %s652_s17, 4  ;;  %s6425_s21 = scalar_lea.hbm %s6942_s20, 2048  ;;  %s6946_s18 = int_to_ptr.vmem [resolvable:$true] %s659_s18 }
  0xf0   : > { %p6426_p8 = scmp.ne.s32.totalorder %s6942_s20, %s6425_s21  ;;  %s6430_s4 = scalar_lea.hbm %s8130_s14, 4096 }
  0xf1   : > { %p6431_p7 = scmp.lt.u32.totalorder %s6942_s20, %s8130_s14  ;;  %p6432_p11 = scmp.lt.u32.totalorder %s6430_s4, %s6425_s21 }
  0xf2   : > { %p6428_p1 = pnand %p6426_p8, %p6774_p0  ;;  %p6434_p4 = scmp.lt.u32.totalorder %s6425_s21, %s6942_s20 }
  0xf3   : > { %p6433_p9 = por %p6432_p11, %p6431_p7 }
  0xf4   : > { %p6429_p3 = pneg %p6428_p1 }
  0xf5   : > { %p6435_p5 = por %p6434_p4, %p6433_p9 }
  0xf7   : > { %p6436_p12 = pnand %p6435_p5, %p6429_p3 }
  0xf9   : > { %6439 = shalt.err (!%p6436_p12)
}
  0xfa   : > { %s6440_s19 = scalar_lea.vmem %s6946_s18, 2048  ;;  %s6562_s7 = smov [#allocation13]  }
  0xfb   : > { %p6441_p10 = scmp.ne.s32.totalorder %s6946_s18, %s6440_s19  ;;  %s6445_s8 = sshll.u32 %s6562_s7, 4  ;;  %s6446_s8 = int_to_ptr.vmem [resolvable:$false] %s6445_s8 }
  0xfc   : > { %s6447_s16 = scalar_lea.vmem %s6446_s8, 4096  ;;  %p6448_p6 = scmp.lt.s32.totalorder %s6946_s18, %s6446_s8 }
  0xfd   : > { %p6443_p13 = pnand %p6441_p10, %p6774_p0  ;;  %p6449_p8 = scmp.lt.s32.totalorder %s6447_s16, %s6440_s19 }
  0xff   : > { %p6444_p2 = pneg %p6443_p13  ;;  %p6450_p1 = por %p6449_p8, %p6448_p6 }
 0x101   : > { %p6451_p7 = pnand %p6450_p1, %p6444_p2 }
 0x103   : > { %6454 = shalt.err (!%p6451_p7)
}
 0x104   : > { %p8198_p3 = scmp.ne.s32.totalorder %s8183_s10, 0  ;;  %s8199_s30 = smov 4  }
 0x105   : > { %s8200_s6 = smov 64   ;;  %p8201_p0 = scmp.ne.s32.totalorder %s8175_s29, 0 }
 0x106   : > { %5807 = dma.hbm_to_vmem [thread:$0]  (!%p8198_p3), %s6942_s20, 2048, %s6946_s18, %s6768_s15, %s8200_s6, %s8200_s6, %s8199_s30  }
 0x107   : > { %677 = sbr.rel (%p8201_p0) target bundleno = 4970 (0x136a), region = 84  ;;  %p8202_p11 = scmp.eq.s32.totalorder (!%p8201_p0), %s6687_s27, 0 }
 0x10e   : > { %6506 = dma.done.wait (%p8202_p11), [#allocation3], 1024   ;;  %p8203_p9 = pmov %p8202_p11 }
 0x110   : > { %6508 = vsyncadd (%p8203_p9), [#allocation3], 4294966272  ;;  %p8204_p4 = pmov %p8203_p9 }
 0x112   : > { %6510 = dma.done.wait (%p8204_p4), [#allocation6], 1552   ;;  %p8205_p5 = pmov %p8204_p4 }
 0x113   : > { %p8206_p12 = pmov %p8204_p4 }
 0x114   : > { %6512 = vsyncadd (%p8205_p5), [#allocation6], 4294965744 }
 0x115   : > { %6514 = dma.done.wait (%p8206_p12), [#allocation9], 256   ;;  %p8207_p10 = pmov %p8204_p4 }
 0x116   : > { %s695_s29 = sand.u32 1, %s6687_s27   ;;  %s697_s10 = sand.u32 1, %s6531_s22  }
 0x117   : > { %6516 = vsyncadd (%p8207_p10), [#allocation9], 4294967040  ;;  %s5752_s15 = smul.u32 192, %s697_s10  ;;  %s696_s9 = scalar_lea.sflag [#allocation3], %s695_s29 }
 0x118   : > { %p8208_p13 = scmp.ne.s32.totalorder %s8174_s28, 0 }
 0x119   : > { %s6989_s5 = scalar_lea.vmem [#allocation10], %s5752_s15 }
 0x11a   : > { %6518 = dma.done.wait (%p8208_p13), %s696_s9, 8192  }
 0x11b   : > { %6520 = vsyncadd (%p8208_p13), %s696_s9, 4294959104  ;;  %s5143_s20 = sshll.u32 %s697_s10, 6  ;;  %s5144_s11 = sshll.u32 %s697_s10, 7 }
 0x11c   : > { %p812_p2 = scmp.lt.s32.totalorder %s6539_s24, 1  ;;  %s8211_s16 = sld [smem:[#allocation33_spill]] }
 0x11d   : > { %s8212_s10 = sld [smem:[#allocation34_spill]]  ;;  %s8213_s21 = sld [smem:[#allocation35_spill]] }
 0x11e   : > { %s6997_s17 = scalar_select %p812_p2, %s6539_s24, 1 }
 0x11f   : > { %s8214_s26 = sld [smem:[#allocation31_spill]]  ;;  %s8215_s0 = sld [smem:[#allocation37_spill]] }
 0x120   : > { %s5753_s19 = smul.u32 3, %s6997_s17  ;;  %s5146_s13 = sshll.u32 %s6997_s17, 1 }
 0x121   : > { %s7035_s29 = scalar_lea.vmem [#allocation11], %s5143_s20  ;;  %s7039_s9 = scalar_lea.vmem [#allocation13], %s5144_s11 }
 0x122   : > { %s824_s30 = scalar_lea.vmem %s8211_s16, %s6997_s17  ;;  %s8216_s16 = sld [smem:[#allocation38_spill]] }
 0x123   : > { %s827_s15 = scalar_lea.vmem %s8212_s10, %s6997_s17  ;;  %s830_s1 = scalar_lea.vmem %s8213_s21, %s6997_s17 }
 0x124   : > { %s7037_s10 = scalar_lea.vmem [#allocation12], %s5144_s11  ;;  %p5147_p6 = scmp.ne.s32.totalorder %s6539_s24, 0 }
 0x125   : > { %s7023_s28 = scalar_lea.vmem %s8214_s26, %s5753_s19  ;;  %s7029_s12 = scalar_lea.vmem %s8215_s0, %s5146_s13  ;;  %v5887_v0 = vld [vmem:[#allocation5] sm:$0xff] (!%p5147_p6)   ;;  %v6563_v1 = vmov (!%p5147_p6), 0   ;;  %v5888_v2 = vld [vmem:[#allocation5 + $0x8] sm:$0xff] (!%p5147_p6)   ;;  %v5889_v3 = vld [vmem:[#allocation5 + $0x10] sm:$0xff] (!%p5147_p6)   ;;  %vm991_vm0 = vcmask (!%p5147_p6), 523264  }
 0x126   : > { %843 = sbr.rel (%p5147_p6) target bundleno = 569 (0x239), region = 120  ;;  %1004 = vmatprep.subr.bf16.mxu0 (!%p5147_p6), %v6563_v1  ;;  %5702 = vmatprep.subr.bf16.mxu1 (!%p5147_p6), %v6563_v1  ;;  %v5890_v4 = vld [vmem:[#allocation5 + $0x18] sm:$0xff] (!%p5147_p6)   ;;  %v5901_v5 = vld [vmem:[#allocation2 + $0x4] ss:$8 sps:$4 sm:$0xff] (!%p5147_p6)   ;;  %v5893_v9 = vld [vmem:[#allocation5 + $0x30] sm:$0xff] (!%p5147_p6)  }
 0x127   : > { %1005 = vmatpush1.bf16.msra.mxu0 (!%p5147_p6), %v5887_v0  ;;  %5714 = vmatpush1.bf16.msra.mxu1 (!%p5147_p6), %v5887_v0  ;;  %v5891_v6 = vld [vmem:[#allocation5 + $0x20] sm:$0xff] (!%p5147_p6)   ;;  %v5892_v8 = vld [vmem:[#allocation5 + $0x28] sm:$0xff] (!%p5147_p6)   ;;  %v5894_v10 = vld [vmem:[#allocation5 + $0x38] sm:$0xff] (!%p5147_p6)  }
 0x128   : > { %s837_s6 = scalar_lea.vmem %s8216_s16, %s6997_s17  ;;  %1006 = vmatprep.subr.bf16.mxu0 (!%p5147_p6), %v6563_v1  ;;  %5703 = vmatprep.subr.bf16.mxu1 (!%p5147_p6), %v6563_v1  ;;  %v5904_v7 = vld [vmem:[#allocation2 + $0x24] ss:$8 sps:$4 sm:$0xff] (!%p5147_p6)   ;;  %v5897_v13 = vld [vmem:[#allocation5 + $0x50] sm:$0xff] (!%p5147_p6)   ;;  %v5898_v14 = vld [vmem:[#allocation5 + $0x58] sm:$0xff] (!%p5147_p6)  }
 0x129   : > { %5169 = vmatprep.mubr.msk.bf16.mxu0 (!%p5147_p6), %vm991_vm0, %v5901_v5  ;;  %5171 = vmatprep.mubr.msk.bf16.mxu1 (!%p5147_p6), %vm991_vm0, %v5904_v7  ;;  %v5895_v11 = vld [vmem:[#allocation5 + $0x40] sm:$0xff] (!%p5147_p6)   ;;  %v5896_v12 = vld [vmem:[#allocation5 + $0x48] sm:$0xff] (!%p5147_p6)   ;;  %v5905_v17 = vld [vmem:[#allocation2 + $0x14] ss:$8 sps:$4 sm:$0xff] (!%p5147_p6)  }
 0x12a   : > { %v5899_v15 = vld [vmem:[#allocation2] ss:$8 sps:$4 sm:$0xff] (!%p5147_p6)   ;;  %v5907_v18 = vld [vmem:[#allocation2 + $0x34] ss:$8 sps:$4 sm:$0xff] (!%p5147_p6)   ;;  %v5909_v19 = vld [vmem:[#allocation2 + $0x10] ss:$8 sps:$4 sm:$0xff] (!%p5147_p6)  }
 0x12b   : > { %1007 = vmatpush1.bf16.msra.mxu0 (!%p5147_p6), %v5888_v2  ;;  %5715 = vmatpush1.bf16.msra.mxu1 (!%p5147_p6), %v5888_v2  ;;  %v5902_v16 = vld [vmem:[#allocation2 + $0x20] ss:$8 sps:$4 sm:$0xff] (!%p5147_p6)   ;;  %v5910_v20 = vld [vmem:[#allocation2 + $0x30] ss:$8 sps:$4 sm:$0xff] (!%p5147_p6)  }
 0x12c   : > { %1008 = vmatprep.subr.bf16.mxu0 (!%p5147_p6), %v6563_v1  ;;  %5704 = vmatprep.subr.bf16.mxu1 (!%p5147_p6), %v6563_v1  ;;  %v5148_v21 = vld [vmem:[#allocation7] ss:$0 sm:$0xff] (!%p5147_p6)  ;;  %v1069_v23 = vld [vmem:[#allocation8] sm:$0xff] (!%p5147_p6)  ;;  %v1070_v30 = vld [vmem:[#allocation8 + $0x8] sm:$0xff] (!%p5147_p6) }
 0x12f   : > { %1009 = vmatpush1.bf16.msra.mxu0 %v5889_v3  ;;  %5716 = vmatpush1.bf16.msra.mxu1 %v5889_v3 }
 0x130   : > { %1010 = vmatprep.subr.bf16.mxu0 %v6563_v1  ;;  %5705 = vmatprep.subr.bf16.mxu1 %v6563_v1 }
 0x133   : > { %1011 = vmatpush1.bf16.msra.mxu0 %v5890_v4  ;;  %5717 = vmatpush1.bf16.msra.mxu1 %v5890_v4 }
 0x134   : > { %1012 = vmatprep.subr.bf16.mxu0 %v6563_v1  ;;  %5706 = vmatprep.subr.bf16.mxu1 %v6563_v1 }
 0x137   : > { %1013 = vmatpush1.bf16.msra.mxu0 %v5891_v6  ;;  %5718 = vmatpush1.bf16.msra.mxu1 %v5891_v6 }
 0x138   : > { %1014 = vmatprep.subr.bf16.mxu0 %v6563_v1  ;;  %5707 = vmatprep.subr.bf16.mxu1 %v6563_v1 }
 0x13b   : > { %1015 = vmatpush1.bf16.msra.mxu0 %v5892_v8  ;;  %5719 = vmatpush1.bf16.msra.mxu1 %v5892_v8 }
 0x13c   : > { %1016 = vmatprep.subr.bf16.mxu0 %v6563_v1  ;;  %5708 = vmatprep.subr.bf16.mxu1 %v6563_v1 }
 0x13f   : > { %1017 = vmatpush1.bf16.msra.mxu0 %v5893_v9  ;;  %5720 = vmatpush1.bf16.msra.mxu1 %v5893_v9 }
 0x140   : > { %1018 = vmatprep.subr.bf16.mxu0 %v6563_v1  ;;  %5709 = vmatprep.subr.bf16.mxu1 %v6563_v1 }
 0x143   : > { %1019 = vmatpush1.bf16.msra.mxu0 %v5894_v10  ;;  %5721 = vmatpush1.bf16.msra.mxu1 %v5894_v10 }
 0x144   : > { %1020 = vmatprep.subr.bf16.mxu0 %v6563_v1  ;;  %5710 = vmatprep.subr.bf16.mxu1 %v6563_v1 }
 0x147   : > { %1021 = vmatpush1.bf16.msra.mxu0 %v5895_v11  ;;  %5722 = vmatpush1.bf16.msra.mxu1 %v5895_v11 }
 0x148   : > { %1022 = vmatprep.subr.bf16.mxu0 %v6563_v1  ;;  %5711 = vmatprep.subr.bf16.mxu1 %v6563_v1 }
 0x14b   : > { %1023 = vmatpush1.bf16.msra.mxu0 %v5896_v12  ;;  %5723 = vmatpush1.bf16.msra.mxu1 %v5896_v12 }
 0x14c   : > { %1024 = vmatprep.subr.bf16.mxu0 %v6563_v1  ;;  %5712 = vmatprep.subr.bf16.mxu1 %v6563_v1 }
 0x14f   : > { %1025 = vmatpush1.bf16.msra.mxu0 %v5897_v13  ;;  %5724 = vmatpush1.bf16.msra.mxu1 %v5897_v13 }
 0x150   : > { %1026 = vmatprep.subr.bf16.mxu0 %v6563_v1  ;;  %5713 = vmatprep.subr.bf16.mxu1 %v6563_v1 }
 0x153   : > { %1027 = vmatpush1.bf16.msra.mxu0 %v5898_v14  ;;  %5725 = vmatpush1.bf16.msra.mxu1 %v5898_v14 }
 0x156   : > { %1037 = vmatmul.mubr.bf16.vlgmr.msra.gmra.mrb[0].mxu0 %v5899_v15  ;;  %1053 = vmatmul.mubr.bf16.vlgmr.msra.gmra.mrb[0].mxu1 %v5902_v16 }
 0x157   : > { %5170 = vmatprep.mubr.msk.bf16.mxu0 %vm991_vm0, %v5905_v17  ;;  %5172 = vmatprep.mubr.msk.bf16.mxu1 %vm991_vm0, %v5907_v18 }
 0x15e   : > { %1045 = vmatmul.mubr.bf16.gmra.mrb[4].mxu0 %v5909_v19  ;;  %1061 = vmatmul.mubr.bf16.gmra.mrb[4].mxu1 %v5910_v20 }
 0x229   : > { %v1038_v22 = vpop.f32.mrb[0].mxu0  ;;  %v1054_v24 = vpop.f32.mrb[0].mxu1 }
 0x22a   : > { %v1039_v25 = vadd.f32 %v5148_v21, %v1038_v22  ;;  %v1055_v26 = vadd.f32 %v5148_v21, %v1054_v24  ;;  %v1040_v27 = vpop.f32.mrb[1].mxu0  ;;  %v1056_v28 = vpop.f32.mrb[1].mxu1 }
 0x22b   : > { %v1041_v29 = vpop.f32.mrb[2].mxu0  ;;  %v1057_v31 = vpop.f32.mrb[2].mxu1 }
 0x22c   : > { %v1071_v32 = vadd.f32 %v1069_v23, %v1039_v25  ;;  %v1075_v33 = vadd.f32 %v1069_v23, %v1055_v26  ;;  %v1042_v34 = vadd.f32 %v5148_v21, %v1041_v29  ;;  %v1058_v35 = vadd.f32 %v5148_v21, %v1057_v31  ;;  %v1043_v36 = vpop.f32.mrb[3].mxu0  ;;  %v1059_v37 = vpop.f32.mrb[3].mxu1 }
 0x22e   : > { %1079 = vst [vmem:[#allocation14] sm:$0xff] %v1071_v32  ;;  %1083 = vst [vmem:[#allocation14 + $0x20] sm:$0xff] %v1075_v33  ;;  %v1072_v38 = vadd.f32 %v1070_v30, %v1042_v34  ;;  %v1076_v39 = vadd.f32 %v1070_v30, %v1058_v35 }
 0x230   : > { %1080 = vst [vmem:[#allocation14 + $0x8] sm:$0xff] %v1072_v38  ;;  %1084 = vst [vmem:[#allocation14 + $0x28] sm:$0xff] %v1076_v39 }
 0x231   : > { %v1046_v40 = vpop.f32.mrb[4].mxu0  ;;  %v1062_v41 = vpop.f32.mrb[4].mxu1 }
 0x232   : > { %v1047_v42 = vadd.f32 %v5148_v21, %v1046_v40  ;;  %v1063_v43 = vadd.f32 %v5148_v21, %v1062_v41  ;;  %v1048_v44 = vpop.f32.mrb[5].mxu0  ;;  %v1064_v45 = vpop.f32.mrb[5].mxu1 }
 0x233   : > { %v1049_v46 = vpop.f32.mrb[6].mxu0  ;;  %v1065_v47 = vpop.f32.mrb[6].mxu1 }
 0x234   : > { %v1073_v48 = vadd.f32 %v1069_v23, %v1047_v42  ;;  %v1077_v49 = vadd.f32 %v1069_v23, %v1063_v43  ;;  %v1050_v50 = vadd.f32 %v5148_v21, %v1049_v46  ;;  %v1066_v51 = vadd.f32 %v5148_v21, %v1065_v47  ;;  %v1051_v52 = vpop.f32.mrb[7].mxu0  ;;  %v1067_v53 = vpop.f32.mrb[7].mxu1 }
 0x236   : > { %1081 = vst [vmem:[#allocation14 + $0x10] sm:$0xff] %v1073_v48  ;;  %1085 = vst [vmem:[#allocation14 + $0x30] sm:$0xff] %v1077_v49  ;;  %v1074_v54 = vadd.f32 %v1070_v30, %v1050_v50  ;;  %v1078_v55 = vadd.f32 %v1070_v30, %v1066_v51 }
 0x238   : > { %1082 = vst [vmem:[#allocation14 + $0x18] sm:$0xff] %v1074_v54  ;;  %1086 = vst [vmem:[#allocation14 + $0x38] sm:$0xff] %v1078_v55 }
 0x239 PF: > { %v1087_v56 = vld [vmem:[#allocation14] sm:$0xff]  ;;  %v1088_v58 = vld [vmem:[#allocation14 + $0x8] sm:$0xff]  ;;  %v5921_v39 = vld [vmem:[%s6989_s5 + $0x30] ss:$12 sps:$4 sm:$0xff]   ;;  %v6564_v55 = vmov 0   ;;  %s8217_s24 = sld [smem:[#allocation28_spill]] }
 0x23a   : > { %1097 = vadd.xlane.f32.xlu0 %v1087_v56  ;;  %v1091_v60 = vld [vmem:[#allocation14 + $0x20] sm:$0xff]  ;;  %v1092_v61 = vld [vmem:[#allocation14 + $0x28] sm:$0xff]  ;;  %v5928_v44 = vld [vmem:[%s6989_s5 + $0x50] ss:$12 sps:$4 sm:$0xff]   ;;  %1427 = vmatprep.mubr.bf16.mxu0 %v6564_v55  ;;  %s8219_s0 = sld [smem:[#allocation29_spill]]  ;;  %vm6566_vm1 = vmmov 0  }
 0x23b   : > { %v5911_v0 = vld [vmem:[%s6989_s5 + $0x4] ss:$12 sps:$4 sm:$0xff]   ;;  %v5913_v1 = vld [vmem:[%s6989_s5] ss:$12 sps:$4 sm:$0xff]   ;;  %v5914_v2 = vld [vmem:[%s6989_s5 + $0x1c] ss:$12 sps:$4 sm:$0xff]  }
 0x23c   : > { %v5916_v3 = vld [vmem:[%s6989_s5 + $0x8] ss:$12 sps:$4 sm:$0xff]   ;;  %1395 = vmatprep.subr.bf16.mxu0 %v5911_v0  ;;  %v5917_v36 = vld [vmem:[%s6989_s5 + $0x18] ss:$12 sps:$4 sm:$0xff]   ;;  %v5920_v38 = vld [vmem:[%s6989_s5 + $0x20] ss:$12 sps:$4 sm:$0xff]  }
 0x23d   : > { %v1089_v57 = vld [vmem:[#allocation14 + $0x10] sm:$0xff]  ;;  %1396 = vmatpush1.bf16.msra.mxu0 %v5913_v1  ;;  %5438 = vmatprep.subr.bf16.mxu1 %v5916_v3  ;;  %v5922_v40 = vld [vmem:[%s6989_s5 + $0x4c] ss:$12 sps:$4 sm:$0xff]   ;;  %v5930_v46 = vld [vmem:[%s6989_s5 + $0x7c] ss:$12 sps:$4 sm:$0xff]   ;;  %vm1561_vm2 = vcmask 261120  }
 0x23e   : > { %1101 = vadd.xlane.f32.xlu1 %v1089_v57  ;;  %1099 = vadd.xlane.f32.xlu0 %v1088_v58  ;;  %v1093_v62 = vld [vmem:[#allocation14 + $0x30] sm:$0xff]  ;;  %v5924_v41 = vld [vmem:[%s6989_s5 + $0x38] ss:$12 sps:$4 sm:$0xff]   ;;  %v5929_v45 = vld [vmem:[%s6989_s5 + $0x60] ss:$12 sps:$4 sm:$0xff]   ;;  %vm1758_vm3 = vcmask 130048  }
 0x23f   : > { %v1090_v59 = vld [vmem:[#allocation14 + $0x18] sm:$0xff]  ;;  %1397 = vmatprep.subr.bf16.mxu0 %v5914_v2  ;;  %5439 = vmatpush3.bf16.msra.mxu1 %v5916_v3  ;;  %v5918_v37 = vld [vmem:[%s6989_s5 + $0x34] ss:$12 sps:$4 sm:$0xff]   ;;  %v5926_v43 = vld [vmem:[%s6989_s5 + $0x64] ss:$12 sps:$4 sm:$0xff]   ;;  %s6568_s18 = smov 64  }
 0x240   : > { %v1094_v63 = vld [vmem:[#allocation14 + $0x38] sm:$0xff]  ;;  %5440 = vmatprep.subr.bf16.mxu1 %v5920_v38  ;;  %v5925_v42 = vld [vmem:[%s6989_s5 + $0x48] ss:$12 sps:$4 sm:$0xff]   ;;  %v5936_v50 = vld [vmem:[%s6989_s5 + $0x80] ss:$12 sps:$4 sm:$0xff]   ;;  %s8220_s19 = scalar_lea.vmem %s8219_s0, %s6997_s17  ;;  %s6569_s21 = smov 32  }
 0x241   : > { %1398 = vmatpush1.bf16.msra.mxu0 %v5917_v36  ;;  %v5932_v47 = vld [vmem:[%s6989_s5 + $0x68] ss:$12 sps:$4 sm:$0xff]   ;;  %v5933_v48 = vld [vmem:[%s6989_s5 + $0x78] ss:$12 sps:$4 sm:$0xff]   ;;  %v5937_v51 = vld [vmem:[%s6989_s5 + $0x90] ss:$12 sps:$4 sm:$0xff]  }
 0x242   : > { %1103 = vadd.xlane.f32.xlu1 %v1090_v59  ;;  %1105 = vadd.xlane.f32.xlu0 %v1091_v60  ;;  %v5934_v49 = vld [vmem:[%s6989_s5 + $0x94] ss:$12 sps:$4 sm:$0xff]   ;;  %v5938_v52 = vld [vmem:[%s6989_s5 + $0xac] ss:$12 sps:$4 sm:$0xff]   ;;  %p5817_p8 = scmp.eq.s32.totalorder %s6687_s27, 1 }
 0x243   : > { %1399 = vmatprep.subr.bf16.mxu0 %v5918_v37  ;;  %5441 = vmatpush3.bf16.msra.mxu1 %v5920_v38  ;;  %v5940_v53 = vld [vmem:[%s6989_s5 + $0x98] ss:$12 sps:$4 sm:$0xff]   ;;  %v5941_v54 = vld [vmem:[%s6989_s5 + $0xa8] ss:$12 sps:$4 sm:$0xff]  }
 0x244   : > { %5442 = vmatprep.subr.bf16.mxu1 %v5924_v41 }
 0x245   : > { %1400 = vmatpush1.bf16.msra.mxu0 %v5921_v39 }
 0x246   : > { %1107 = vadd.xlane.f32.xlu1 %v1092_v61  ;;  %1109 = vadd.xlane.f32.xlu0 %v1093_v62 }
 0x247   : > { %1401 = vmatprep.subr.bf16.mxu0 %v5922_v40  ;;  %5443 = vmatpush3.bf16.msra.mxu1 %v5924_v41 }
 0x248   : > { %5444 = vmatprep.subr.bf16.mxu1 %v5928_v44 }
 0x249   : > { %1402 = vmatpush1.bf16.msra.mxu0 %v5925_v42 }
 0x24a   : > { %1111 = vadd.xlane.f32.xlu1 %v1094_v63  ;;  %1403 = vmatprep.subr.bf16.mxu0 %v5926_v43 }
 0x24b   : > { %5445 = vmatpush3.bf16.msra.mxu1 %v5928_v44 }
 0x24c   : > { %5446 = vmatprep.subr.bf16.mxu1 %v5932_v47 }
 0x24d   : > { %1404 = vmatpush1.bf16.msra.mxu0 %v5929_v45 }
 0x24e   : > { %1405 = vmatprep.subr.bf16.mxu0 %v5930_v46 }
 0x24f   : > { %5447 = vmatpush3.bf16.msra.mxu1 %v5932_v47 }
 0x250   : > { %5448 = vmatprep.subr.bf16.mxu1 %v5936_v50 }
 0x251   : > { %1406 = vmatpush1.bf16.msra.mxu0 %v5933_v48 }
 0x252   : > { %1407 = vmatprep.subr.bf16.mxu0 %v5934_v49 }
 0x253   : > { %5449 = vmatpush3.bf16.msra.mxu1 %v5936_v50 }
 0x254   : > { %5450 = vmatprep.subr.bf16.mxu1 %v5940_v53 }
 0x255   : > { %1408 = vmatpush1.bf16.msra.mxu0 %v5937_v51 }
 0x256   : > { %1409 = vmatprep.subr.bf16.mxu0 %v5938_v52 }
 0x257   : > { %5451 = vmatpush3.bf16.msra.mxu1 %v5940_v53 }
 0x259   : > { %1410 = vmatpush1.bf16.msra.mxu0 %v5941_v54 }
 0x2c7   : > { %v1098_v4 = vpop.xlane.xlu0 %1097 }
 0x2c8   : > { %v1114_v6 = vmul.f32 0.0078125, %v1098_v4 }
 0x2ca   : > { %v7050_v8 = vsub.f32 %v1087_v56, %v1114_v6  ;;  %v5942_v56 = vld [vmem:[%s6989_s5 + $0xb0] ss:$12 sps:$4 sm:$0xff]   ;;  %s8218_s5 = scalar_lea.vmem %s8217_s24, %s6997_s17  ;;  %s6570_s17 = smov [#allocation14]  }
 0x2cb   : > { %v1102_v5 = vpop.xlane.xlu1 %1101  ;;  %v1100_v10 = vpop.xlane.xlu0 %1099  ;;  %5452 = vmatprep.subr.bf16.mxu1 %v5942_v56 }
 0x2cc   : > { %v1116_v7 = vmul.f32 0.0078125, %v1102_v5  ;;  %v1115_v12 = vmul.f32 0.0078125, %v1100_v10  ;;  %v1130_v13 = vmul.f32 %v7050_v8, %v7050_v8  ;;  %5453 = vmatpush3.bf16.msra.mxu1 %v5942_v56 }
 0x2ce   : > { %v7052_v9 = vsub.f32 %v1089_v57, %v1116_v7  ;;  %1138 = vadd.xlane.f32.xlu0 %v1130_v13  ;;  %v7058_v16 = vsub.f32 %v1088_v58, %v1115_v12 }
 0x2cf   : > { %v1104_v11 = vpop.xlane.xlu1 %1103  ;;  %v1106_v18 = vpop.xlane.xlu0 %1105 }
 0x2d0   : > { %v1117_v14 = vmul.f32 0.0078125, %v1104_v11  ;;  %v1132_v15 = vmul.f32 %v7052_v9, %v7052_v9  ;;  %v1118_v20 = vmul.f32 0.0078125, %v1106_v18  ;;  %v1131_v21 = vmul.f32 %v7058_v16, %v7058_v16 }
 0x2d2   : > { %v7060_v17 = vsub.f32 %v1090_v59, %v1117_v14  ;;  %1142 = vadd.xlane.f32.xlu0 %v1132_v15  ;;  %1140 = vadd.xlane.f32.xlu1 %v1131_v21  ;;  %v7066_v24 = vsub.f32 %v1091_v60, %v1118_v20 }
 0x2d3   : > { %v1108_v19 = vpop.xlane.xlu1 %1107  ;;  %v1110_v26 = vpop.xlane.xlu0 %1109 }
 0x2d4   : > { %v1119_v22 = vmul.f32 0.0078125, %v1108_v19  ;;  %v1133_v23 = vmul.f32 %v7060_v17, %v7060_v17  ;;  %v1120_v28 = vmul.f32 0.0078125, %v1110_v26  ;;  %v1134_v29 = vmul.f32 %v7066_v24, %v7066_v24 }
 0x2d6   : > { %v7068_v25 = vsub.f32 %v1092_v61, %v1119_v22  ;;  %1144 = vadd.xlane.f32.xlu1 %v1133_v23  ;;  %1146 = vadd.xlane.f32.xlu0 %v1134_v29  ;;  %v7074_v32 = vsub.f32 %v1093_v62, %v1120_v28  ;;  %v5173_v22 = vld [vmem:[%s8218_s5] ss:$0 sm:$0xff] }
 0x2d7   : > { %v1112_v27 = vpop.xlane.xlu1 %1111 }
 0x2d8   : > { %v1121_v30 = vmul.f32 0.0078125, %v1112_v27  ;;  %v1135_v31 = vmul.f32 %v7068_v25, %v7068_v25  ;;  %v1136_v34 = vmul.f32 %v7074_v32, %v7074_v32 }
 0x2da   : > { %v7076_v33 = vsub.f32 %v1094_v63, %v1121_v30  ;;  %1148 = vadd.xlane.f32.xlu1 %v1135_v31  ;;  %1150 = vadd.xlane.f32.xlu0 %v1136_v34 }
 0x2dc   : > { %v1137_v35 = vmul.f32 %v7076_v33, %v7076_v33 }
 0x2de   : > { %1152 = vadd.xlane.f32.xlu1 %v1137_v35 }
 0x35b   : > { %v1139_v57 = vpop.xlane.xlu0 %1138 }
 0x35c   : > { %v1154_v58 = vmul.f32 0.0078125, %v1139_v57 }
 0x35e   : > { %v1162_v59 = vadd.f32 1e-05, %v1154_v58 }
 0x35f   : > { %v1141_v60 = vpop.xlane.xlu1 %1140  ;;  %v1143_v61 = vpop.xlane.xlu0 %1142 }
 0x360   : > { %5991 = vrsqrt.f32 %v1162_v59  ;;  %v1155_v62 = vmul.f32 0.0078125, %v1141_v60  ;;  %v1156_v63 = vmul.f32 0.0078125, %v1143_v61  ;;  %v1250_v60 = vld [vmem:[%s7023_s28] sm:$0x7]  ;;  %s6567_s28 = smov 96  }
 0x362   : > { %v1163_v0 = vadd.f32 1e-05, %v1155_v62  ;;  %v1164_v1 = vadd.f32 1e-05, %v1156_v63 }
 0x363   : > { %v1145_v2 = vpop.xlane.xlu1 %1144  ;;  %v1147_v3 = vpop.xlane.xlu0 %1146 }
 0x364   : > { %5993 = vrsqrt.f32 %v1163_v0  ;;  %v1157_v4 = vmul.f32 0.0078125, %v1145_v2  ;;  %v1158_v5 = vmul.f32 0.0078125, %v1147_v3 }
 0x365   : > { %5995 = vrsqrt.f32 %v1164_v1 }
 0x366   : > { %v1165_v6 = vadd.f32 1e-05, %v1157_v4  ;;  %v1166_v7 = vadd.f32 1e-05, %v1158_v5 }
 0x367   : > { %v1149_v10 = vpop.xlane.xlu1 %1148  ;;  %v1151_v11 = vpop.xlane.xlu0 %1150 }
 0x368   : > { %5997 = vrsqrt.f32 %v1165_v6  ;;  %v1159_v12 = vmul.f32 0.0078125, %v1149_v10  ;;  %v1160_v13 = vmul.f32 0.0078125, %v1151_v11 }
 0x369   : > { %5999 = vrsqrt.f32 %v1166_v7 }
 0x36a   : > { %v5992_v14 = vpop.eup %5991  ;;  %v1167_v15 = vadd.f32 1e-05, %v1159_v12  ;;  %v1168_v18 = vadd.f32 1e-05, %v1160_v13 }
 0x36b   : > { %v1153_v19 = vpop.xlane.xlu1 %1152  ;;  %v1178_v20 = vmul.f32 %v5992_v14, %v7050_v8  ;;  %v5174_v8 = vld [vmem:[%s8220_s19] ss:$0 sm:$0xff] }
 0x36c   : > { %6001 = vrsqrt.f32 %v1167_v15  ;;  %v1161_v21 = vmul.f32 0.0078125, %v1153_v19 }
 0x36d   : > { %6003 = vrsqrt.f32 %v1168_v18  ;;  %v1192_v29 = vmul.f32 %v5173_v22, %v1178_v20 }
 0x36e   : > { %v5994_v23 = vpop.eup %5993  ;;  %v1169_v26 = vadd.f32 1e-05, %v1161_v21 }
 0x36f   : > { %v5996_v27 = vpop.eup %5995  ;;  %v1179_v28 = vmul.f32 %v5994_v23, %v7058_v16  ;;  %v1206_v37 = vadd.f32 %v5174_v8, %v1192_v29 }
 0x370   : > { %6005 = vrsqrt.f32 %v1169_v26  ;;  %v1180_v30 = vmul.f32 %v5996_v27, %v7052_v9 }
 0x371   : > { %v1193_v31 = vmul.f32 %v5173_v22, %v1179_v28 }
 0x372   : > { %v5998_v34 = vpop.eup %5997  ;;  %v1194_v35 = vmul.f32 %v5173_v22, %v1180_v30 }
 0x373   : > { %v6000_v36 = vpop.eup %5999  ;;  %v1207_v38 = vadd.f32 %v5174_v8, %v1193_v31  ;;  %v1181_v39 = vmul.f32 %v5998_v34, %v7060_v17 }
 0x374   : > { %v1182_v40 = vmul.f32 %v6000_v36, %v7066_v24  ;;  %v1208_v43 = vadd.f32 %v5174_v8, %v1194_v35 }
 0x375   : > { %v1214_v16 = vpack.c.bf16 %v1207_v38, %v1206_v37  ;;  %v1195_v41 = vmul.f32 %v5173_v22, %v1181_v39 }
 0x376   : > { %v6002_v42 = vpop.eup %6001  ;;  %v1196_v46 = vmul.f32 %v5173_v22, %v1182_v40 }
 0x377   : > { %v6004_v44 = vpop.eup %6003  ;;  %1428 = vmatmul.mubr.bf16.vlgmr.msra.gmra.mrb[0].mxu0 %v1214_v16  ;;  %5454 = vmatprep.mubr.bf16.mxu1 %v1214_v16  ;;  %v1209_v45 = vadd.f32 %v5174_v8, %v1195_v41  ;;  %v1183_v9 = vmul.f32 %v6002_v42, %v7068_v25 }
 0x378   : > { %1437 = vmatprep.mubr.bf16.mxu0 %v6564_v55  ;;  %v1184_v47 = vmul.f32 %v6004_v44, %v7074_v32  ;;  %v1210_v24 = vadd.f32 %v5174_v8, %v1196_v46  ;;  %v6565_v32 = vmov 0.0  }
 0x379   : > { %v1215_v48 = vpack.c.bf16 %v1209_v45, %v1208_v43  ;;  %v1197_v49 = vmul.f32 %v5173_v22, %v1183_v9  ;;  %5462 = vmatprep.subr.bf16.mxu1 %v6565_v32  ;;  %5474 = vmatprep.subr.bf16.mxu0 %v6565_v32 }
 0x37a   : > { %v6006_v17 = vpop.eup %6005  ;;  %v1198_v52 = vmul.f32 %v5173_v22, %v1184_v47 }
 0x37b   : > { %5455 = vmatmul.mubr.bf16.vlgmr.msra.gmra.mrb[0].mxu1 %v1215_v48  ;;  %v1211_v50 = vadd.f32 %v5174_v8, %v1197_v49  ;;  %v1185_v51 = vmul.f32 %v6006_v17, %v7076_v33  ;;  %v1252_v33 = vlaneseq }
 0x37c   : > { %v1212_v56 = vadd.f32 %v5174_v8, %v1198_v52 }
 0x37d   : > { %v1216_v53 = vpack.c.bf16 %v1211_v50, %v1210_v24  ;;  %v1199_v54 = vmul.f32 %v5173_v22, %v1185_v51  ;;  %v7130_v58 = vshrl.u32 %v1252_v33, 7 }
 0x37f   : > { %1438 = vmatmul.mubr.bf16.gmra.mrb[4].mxu0 %v1215_v48  ;;  %5458 = vmatprep.mubr.bf16.mxu1 %v1216_v53  ;;  %v1213_v25 = vadd.f32 %v5174_v8, %v1199_v54  ;;  %v1254_v59 = vsub.s32 0, %v7130_v58  ;;  %v1258_v61 = vsub.s32 1, %v7130_v58  ;;  %v1262_v63 = vsub.s32 2, %v7130_v58 }
 0x380   : > { %1447 = vmatprep.mubr.bf16.mxu0 %v6564_v55 }
 0x381   : > { %v1217_v57 = vpack.c.bf16 %v1213_v25, %v1212_v56  ;;  %v7137_v62 = vrot.slane %v1250_v60, %v1254_v59  ;;  %v7142_v1 = vrot.slane %v1250_v60, %v1258_v61  ;;  %v1263_v7 = vrot.slane %v1250_v60, %v1262_v63 }
 0x383   : > { %5459 = vmatmul.mubr.bf16.gmra.mrb[4].mxu1 %v1217_v57 }
 0x384   : > { %5464 = vmatprep.mubr.msk.bf16.mxu1 %vm6566_vm1, %v6565_v32 }
 0x387   : > { %1448 = vmatmul.mubr.bf16.gmra.mrb[8].mxu0 %v1216_v53 }
 0x388   : > { %1457 = vmatprep.mubr.bf16.mxu0 %v6564_v55 }
 0x38f   : > { %1458 = vmatmul.mubr.bf16.gmra.mrb[12].mxu0 %v1217_v57 }
 0x390   : > { %5476 = vmatprep.mubr.msk.bf16.mxu0 %vm6566_vm1, %v6565_v32 }
 0x44a   : > { %v1429_v0 = vpop.f32.mrb[0].mxu0 }
 0x44b   : > { %v1431_v2 = vpop.f32.mrb[1].mxu0  ;;  %v1430_v4 = vadd.f32 %v1429_v0, %v7137_v62 }
 0x44c   : > { %v1433_v3 = vpop.f32.mrb[2].mxu0  ;;  %v1432_v10 = vadd.f32 %v1431_v2, %v7142_v1 }
 0x44d   : > { %v1434_v5 = vadd.f32 %v1433_v3, %v7137_v62  ;;  %v1435_v6 = vpop.f32.mrb[3].mxu0 }
 0x44e   : > { %v1436_v11 = vadd.f32 %v1435_v6, %v7142_v1  ;;  %v5456_v12 = vpop.f32.mrb[0].mxu1 }
 0x44f   : > { %v7148_v13 = vpack.c.bf16 %v1434_v5, %v1430_v4  ;;  %v1502_v14 = vpop.f32.mrb[1].mxu1  ;;  %v1511_v19 = vadd.f32 %v5456_v12, %v1263_v7 }
 0x450   : > { %v7150_v15 = vpack.c.bf16 %v1436_v11, %v1432_v10  ;;  %v5457_v18 = vpop.f32.mrb[2].mxu1  ;;  %v1503_v22 = vadd.f32 %v1502_v14, %v1263_v7 }
 0x451   : > { %v1514_v20 = vadd.f32 %v5457_v18, %v1263_v7  ;;  %v1505_v21 = vpop.f32.mrb[3].mxu1 }
 0x452   : > { %v1506_v23 = vadd.f32 %v1505_v21, %v1263_v7  ;;  %v1439_v26 = vpop.f32.mrb[4].mxu0  ;;  %v1566_v27 = vsel %vm1561_vm2, %v7150_v15, 0 }
 0x453   : > { %v7154_v28 = vpack.c.bf16 %v1514_v20, %v1511_v19  ;;  %v1441_v29 = vpop.f32.mrb[5].mxu0  ;;  %5463 = vmatpush3.bf16.xpose.msra.mxu1 %v1566_v27  ;;  %v1440_v31 = vadd.f32 %v1439_v26, %v7137_v62 }
 0x454   : > { %v7156_v8 = vpack.c.bf16 %v1506_v23, %v1503_v22  ;;  %v1443_v30 = vpop.f32.mrb[6].mxu0  ;;  %5468 = vmatprep.subr.bf16.mxu1 %v6565_v32  ;;  %v1442_v36 = vadd.f32 %v1441_v29, %v7142_v1 }
 0x455   : > { %v1444_v34 = vadd.f32 %v1443_v30, %v7137_v62  ;;  %v1445_v35 = vpop.f32.mrb[7].mxu0 }
 0x456   : > { %v1446_v37 = vadd.f32 %v1445_v35, %v7142_v1  ;;  %v5460_v38 = vpop.f32.mrb[4].mxu1 }
 0x457   : > { %v7163_v39 = vpack.c.bf16 %v1444_v34, %v1440_v31  ;;  %v1527_v40 = vadd.f32 %v5460_v38, %v1263_v7  ;;  %v1518_v16 = vpop.f32.mrb[5].mxu1 }
 0x458   : > { %v7165_v41 = vpack.c.bf16 %v1446_v37, %v1442_v36  ;;  %v1519_v42 = vadd.f32 %v1518_v16, %v1263_v7  ;;  %v5461_v43 = vpop.f32.mrb[6].mxu1 }
 0x459   : > { %v1530_v44 = vadd.f32 %v5461_v43, %v1263_v7  ;;  %v1521_v45 = vpop.f32.mrb[7].mxu1 }
 0x45a   : > { %v1522_v9 = vadd.f32 %v1521_v45, %v1263_v7  ;;  %v1449_v46 = vpop.f32.mrb[8].mxu0  ;;  %5465 = vmatmul.mubr.msk.bf16.vlgmr.msra.gmra.mrb[8].mxu1 %vm1561_vm2, %v7148_v13  ;;  %v1613_v47 = vsel %vm1561_vm2, %v7165_v41, 0 }
 0x45b   : > { %v7171_v48 = vpack.c.bf16 %v1530_v44, %v1527_v40  ;;  %v1451_v49 = vpop.f32.mrb[9].mxu0  ;;  %5469 = vmatpush3.bf16.xpose.msra.mxu1 %v1613_v47  ;;  %5470 = vmatprep.mubr.msk.bf16.mxu1 %vm6566_vm1, %v6565_v32  ;;  %v1450_v50 = vadd.f32 %v1449_v46, %v7137_v62 }
 0x45c   : > { %v7175_v17 = vpack.c.bf16 %v1522_v9, %v1519_v42  ;;  %v1453_v24 = vpop.f32.mrb[10].mxu0  ;;  %5480 = vmatprep.subr.bf16.mxu1 %v6565_v32  ;;  %v1452_v53 = vadd.f32 %v1451_v49, %v7142_v1 }
 0x45d   : > { %v1454_v51 = vadd.f32 %v1453_v24, %v7137_v62  ;;  %v1455_v52 = vpop.f32.mrb[11].mxu0 }
 0x45e   : > { %v1456_v54 = vadd.f32 %v1455_v52, %v7142_v1 }
 0x45f   : > { %v7182_v56 = vpack.c.bf16 %v1454_v51, %v1450_v50 }
 0x460   : > { %v7184_v25 = vpack.c.bf16 %v1456_v54, %v1452_v53 }
 0x462   : > { %v1459_v57 = vpop.f32.mrb[12].mxu0  ;;  %5471 = vmatmul.mubr.msk.bf16.vlgmr.msra.gmra.mrb[12].mxu1 %vm1561_vm2, %v7163_v39  ;;  %v1660_v33 = vsel %vm1561_vm2, %v7184_v25, 0 }
 0x463   : > { %v1461_v60 = vpop.f32.mrb[13].mxu0  ;;  %5475 = vmatpush3.bf16.xpose.msra.mxu0 %v1660_v33  ;;  %5482 = vmatprep.mubr.msk.bf16.mxu1 %vm6566_vm1, %v6565_v32  ;;  %v1460_v0 = vadd.f32 %v1459_v57, %v7137_v62 }
 0x464   : > { %v1463_v63 = vpop.f32.mrb[14].mxu0  ;;  %5486 = vmatprep.subr.bf16.mxu0 %v6565_v32  ;;  %v1462_v4 = vadd.f32 %v1461_v60, %v7142_v1 }
 0x465   : > { %v1464_v2 = vadd.f32 %v1463_v63, %v7137_v62  ;;  %v1465_v3 = vpop.f32.mrb[15].mxu0 }
 0x466   : > { %v1466_v5 = vadd.f32 %v1465_v3, %v7142_v1 }
 0x467   : > { %v7197_v6 = vpack.c.bf16 %v1464_v2, %v1460_v0 }
 0x468   : > { %v7199_v7 = vpack.c.bf16 %v1466_v5, %v1462_v4 }
 0x46a   : > { %5477 = vmatmul.mubr.msk.bf16.vlgmr.msra.gmra.mrb[16].mxu0 %vm1561_vm2, %v7182_v56  ;;  %v1707_v10 = vsel %vm1561_vm2, %v7199_v7, 0 }
 0x46b   : > { %5481 = vmatpush3.bf16.xpose.msra.mxu1 %v1707_v10  ;;  %5487 = vmatpush3.bf16.msra.mxu0 %v7156_v8 }
 0x46c   : > { %5492 = vmatprep.subr.bf16.mxu1 %v6565_v32  ;;  %5488 = vmatprep.mubr.msk.bf16.mxu0 %vm6566_vm1, %v6565_v32 }
 0x46d   : > { %5498 = vmatprep.subr.bf16.mxu0 %v6565_v32 }
 0x472   : > { %5483 = vmatmul.mubr.msk.bf16.vlgmr.msra.gmra.mrb[16].mxu1 %vm1561_vm2, %v7197_v6 }
 0x473   : > { %5493 = vmatpush3.bf16.msra.mxu1 %v7154_v28  ;;  %5494 = vmatprep.mubr.msk.bf16.mxu1 %vm6566_vm1, %v6565_v32 }
 0x474   : > { %5504 = vmatprep.subr.bf16.mxu1 %v6565_v32 }
 0x52d   : > { %v1602_v62 = vpop.f32.mrb[8].mxu1 }
 0x52e   : > { %v5466_v1 = vpop.f32.mrb[9].mxu1  ;;  %v1750_v4 = vmul.f32 0.17677669, %v1602_v62 }
 0x52f   : > { %v7216_v11 = vpop.f32.mrb[10].mxu1 }
 0x530   : > { %v5467_v12 = vpop.f32.mrb[11].mxu1  ;;  %v1759_v10 = vsel %vm1758_vm3, %v1750_v4, -inf }
 0x535   : > { %v1649_v14 = vpop.f32.mrb[12].mxu1 }
 0x536   : > { %v1752_v18 = vmul.f32 0.17677669, %v1649_v14  ;;  %v5472_v19 = vpop.f32.mrb[13].mxu1  ;;  %v1751_v14 = vmul.f32 0.17677669, %v7216_v11 }
 0x537   : > { %v1652_v20 = vpop.f32.mrb[14].mxu1 }
 0x538   : > { %v1753_v21 = vmul.f32 0.17677669, %v1652_v20  ;;  %v5473_v22 = vpop.f32.mrb[15].mxu1  ;;  %v1765_v23 = vsel %vm1758_vm3, %v1752_v18, -inf  ;;  %v1762_v19 = vsel %vm1758_vm3, %v1751_v14, -inf }
 0x539   : > { %1766 = vmax.xlane.f32.xlu0 %v1765_v23 }
 0x53a   : > { %v1768_v26 = vsel %vm1758_vm3, %v1753_v21, -inf }
 0x53b   : > { %1769 = vmax.xlane.f32.xlu1 %v1768_v26 }
 0x53d   : > { %v1696_v27 = vpop.f32.mrb[16].mxu0 }
 0x53e   : > { %v5478_v29 = vpop.f32.mrb[17].mxu0  ;;  %v1754_v5 = vmul.f32 0.17677669, %v1696_v27 }
 0x53f   : > { %v1699_v30 = vpop.f32.mrb[18].mxu0 }
 0x540   : > { %v5479_v31 = vpop.f32.mrb[19].mxu0  ;;  %v1755_v1 = vmul.f32 0.17677669, %v1699_v30  ;;  %v1771_v12 = vsel %vm1758_vm3, %v1754_v5, -inf }
 0x545   : > { %v1743_v34 = vpop.f32.mrb[16].mxu1 }
 0x546   : > { %v1756_v35 = vmul.f32 0.17677669, %v1743_v34  ;;  %v5484_v36 = vpop.f32.mrb[17].mxu1 }
 0x547   : > { %v1746_v37 = vpop.f32.mrb[18].mxu1 }
 0x548   : > { %v1757_v38 = vmul.f32 0.17677669, %v1746_v37  ;;  %v5485_v40 = vpop.f32.mrb[19].mxu1  ;;  %v1777_v16 = vsel %vm1758_vm3, %v1756_v35, -inf }
 0x549   : > { %1778 = vmax.xlane.f32.xlu0 %v1777_v16 }
 0x54a   : > { %v1780_v42 = vsel %vm1758_vm3, %v1757_v38, -inf }
 0x54b   : > { %1781 = vmax.xlane.f32.xlu1 %v1780_v42 }
 0x5c6   : > { %v1767_v43 = vpop.xlane.xlu0 %1766 }
 0x5c7   : > { %v1785_v44 = vsub.f32 %v1752_v18, %v1767_v43  ;;  %v1774_v18 = vsel %vm1758_vm3, %v1755_v1, -inf }
 0x5c8   : > { %v1770_v45 = vpop.xlane.xlu1 %1769 }
 0x5c9   : > { %v1795_v9 = vmul.f32 1.442695, %v1785_v44  ;;  %v1786_v46 = vsub.f32 %v1753_v21, %v1770_v45 }
 0x5cb   : > { %6007 = vpow2.f32 %v1795_v9  ;;  %v1797_v47 = vmul.f32 1.442695, %v1786_v46 }
 0x5cd   : > { %6009 = vpow2.f32 %v1797_v47 }
 0x5d5   : > { %v6008_v49 = vpop.eup %6007 }
 0x5d6   : > { %v1779_v24 = vpop.xlane.xlu0 %1778  ;;  %v1813_v50 = vsel %vm1758_vm3, %v6008_v49, 0.0 }
 0x5d7   : > { %v6010_v51 = vpop.eup %6009  ;;  %v1789_v52 = vsub.f32 %v1756_v35, %v1779_v24  ;;  %1814 = vadd.xlane.f32.xlu0 %v1813_v50 }
 0x5d8   : > { %v1782_v53 = vpop.xlane.xlu1 %1781  ;;  %v1816_v54 = vsel %vm1758_vm3, %v6010_v51, 0.0 }
 0x5d9   : > { %v1803_v57 = vmul.f32 1.442695, %v1789_v52  ;;  %v1790_v33 = vsub.f32 %v1757_v38, %v1782_v53  ;;  %1817 = vadd.xlane.f32.xlu1 %v1816_v54 }
 0x5db   : > { %6011 = vpow2.f32 %v1803_v57  ;;  %v1805_v60 = vmul.f32 1.442695, %v1790_v33 }
 0x5dd   : > { %6013 = vpow2.f32 %v1805_v60 }
 0x5e5   : > { %v6012_v63 = vpop.eup %6011 }
 0x5e6   : > { %v1825_v0 = vsel %vm1758_vm3, %v6012_v63, 0.0 }
 0x5e7   : > { %v6014_v2 = vpop.eup %6013  ;;  %1826 = vadd.xlane.f32.xlu0 %v1825_v0 }
 0x5e8   : > { %v1828_v3 = vsel %vm1758_vm3, %v6014_v2, 0.0 }
 0x5e9   : > { %1829 = vadd.xlane.f32.xlu1 %v1828_v3 }
 0x5fa   : > { %2085 = vrot.lane.b32.xlu1 %v7163_v39, %s6567_s28 }
 0x5fd   : > { %2088 = vrot.lane.b32.xlu0 %v7165_v41, %s6567_s28 }
 0x5fe   : > { %2194 = vrot.lane.b32.xlu1 %v7199_v7, %s6567_s28 }
 0x602   : > { %2191 = vrot.lane.b32.xlu1 %v7197_v6, %s6567_s28 }
 0x61c   : > { %1760 = vmax.xlane.f32.xlu0 %v1759_v10 }
 0x620   : > { %1772 = vmax.xlane.f32.xlu0 %v1771_v12 }
 0x624   : > { %1775 = vmax.xlane.f32.xlu0 %v1774_v18 }
 0x626   : > { %1763 = vmax.xlane.f32.xlu1 %v1762_v19 }
 0x664   : > { %v1815_v20 = vpop.xlane.xlu0 %1814 }
 0x665   : > { %6015 = vrcp.f32 %v1815_v20 }
 0x666   : > { %v1818_v21 = vpop.xlane.xlu1 %1817 }
 0x667   : > { %6017 = vrcp.f32 %v1818_v21 }
 0x66f   : > { %v6016_v62 = vpop.eup %6015 }
 0x670   : > { %v1841_v23 = vmul.f32 %v6016_v62, %v6008_v49 }
 0x671   : > { %v6018_v22 = vpop.eup %6017 }
 0x672   : > { %v1842_v26 = vmul.f32 %v6018_v22, %v6010_v51 }
 0x674   : > { %v1827_v27 = vpop.xlane.xlu0 %1826  ;;  %v1848_v29 = vpack.c.bf16 %v1842_v26, %v1841_v23 }
 0x675   : > { %6019 = vrcp.f32 %v1827_v27 }
 0x676   : > { %5495 = vmatmul.mubr.msk.bf16.vlgmr.msra.gmra.mrb[20].mxu1 %vm1758_vm3, %v1848_v29  ;;  %v1830_v11 = vpop.xlane.xlu1 %1829 }
 0x677   : > { %5505 = vmatpush3.bf16.msra.mxu1 %v7171_v48  ;;  %6021 = vrcp.f32 %v1830_v11  ;;  %5506 = vmatprep.mubr.msk.bf16.mxu1 %vm6566_vm1, %v6565_v32 }
 0x678   : > { %5516 = vmatprep.subr.bf16.mxu1 %v6565_v32  ;;  %v2089_v36 = vpop.permute.xlu0 %2088 }
 0x679   : > { %v2094_v40 = vsel %vm1561_vm2, %v2089_v36, 0 }
 0x67a   : > { %v2086_v38 = vpop.permute.xlu1 %2085 }
 0x67e   : > { %v2195_v16 = vpop.permute.xlu1 %2194 }
 0x67f   : > { %v6020_v30 = vpop.eup %6019  ;;  %v2200_v42 = vsel %vm1561_vm2, %v2195_v16, 0 }
 0x680   : > { %v1845_v34 = vmul.f32 %v6020_v30, %v6012_v63 }
 0x681   : > { %v6022_v31 = vpop.eup %6021 }
 0x682   : > { %v1846_v35 = vmul.f32 %v6022_v31, %v6014_v2  ;;  %v2192_v43 = vpop.permute.xlu1 %2191 }
 0x684   : > { %v1850_v37 = vpack.c.bf16 %v1846_v35, %v1845_v34 }
 0x686   : > { %5507 = vmatmul.mubr.msk.bf16.vlgmr.msra.gmra.mrb[24].mxu1 %vm1758_vm3, %v1850_v37 }
 0x687   : > { %5517 = vmatpush3.bf16.xpose.msra.mxu1 %v2094_v40  ;;  %5518 = vmatprep.mubr.msk.bf16.mxu1 %vm6566_vm1, %v6565_v32 }
 0x688   : > { %5528 = vmatprep.subr.bf16.mxu1 %v6565_v32 }
 0x68e   : > { %5519 = vmatmul.mubr.msk.bf16.vlgmr.msra.gmra.mrb[28].mxu1 %vm1561_vm2, %v2086_v38 }
 0x68f   : > { %5529 = vmatpush3.bf16.xpose.msra.mxu1 %v2200_v42  ;;  %5530 = vmatprep.mubr.msk.bf16.mxu1 %vm6566_vm1, %v6565_v32 }
 0x690   : > { %5540 = vmatprep.subr.bf16.mxu1 %v6565_v32 }
 0x696   : > { %5531 = vmatmul.mubr.msk.bf16.vlgmr.msra.gmra.mrb[32].mxu1 %vm1561_vm2, %v2192_v43 }
 0x697   : > { %5542 = vmatprep.mubr.msk.bf16.mxu1 %vm6566_vm1, %v6565_v32 }
 0x6a9   : > { %v1761_v44 = vpop.xlane.xlu0 %1760 }
 0x6aa   : > { %v1783_v45 = vsub.f32 %v1750_v4, %v1761_v44 }
 0x6ac   : > { %v1791_v9 = vmul.f32 1.442695, %v1783_v45 }
 0x6ad   : > { %v1773_v46 = vpop.xlane.xlu0 %1772 }
 0x6ae   : > { %6023 = vpow2.f32 %v1791_v9  ;;  %v1787_v47 = vsub.f32 %v1754_v5, %v1773_v46 }
 0x6b0   : > { %v1799_v49 = vmul.f32 1.442695, %v1787_v47 }
 0x6b1   : > { %v1776_v24 = vpop.xlane.xlu0 %1775 }
 0x6b2   : > { %6025 = vpow2.f32 %v1799_v49  ;;  %v1788_v50 = vsub.f32 %v1755_v1, %v1776_v24 }
 0x6b3   : > { %v1764_v51 = vpop.xlane.xlu1 %1763 }
 0x6b4   : > { %v1784_v52 = vsub.f32 %v1751_v14, %v1764_v51  ;;  %v1801_v53 = vmul.f32 1.442695, %v1788_v50 }
 0x6b6   : > { %v1793_v54 = vmul.f32 1.442695, %v1784_v52 }
 0x6b8   : > { %v6024_v57 = vpop.eup %6023  ;;  %6027 = vpow2.f32 %v1793_v54 }
 0x6b9   : > { %v1807_v33 = vsel %vm1758_vm3, %v6024_v57, 0.0  ;;  %6029 = vpow2.f32 %v1801_v53 }
 0x6ba   : > { %1808 = vadd.xlane.f32.xlu0 %v1807_v33 }
 0x6bc   : > { %v6026_v60 = vpop.eup %6025 }
 0x6bd   : > { %v1819_v63 = vsel %vm1758_vm3, %v6026_v60, 0.0 }
 0x6be   : > { %1820 = vadd.xlane.f32.xlu0 %v1819_v63 }
 0x6c2   : > { %v6028_v0 = vpop.eup %6027 }
 0x6c3   : > { %v1810_v2 = vsel %vm1758_vm3, %v6028_v0, 0.0  ;;  %v6030_v3 = vpop.eup %6029 }
 0x6c4   : > { %1811 = vadd.xlane.f32.xlu1 %v1810_v2  ;;  %v1822_v4 = vsel %vm1758_vm3, %v6030_v3, 0.0 }
 0x6c8   : > { %1823 = vadd.xlane.f32.xlu1 %v1822_v4 }
 0x6d4   : > { %2035 = vrot.lane.b32.xlu0 %v7150_v15, %s6567_s28 }
 0x6d9   : > { %2032 = vrot.lane.b32.xlu1 %v7148_v13, %s6567_s28 }
 0x6dd   : > { %2141 = vrot.lane.b32.xlu1 %v7184_v25, %s6567_s28 }
 0x6e1   : > { %2138 = vrot.lane.b32.xlu1 %v7182_v56, %s6567_s28 }
 0x747   : > { %v1809_v18 = vpop.xlane.xlu0 %1808 }
 0x748   : > { %6031 = vrcp.f32 %v1809_v18 }
 0x749   : > { %v7269_v5 = vpop.f32.mrb[20].mxu1 }
 0x74a   : > { %v5496_v10 = vpop.f32.mrb[21].mxu1 }
 0x74b   : > { %v7271_v1 = vpop.f32.mrb[22].mxu1  ;;  %v1821_v20 = vpop.xlane.xlu0 %1820 }
 0x74c   : > { %v2028_v12 = vpack.c.bf16 %v7271_v1, %v7269_v5  ;;  %v5497_v14 = vpop.f32.mrb[23].mxu1 }
 0x74f   : > { %v2036_v47 = vpop.permute.xlu0 %2035 }
 0x750   : > { %v2041_v51 = vsel %vm1561_vm2, %v2036_v47, 0 }
 0x751   : > { %v1812_v19 = vpop.xlane.xlu1 %1811 }
 0x752   : > { %6033 = vrcp.f32 %v1812_v19  ;;  %v6032_v22 = vpop.eup %6031 }
 0x753   : > { %v1839_v30 = vmul.f32 %v6032_v22, %v6024_v57 }
 0x755   : > { %v1824_v21 = vpop.xlane.xlu1 %1823 }
 0x756   : > { %6035 = vrcp.f32 %v1824_v21 }
 0x757   : > { %6037 = vrcp.f32 %v1821_v20 }
 0x759   : > { %v7275_v62 = vpop.f32.mrb[24].mxu1  ;;  %v2033_v24 = vpop.permute.xlu1 %2032 }
 0x75a   : > { %v5508_v23 = vpop.f32.mrb[25].mxu1 }
 0x75b   : > { %v7277_v26 = vpop.f32.mrb[26].mxu1 }
 0x75c   : > { %v6034_v27 = vpop.eup %6033  ;;  %v2030_v29 = vpack.c.bf16 %v7277_v26, %v7275_v62  ;;  %v5509_v11 = vpop.f32.mrb[27].mxu1 }
 0x75d   : > { %v1840_v31 = vmul.f32 %v6034_v27, %v6028_v0  ;;  %v2142_v63 = vpop.permute.xlu1 %2141 }
 0x75e   : > { %v2147_v2 = vsel %vm1561_vm2, %v2142_v63, 0 }
 0x75f   : > { %v1847_v34 = vpack.c.bf16 %v1840_v31, %v1839_v30 }
 0x760   : > { %v6036_v35 = vpop.eup %6035 }
 0x761   : > { %5489 = vmatmul.mubr.msk.bf16.vlgmr.msra.gmra.mrb[20].mxu0 %vm1758_vm3, %v1847_v34  ;;  %v2130_v36 = vpop.f32.mrb[28].mxu1  ;;  %v6038_v37 = vpop.eup %6037  ;;  %v1844_v16 = vmul.f32 %v6036_v35, %v6030_v3 }
 0x762   : > { %5499 = vmatpush3.bf16.msra.mxu0 %v7175_v17  ;;  %v2245_v38 = vmul.f32 0.17677669, %v2130_v36  ;;  %v5520_v40 = vpop.f32.mrb[29].mxu1  ;;  %5500 = vmatprep.mubr.msk.bf16.mxu0 %vm6566_vm1, %v6565_v32  ;;  %v1843_v9 = vmul.f32 %v6038_v37, %v6026_v60  ;;  %v2139_v3 = vpop.permute.xlu1 %2138 }
 0x763   : > { %v2133_v42 = vpop.f32.mrb[30].mxu1  ;;  %5510 = vmatprep.subr.bf16.mxu0 %v6565_v32 }
 0x764   : > { %v2246_v43 = vmul.f32 0.17677669, %v2133_v42  ;;  %v5521_v44 = vpop.f32.mrb[31].mxu1  ;;  %v2257_v45 = vsel %vm1758_vm3, %v2245_v38, -inf  ;;  %v1849_v49 = vpack.c.bf16 %v1844_v16, %v1843_v9 }
 0x765   : > { %2258 = vmax.xlane.f32.xlu0 %v2257_v45 }
 0x766   : > { %v2260_v46 = vsel %vm1758_vm3, %v2246_v43, -inf }
 0x767   : > { %2261 = vmax.xlane.f32.xlu1 %v2260_v46 }
 0x769   : > { %5501 = vmatmul.mubr.msk.bf16.vlgmr.msra.gmra.mrb[24].mxu0 %vm1758_vm3, %v1849_v49  ;;  %v2236_v50 = vpop.f32.mrb[32].mxu1 }
 0x76a   : > { %v2249_v52 = vmul.f32 0.17677669, %v2236_v50  ;;  %v5532_v53 = vpop.f32.mrb[33].mxu1  ;;  %5512 = vmatprep.mubr.msk.bf16.mxu0 %vm6566_vm1, %v6565_v32 }
 0x76b   : > { %5511 = vmatpush3.bf16.xpose.msra.mxu0 %v2041_v51  ;;  %v2239_v54 = vpop.f32.mrb[34].mxu1 }
 0x76c   : > { %v2250_v57 = vmul.f32 0.17677669, %v2239_v54  ;;  %v5533_v33 = vpop.f32.mrb[35].mxu1  ;;  %v2269_v60 = vsel %vm1758_vm3, %v2249_v52, -inf  ;;  %5522 = vmatprep.subr.bf16.mxu0 %v6565_v32 }
 0x76d   : > { %2270 = vmax.xlane.f32.xlu0 %v2269_v60 }
 0x76e   : > { %v2272_v0 = vsel %vm1758_vm3, %v2250_v57, -inf }
 0x771   : > { %2273 = vmax.xlane.f32.xlu0 %v2272_v0 }
 0x772   : > { %5513 = vmatmul.mubr.msk.bf16.vlgmr.msra.gmra.mrb[28].mxu0 %vm1561_vm2, %v2033_v24 }
 0x773   : > { %5523 = vmatpush3.bf16.xpose.msra.mxu0 %v2147_v2  ;;  %5524 = vmatprep.mubr.msk.bf16.mxu0 %vm6566_vm1, %v6565_v32 }
 0x774   : > { %5534 = vmatprep.subr.bf16.mxu0 %v6565_v32 }
 0x77a   : > { %5525 = vmatmul.mubr.msk.bf16.vlgmr.msra.gmra.mrb[32].mxu0 %vm1561_vm2, %v2139_v3 }
 0x77b   : > { %5536 = vmatprep.mubr.msk.bf16.mxu0 %vm6566_vm1, %v6565_v32 }
 0x7f2   : > { %v2259_v4 = vpop.xlane.xlu0 %2258 }
 0x7f3   : > { %v2277_v10 = vsub.f32 %v2245_v38, %v2259_v4 }
 0x7f4   : > { %v2262_v14 = vpop.xlane.xlu1 %2261 }
 0x7f5   : > { %v2287_v18 = vmul.f32 1.442695, %v2277_v10  ;;  %v2278_v19 = vsub.f32 %v2246_v43, %v2262_v14 }
 0x7f7   : > { %6039 = vpow2.f32 %v2287_v18  ;;  %v2289_v20 = vmul.f32 1.442695, %v2278_v19 }
 0x7f9   : > { %6041 = vpow2.f32 %v2289_v20 }
 0x7fa   : > { %v2271_v21 = vpop.xlane.xlu0 %2270 }
 0x7fb   : > { %v2281_v22 = vsub.f32 %v2249_v52, %v2271_v21 }
 0x7fd   : > { %v2295_v23 = vmul.f32 1.442695, %v2281_v22 }
 0x7fe   : > { %v2274_v36 = vpop.xlane.xlu0 %2273 }
 0x7ff   : > { %6043 = vpow2.f32 %v2295_v23  ;;  %v2282_v37 = vsub.f32 %v2250_v57, %v2274_v36 }
 0x801   : > { %v7303_v27 = vpop.eup %6039  ;;  %v2297_v38 = vmul.f32 1.442695, %v2282_v37 }
 0x802   : > { %v2305_v11 = vsel %vm1758_vm3, %v7303_v27, 0.0 }
 0x803   : > { %v7307_v30 = vpop.eup %6041  ;;  %2306 = vadd.xlane.f32.xlu0 %v2305_v11  ;;  %6045 = vpow2.f32 %v2297_v38 }
 0x804   : > { %v2308_v31 = vsel %vm1758_vm3, %v7307_v30, 0.0 }
 0x805   : > { %2309 = vadd.xlane.f32.xlu1 %v2308_v31 }
 0x809   : > { %v7311_v34 = vpop.eup %6043 }
 0x80a   : > { %v2317_v35 = vsel %vm1758_vm3, %v7311_v34, 0.0 }
 0x80b   : > { %2318 = vadd.xlane.f32.xlu0 %v2317_v35 }
 0x80d   : > { %v6046_v42 = vpop.eup %6045 }
 0x80e   : > { %v2320_v9 = vsel %vm1758_vm3, %v6046_v42, 0.0 }
 0x816   : > { %2488 = vrot.lane.b32.xlu1 %v7171_v48, %s6567_s28 }
 0x821   : > { %2392 = vrot.lane.b32.xlu0 %v7154_v28, %s6567_s28 }
 0x825   : > { %2770 = vrot.lane.b32.xlu0 %v7165_v41, %s6568_s18 }
 0x829   : > { %2821 = vrot.lane.b32.xlu0 %v7184_v25, %s6568_s18 }
 0x82d   : > { %2872 = vrot.lane.b32.xlu0 %v7199_v7, %s6568_s18 }
 0x834   : > { %v7325_v40 = vpop.f32.mrb[20].mxu0 }
 0x835   : > { %v5490_v16 = vpop.f32.mrb[21].mxu0 }
 0x836   : > { %v7327_v43 = vpop.f32.mrb[22].mxu0 }
 0x837   : > { %v2027_v44 = vpack.c.bf16 %v7327_v43, %v7325_v40  ;;  %v5491_v45 = vpop.f32.mrb[23].mxu0 }
 0x83a   : > { %2321 = vadd.xlane.f32.xlu1 %v2320_v9 }
 0x83c   : > { %v7332_v46 = vpop.f32.mrb[24].mxu0 }
 0x83d   : > { %v5502_v47 = vpop.f32.mrb[25].mxu0 }
 0x83e   : > { %v7334_v49 = vpop.f32.mrb[26].mxu0 }
 0x83f   : > { %v2029_v24 = vpack.c.bf16 %v7334_v49, %v7332_v46  ;;  %v5503_v50 = vpop.f32.mrb[27].mxu0 }
 0x845   : > { %v2077_v51 = vpop.f32.mrb[28].mxu0 }
 0x846   : > { %v5514_v52 = vpop.f32.mrb[29].mxu0  ;;  %v2243_v53 = vmul.f32 0.17677669, %v2077_v51 }
 0x847   : > { %v2080_v54 = vpop.f32.mrb[30].mxu0 }
 0x848   : > { %v5515_v57 = vpop.f32.mrb[31].mxu0  ;;  %v2251_v33 = vsel %vm1758_vm3, %v2243_v53, -inf  ;;  %v7354_v18 = vmul.f32 0.17677669, %v2080_v54 }
 0x84a   : > { %v2254_v19 = vsel %vm1758_vm3, %v7354_v18, -inf }
 0x84b   : > { %2719 = vrot.lane.b32.xlu1 %v7150_v15, %s6568_s18 }
 0x84c   : > { %2252 = vmax.xlane.f32.xlu0 %v2251_v33 }
 0x84d   : > { %v2183_v60 = vpop.f32.mrb[32].mxu0 }
 0x84e   : > { %v2247_v63 = vmul.f32 0.17677669, %v2183_v60  ;;  %v5526_v0 = vpop.f32.mrb[33].mxu0 }
 0x84f   : > { %v2186_v2 = vpop.f32.mrb[34].mxu0  ;;  %2717 = vrot.lane.b32.xlu1 %v7148_v13, %s6568_s18 }
 0x850   : > { %v7343_v3 = vmul.f32 0.17677669, %v2186_v2  ;;  %v5527_v4 = vpop.f32.mrb[35].mxu0  ;;  %v2263_v10 = vsel %vm1758_vm3, %v2247_v63, -inf }
 0x851   : > { %2264 = vmax.xlane.f32.xlu0 %v2263_v10 }
 0x852   : > { %v2266_v14 = vsel %vm1758_vm3, %v7343_v3, -inf }
 0x853   : > { %2768 = vrot.lane.b32.xlu1 %v7163_v39, %s6568_s18 }
 0x855   : > { %2267 = vmax.xlane.f32.xlu0 %v2266_v14 }
 0x857   : > { %2819 = vrot.lane.b32.xlu1 %v7182_v56, %s6568_s18 }
 0x85b   : > { %2870 = vrot.lane.b32.xlu1 %v7197_v6, %s6568_s18 }
 0x87f   : > { %2255 = vmax.xlane.f32.xlu1 %v2254_v19 }
 0x890   : > { %v2307_v20 = vpop.xlane.xlu0 %2306 }
 0x891   : > { %6047 = vrcp.f32 %v2307_v20 }
 0x892   : > { %v2310_v21 = vpop.xlane.xlu1 %2309 }
 0x893   : > { %6049 = vrcp.f32 %v2310_v21 }
 0x896   : > { %v2489_v38 = vpop.permute.xlu1 %2488 }
 0x898   : > { %v2319_v22 = vpop.xlane.xlu0 %2318 }
 0x899   : > { %6051 = vrcp.f32 %v2319_v22 }
 0x89b   : > { %v6048_v23 = vpop.eup %6047 }
 0x89c   : > { %v2393_v11 = vpop.permute.xlu0 %2392  ;;  %v2333_v35 = vmul.f32 %v6048_v23, %v7303_v27 }
 0x89d   : > { %v6050_v31 = vpop.eup %6049  ;;  %5541 = vmatpush3.bf16.msra.mxu1 %v2393_v11 }
 0x89e   : > { %v2334_v36 = vmul.f32 %v6050_v31, %v7307_v30  ;;  %5552 = vmatprep.subr.bf16.mxu1 %v6565_v32 }
 0x8a0   : > { %v2340_v37 = vpack.c.bf16 %v2334_v36, %v2333_v35  ;;  %v2771_v45 = vpop.permute.xlu0 %2770 }
 0x8a2   : > { %5543 = vmatmul.mubr.msk.bf16.vlgmr.msra.gmra.mrb[36].mxu1 %vm1758_vm3, %v2340_v37 }
 0x8a3   : > { %5553 = vmatpush3.bf16.msra.mxu1 %v2489_v38  ;;  %5554 = vmatprep.mubr.msk.bf16.mxu1 %vm6566_vm1, %v6565_v32  ;;  %v6052_v27 = vpop.eup %6051 }
 0x8a4   : > { %5582 = vmatprep.subr.bf16.mxu1 %v6565_v32  ;;  %v2822_v9 = vpop.permute.xlu0 %2821  ;;  %v2337_v30 = vmul.f32 %v6052_v27, %v7311_v34 }
 0x8a8   : > { %v2873_v52 = vpop.permute.xlu0 %2872 }
 0x8a9   : > { %v2878_v23 = vsel %vm1561_vm2, %v2873_v52, 0 }
 0x8c7   : > { %v2322_v16 = vpop.xlane.xlu1 %2321 }
 0x8c8   : > { %6053 = vrcp.f32 %v2322_v16 }
 0x8cb   : > { %v2720_v51 = vpop.permute.xlu1 %2719 }
 0x8cc   : > { %v2725_v57 = vsel %vm1561_vm2, %v2720_v51, 0 }
 0x8cf   : > { %v2718_v2 = vpop.permute.xlu1 %2717 }
 0x8d2   : > { %v6054_v47 = vpop.eup %6053 }
 0x8d3   : > { %v2338_v50 = vmul.f32 %v6054_v47, %v6046_v42  ;;  %v2776_v42 = vsel %vm1561_vm2, %v2771_v45, 0  ;;  %v2769_v14 = vpop.permute.xlu1 %2768 }
 0x8d5   : > { %v2342_v54 = vpack.c.bf16 %v2338_v50, %v2337_v30 }
 0x8d7   : > { %5555 = vmatmul.mubr.msk.bf16.vlgmr.msra.gmra.mrb[40].mxu1 %vm1758_vm3, %v2342_v54  ;;  %v2820_v21 = vpop.permute.xlu1 %2819 }
 0x8d8   : > { %5583 = vmatpush3.bf16.xpose.msra.mxu1 %v2725_v57  ;;  %5584 = vmatprep.mubr.msk.bf16.mxu1 %vm6566_vm1, %v6565_v32 }
 0x8d9   : > { %v2253_v33 = vpop.xlane.xlu0 %2252  ;;  %5588 = vmatprep.subr.bf16.mxu1 %v6565_v32 }
 0x8da   : > { %v2275_v60 = vsub.f32 %v2243_v53, %v2253_v33  ;;  %v2827_v53 = vsel %vm1561_vm2, %v2822_v9, 0 }
 0x8db   : > { %v2871_v11 = vpop.permute.xlu1 %2870 }
 0x8dc   : > { %v2283_v0 = vmul.f32 1.442695, %v2275_v60 }
 0x8de   : > { %6055 = vpow2.f32 %v2283_v0  ;;  %v2265_v34 = vpop.xlane.xlu0 %2264 }
 0x8df   : > { %v2279_v4 = vsub.f32 %v2247_v63, %v2265_v34  ;;  %5585 = vmatmul.mubr.msk.bf16.vlgmr.msra.gmra.mrb[44].mxu1 %vm1561_vm2, %v2718_v2 }
 0x8e0   : > { %5589 = vmatpush3.bf16.xpose.msra.mxu1 %v2776_v42  ;;  %5590 = vmatprep.mubr.msk.bf16.mxu1 %vm6566_vm1, %v6565_v32 }
 0x8e1   : > { %v2291_v10 = vmul.f32 1.442695, %v2279_v4  ;;  %5594 = vmatprep.subr.bf16.mxu1 %v6565_v32 }
 0x8e2   : > { %v2268_v31 = vpop.xlane.xlu0 %2267 }
 0x8e3   : > { %6057 = vpow2.f32 %v2291_v10  ;;  %v2280_v35 = vsub.f32 %v7343_v3, %v2268_v31 }
 0x8e5   : > { %v2293_v38 = vmul.f32 1.442695, %v2280_v35 }
 0x8e7   : > { %5591 = vmatmul.mubr.msk.bf16.vlgmr.msra.gmra.mrb[48].mxu1 %vm1561_vm2, %v2769_v14 }
 0x8e8   : > { %v7378_v19 = vpop.eup %6055  ;;  %5595 = vmatpush3.bf16.xpose.msra.mxu1 %v2827_v53  ;;  %5596 = vmatprep.mubr.msk.bf16.mxu1 %vm6566_vm1, %v6565_v32 }
 0x8e9   : > { %v2299_v63 = vsel %vm1758_vm3, %v7378_v19, 0.0  ;;  %5600 = vmatprep.subr.bf16.mxu1 %v6565_v32 }
 0x8ea   : > { %2300 = vadd.xlane.f32.xlu0 %v2299_v63 }
 0x8ed   : > { %v7385_v20 = vpop.eup %6057 }
 0x8ee   : > { %v2311_v22 = vsel %vm1758_vm3, %v7385_v20, 0.0 }
 0x8ef   : > { %2312 = vadd.xlane.f32.xlu0 %v2311_v22  ;;  %5597 = vmatmul.mubr.msk.bf16.vlgmr.msra.gmra.mrb[52].mxu1 %vm1561_vm2, %v2820_v21 }
 0x8f0   : > { %5601 = vmatpush3.bf16.xpose.msra.mxu1 %v2878_v23  ;;  %5602 = vmatprep.mubr.msk.bf16.mxu1 %vm6566_vm1, %v6565_v32 }
 0x8f1   : > { %5612 = vmatprep.subr.bf16.mxu1 %v6565_v32 }
 0x8f7   : > { %5603 = vmatmul.mubr.msk.bf16.vlgmr.msra.gmra.mrb[56].mxu1 %vm1561_vm2, %v2871_v11 }
 0x8f8   : > { %5614 = vmatprep.mubr.msk.bf16.mxu1 %vm6566_vm1, %v6565_v32 }
 0x905   : > { %2344 = vrot.lane.b32.xlu0 %v7156_v8, %s6567_s28 }
 0x90c   : > { %v2256_v36 = vpop.xlane.xlu1 %2255 }
 0x90d   : > { %v2276_v37 = vsub.f32 %v7354_v18, %v2256_v36 }
 0x90f   : > { %v2285_v16 = vmul.f32 1.442695, %v2276_v37 }
 0x911   : > { %6059 = vpow2.f32 %v2285_v16 }
 0x912   : > { %6061 = vpow2.f32 %v2293_v38 }
 0x91b   : > { %v6060_v45 = vpop.eup %6059 }
 0x91c   : > { %v2302_v9 = vsel %vm1758_vm3, %v6060_v45, 0.0  ;;  %v6062_v27 = vpop.eup %6061 }
 0x91d   : > { %2303 = vadd.xlane.f32.xlu1 %v2302_v9  ;;  %v2314_v47 = vsel %vm1758_vm3, %v6062_v27, 0.0 }
 0x921   : > { %2315 = vadd.xlane.f32.xlu1 %v2314_v47 }
 0x932   : > { %2440 = vrot.lane.b32.xlu1 %v7175_v17, %s6567_s28 }
 0x975   : > { %v7405_v30 = vpop.f32.mrb[36].mxu1 }
 0x976   : > { %v5544_v3 = vpop.f32.mrb[37].mxu1 }
 0x977   : > { %v2301_v50 = vpop.xlane.xlu0 %2300  ;;  %v7407_v18 = vpop.f32.mrb[38].mxu1 }
 0x978   : > { %v2536_v51 = vpack.c.bf16 %v7407_v18, %v7405_v30  ;;  %v5545_v52 = vpop.f32.mrb[39].mxu1  ;;  %6063 = vrcp.f32 %v2301_v50 }
 0x97c   : > { %v2313_v54 = vpop.xlane.xlu0 %2312 }
 0x980   : > { %v2345_v57 = vpop.permute.xlu0 %2344 }
 0x981   : > { %5535 = vmatpush3.bf16.msra.mxu0 %v2345_v57 }
 0x982   : > { %5546 = vmatprep.subr.bf16.mxu0 %v6565_v32  ;;  %v6064_v14 = vpop.eup %6063 }
 0x983   : > { %v2331_v35 = vmul.f32 %v6064_v14, %v7378_v19 }
 0x9aa   : > { %v2304_v33 = vpop.xlane.xlu1 %2303  ;;  %v7412_v60 = vpop.f32.mrb[40].mxu1 }
 0x9ab   : > { %6065 = vrcp.f32 %v2304_v33  ;;  %v5556_v0 = vpop.f32.mrb[41].mxu1 }
 0x9ac   : > { %v7414_v2 = vpop.f32.mrb[42].mxu1 }
 0x9ad   : > { %v2538_v34 = vpack.c.bf16 %v7414_v2, %v7412_v60  ;;  %v5557_v42 = vpop.f32.mrb[43].mxu1  ;;  %v5947_v60 = vld [vmem:[%s7035_s29 + $0x20] sm:$0xff]  }
 0x9ae   : > { %v2316_v4 = vpop.xlane.xlu1 %2315 }
 0x9af   : > { %6067 = vrcp.f32 %v2316_v4 }
 0x9b0   : > { %6069 = vrcp.f32 %v2313_v54 }
 0x9b2   : > { %v2761_v10 = vpop.f32.mrb[44].mxu1  ;;  %v2441_v9 = vpop.permute.xlu1 %2440 }
 0x9b3   : > { %v7418_v53 = vmul.f32 0.17677669, %v2761_v10  ;;  %v5586_v63 = vpop.f32.mrb[45].mxu1 }
 0x9b4   : > { %v2764_v21 = vpop.f32.mrb[46].mxu1 }
 0x9b5   : > { %v6066_v22 = vpop.eup %6065  ;;  %v7420_v23 = vmul.f32 0.17677669, %v2764_v21  ;;  %v5587_v11 = vpop.f32.mrb[47].mxu1  ;;  %v2929_v31 = vsel %vm1758_vm3, %v7418_v53, -inf }
 0x9b6   : > { %v2332_v36 = vmul.f32 %v6066_v22, %v6060_v45  ;;  %2930 = vmax.xlane.f32.xlu1 %v2929_v31 }
 0x9b7   : > { %v2932_v37 = vsel %vm1758_vm3, %v7420_v23, -inf }
 0x9b8   : > { %2933 = vmax.xlane.f32.xlu0 %v2932_v37  ;;  %v2339_v38 = vpack.c.bf16 %v2332_v36, %v2331_v35 }
 0x9b9   : > { %v6068_v16 = vpop.eup %6067 }
 0x9ba   : > { %5537 = vmatmul.mubr.msk.bf16.vlgmr.msra.gmra.mrb[36].mxu0 %vm1758_vm3, %v2339_v38  ;;  %v2812_v47 = vpop.f32.mrb[48].mxu1  ;;  %v6070_v3 = vpop.eup %6069  ;;  %v2336_v19 = vmul.f32 %v6068_v16, %v6062_v27 }
 0x9bb   : > { %5547 = vmatpush3.bf16.msra.mxu0 %v2441_v9  ;;  %v2923_v50 = vmul.f32 0.17677669, %v2812_v47  ;;  %v5592_v52 = vpop.f32.mrb[49].mxu1  ;;  %5548 = vmatprep.mubr.msk.bf16.mxu0 %vm6566_vm1, %v6565_v32  ;;  %v2335_v0 = vmul.f32 %v6070_v3, %v7385_v20  ;;  %v5943_v3 = vld [vmem:[%s7035_s29 + $0x10] sm:$0xff]  }
 0x9bc   : > { %v2815_v45 = vpop.f32.mrb[50].mxu1  ;;  %5558 = vmatprep.subr.bf16.mxu0 %v5943_v3  ;;  %v5944_v52 = vld [vmem:[%s7035_s29 + $0x18] sm:$0xff]  }
 0x9bd   : > { %v2924_v54 = vmul.f32 0.17677669, %v2815_v45  ;;  %v5593_v57 = vpop.f32.mrb[51].mxu1  ;;  %v2935_v33 = vsel %vm1758_vm3, %v2923_v50, -inf  ;;  %v2341_v4 = vpack.c.bf16 %v2336_v19, %v2335_v0  ;;  %v7444_v19 = vld [vmem:[%s7035_s29] sm:$0xff]  }
 0x9be   : > { %2936 = vmax.xlane.f32.xlu0 %v2935_v33 }
 0x9bf   : > { %v2938_v42 = vsel %vm1758_vm3, %v2924_v54, -inf }
 0x9c0   : > { %2939 = vmax.xlane.f32.xlu1 %v2938_v42 }
 0x9c2   : > { %5549 = vmatmul.mubr.msk.bf16.vlgmr.msra.gmra.mrb[40].mxu0 %vm1758_vm3, %v2341_v4  ;;  %v2863_v10 = vpop.f32.mrb[52].mxu1 }
 0x9c3   : > { %v2925_v14 = vmul.f32 0.17677669, %v2863_v10  ;;  %v5598_v63 = vpop.f32.mrb[53].mxu1  ;;  %5559 = vmatpush3.bf16.msra.mxu0 %v5943_v3 }
 0x9c4   : > { %v2866_v21 = vpop.f32.mrb[54].mxu1  ;;  %5560 = vmatprep.subr.bf16.mxu0 %v5944_v52 }
 0x9c5   : > { %v2926_v22 = vmul.f32 0.17677669, %v2866_v21  ;;  %v5599_v27 = vpop.f32.mrb[55].mxu1  ;;  %v2941_v11 = vsel %vm1758_vm3, %v2925_v14, -inf }
 0x9c6   : > { %2942 = vmax.xlane.f32.xlu0 %v2941_v11 }
 0x9c7   : > { %v2944_v20 = vsel %vm1758_vm3, %v2926_v22, -inf  ;;  %5561 = vmatpush3.bf16.msra.mxu0 %v5944_v52 }
 0x9c8   : > { %2945 = vmax.xlane.f32.xlu1 %v2944_v20  ;;  %5570 = vmatprep.subr.bf16.mxu0 %v7444_v19 }
 0x9ca   : > { %v2914_v31 = vpop.f32.mrb[56].mxu1 }
 0x9cb   : > { %v2927_v35 = vmul.f32 0.17677669, %v2914_v31  ;;  %v5604_v36 = vpop.f32.mrb[57].mxu1 }
 0x9cc   : > { %v2917_v37 = vpop.f32.mrb[58].mxu1 }
 0x9cd   : > { %v7436_v38 = vmul.f32 0.17677669, %v2917_v37  ;;  %v5605_v16 = vpop.f32.mrb[59].mxu1  ;;  %v2947_v9 = vsel %vm1758_vm3, %v2927_v35, -inf }
 0x9ce   : > { %2948 = vmax.xlane.f32.xlu0 %v2947_v9 }
 0x9cf   : > { %v2950_v47 = vsel %vm1758_vm3, %v7436_v38, -inf }
 0x9d0   : > { %2951 = vmax.xlane.f32.xlu1 %v2950_v47 }
 0xa43   : > { %v2931_v45 = vpop.xlane.xlu1 %2930 }
 0xa44   : > { %v2953_v57 = vsub.f32 %v7418_v53, %v2931_v45 }
 0xa45   : > { %v2934_v33 = vpop.xlane.xlu0 %2933 }
 0xa46   : > { %v2961_v0 = vmul.f32 1.442695, %v2953_v57  ;;  %v2954_v42 = vsub.f32 %v7420_v23, %v2934_v33 }
 0xa48   : > { %6071 = vpow2.f32 %v2961_v0  ;;  %v2963_v4 = vmul.f32 1.442695, %v2954_v42 }
 0xa4a   : > { %6073 = vpow2.f32 %v2963_v4 }
 0xa4b   : > { %v2937_v10 = vpop.xlane.xlu0 %2936 }
 0xa4c   : > { %v2955_v63 = vsub.f32 %v2923_v50, %v2937_v10 }
 0xa4d   : > { %v2940_v21 = vpop.xlane.xlu1 %2939 }
 0xa4e   : > { %v2965_v27 = vmul.f32 1.442695, %v2955_v63  ;;  %v2956_v11 = vsub.f32 %v2924_v54, %v2940_v21 }
 0xa50   : > { %6075 = vpow2.f32 %v2965_v27  ;;  %v2967_v20 = vmul.f32 1.442695, %v2956_v11 }
 0xa52   : > { %v7449_v31 = vpop.eup %6071  ;;  %6077 = vpow2.f32 %v2967_v20 }
 0xa53   : > { %v2943_v36 = vpop.xlane.xlu0 %2942  ;;  %v2977_v53 = vsel %vm1758_vm3, %v7449_v31, 0.0 }
 0xa54   : > { %v7453_v37 = vpop.eup %6073  ;;  %v2957_v23 = vsub.f32 %v2925_v14, %v2943_v36  ;;  %2978 = vadd.xlane.f32.xlu0 %v2977_v53 }
 0xa55   : > { %v2946_v16 = vpop.xlane.xlu1 %2945  ;;  %v2980_v50 = vsel %vm1758_vm3, %v7453_v37, 0.0 }
 0xa56   : > { %v2969_v9 = vmul.f32 1.442695, %v2957_v23  ;;  %v2958_v47 = vsub.f32 %v2926_v22, %v2946_v16  ;;  %2981 = vadd.xlane.f32.xlu1 %v2980_v50  ;;  %v5946_v50 = vld [vmem:[%s7035_s29 + $0x8] sm:$0xff]  }
 0xa58   : > { %6079 = vpow2.f32 %v2969_v9  ;;  %v2971_v54 = vmul.f32 1.442695, %v2958_v47 }
 0xa5a   : > { %v7457_v3 = vpop.eup %6075  ;;  %6081 = vpow2.f32 %v2971_v54 }
 0xa5b   : > { %v2949_v52 = vpop.xlane.xlu0 %2948  ;;  %v2983_v45 = vsel %vm1758_vm3, %v7457_v3, 0.0 }
 0xa5c   : > { %v7461_v57 = vpop.eup %6077  ;;  %v2959_v14 = vsub.f32 %v2927_v35, %v2949_v52  ;;  %2984 = vadd.xlane.f32.xlu0 %v2983_v45 }
 0xa5d   : > { %v2986_v33 = vsel %vm1758_vm3, %v7461_v57, 0.0  ;;  %v2952_v21 = vpop.xlane.xlu1 %2951 }
 0xa5e   : > { %v2973_v0 = vmul.f32 1.442695, %v2959_v14  ;;  %2987 = vadd.xlane.f32.xlu1 %v2986_v33  ;;  %v2960_v27 = vsub.f32 %v7436_v38, %v2952_v21 }
 0xa60   : > { %6083 = vpow2.f32 %v2973_v0  ;;  %v2975_v11 = vmul.f32 1.442695, %v2960_v27 }
 0xa62   : > { %v7465_v22 = vpop.eup %6079  ;;  %6085 = vpow2.f32 %v2975_v11  ;;  %v5948_v11 = vld [vmem:[%s7035_s29 + $0x28] sm:$0xff]  }
 0xa63   : > { %v2989_v42 = vsel %vm1758_vm3, %v7465_v22, 0.0 }
 0xa64   : > { %v7469_v4 = vpop.eup %6081  ;;  %2990 = vadd.xlane.f32.xlu0 %v2989_v42 }
 0xa65   : > { %v2992_v10 = vsel %vm1758_vm3, %v7469_v4, 0.0 }
 0xa66   : > { %2993 = vadd.xlane.f32.xlu1 %v2992_v10 }
 0xa6a   : > { %v7473_v35 = vpop.eup %6083 }
 0xa6b   : > { %v2995_v63 = vsel %vm1758_vm3, %v7473_v35, 0.0 }
 0xa6c   : > { %2996 = vadd.xlane.f32.xlu0 %v2995_v63  ;;  %v7501_v47 = vpop.eup %6085 }
 0xa77   : > { %3068 = vrot.lane.b32.xlu1 %v7154_v28, %s6568_s18 }
 0xa7b   : > { %3115 = vrot.lane.b32.xlu1 %v7175_v17, %s6568_s18 }
 0xa82   : > { %3021 = vrot.lane.b32.xlu0 %v7156_v8, %s6568_s18 }
 0xa86   : > { %3312 = vrot.lane.b32.xlu0 %v7150_v15, %s6569_s21 }
 0xa8a   : > { %3363 = vrot.lane.b32.xlu0 %v7165_v41, %s6569_s21 }
 0xa8d   : > { %v2384_v20 = vpop.f32.mrb[36].mxu0 }
 0xa8e   : > { %v5538_v36 = vpop.f32.mrb[37].mxu0  ;;  %3414 = vrot.lane.b32.xlu0 %v7184_v25, %s6569_s21 }
 0xa8f   : > { %v2387_v53 = vpop.f32.mrb[38].mxu0 }
 0xa90   : > { %v2535_v23 = vpack.c.bf16 %v2387_v53, %v2384_v20  ;;  %v5539_v16 = vpop.f32.mrb[39].mxu0 }
 0xa92   : > { %5562 = vmatprep.mubr.msk.bf16.mxu0 %vm1561_vm2, %v2535_v23  ;;  %3412 = vrot.lane.b32.xlu0 %v7182_v56, %s6569_s21  ;;  %v2998_v56 = vsel %vm1758_vm3, %v7501_v47, 0.0 }
 0xa93   : > { %5563 = vmatmul.mubr.msk.bf16.vlgmr.msra.gmra.mrb[44].mxu0 %vm1561_vm2, %v2536_v51 }
 0xa94   : > { %5571 = vmatpush3.bf16.msra.mxu0 %v7444_v19 }
 0xa95   : > { %v2480_v15 = vpop.f32.mrb[40].mxu0  ;;  %5572 = vmatprep.subr.bf16.mxu0 %v5946_v50 }
 0xa96   : > { %v5550_v41 = vpop.f32.mrb[41].mxu0 }
 0xa97   : > { %v2483_v25 = vpop.f32.mrb[42].mxu0 }
 0xa98   : > { %v2537_v38 = vpack.c.bf16 %v2483_v25, %v2480_v15  ;;  %v5551_v9 = vpop.f32.mrb[43].mxu0  ;;  %5573 = vmatpush3.bf16.msra.mxu0 %v5946_v50 }
 0xa99   : > { %5606 = vmatprep.subr.bf16.mxu0 %v6565_v32 }
 0xa9a   : > { %5566 = vmatprep.mubr.msk.bf16.mxu0 %vm1561_vm2, %v2537_v38 }
 0xa9b   : > { %5567 = vmatmul.mubr.msk.bf16.gmra.mrb[48].mxu0 %vm1561_vm2, %v2538_v34 }
 0xa9c   : > { %5574 = vmatprep.mubr.msk.bf16.mxu0 %vm1561_vm2, %v2027_v44 }
 0xa9f   : > { %2999 = vadd.xlane.f32.xlu1 %v2998_v56 }
 0xaa3   : > { %5575 = vmatmul.mubr.msk.bf16.vlgmr.msra.gmra.mrb[44].mxu0 %vm1561_vm2, %v2028_v12 }
 0xaa4   : > { %5578 = vmatprep.mubr.msk.bf16.mxu0 %vm1561_vm2, %v2029_v24 }
 0xaab   : > { %5579 = vmatmul.mubr.msk.bf16.gmra.mrb[48].mxu0 %vm1561_vm2, %v2030_v29 }
 0xaac   : > { %5608 = vmatprep.mubr.msk.bf16.mxu0 %vm6566_vm1, %v6565_v32 }
 0xab0   : > { %3162 = vrot.lane.b32.xlu1 %v7171_v48, %s6568_s18 }
 0xab4   : > { %3310 = vrot.lane.b32.xlu1 %v7148_v13, %s6569_s21 }
 0xab8   : > { %3361 = vrot.lane.b32.xlu1 %v7163_v39, %s6569_s21 }
 0xabc   : > { %3465 = vrot.lane.b32.xlu1 %v7199_v7, %s6569_s21 }
 0xac0   : > { %3463 = vrot.lane.b32.xlu1 %v7197_v6, %s6569_s21 }
 0xae1   : > { %v2979_v5 = vpop.xlane.xlu0 %2978 }
 0xae3   : > { %v2982_v1 = vpop.xlane.xlu1 %2981 }
 0xae9   : > { %v2985_v12 = vpop.xlane.xlu0 %2984 }
 0xaea   : > { %6087 = vrcp.f32 %v2985_v12 }
 0xaeb   : > { %v2988_v62 = vpop.xlane.xlu1 %2987 }
 0xaec   : > { %6089 = vrcp.f32 %v2988_v62 }
 0xaed   : > { %6091 = vrcp.f32 %v2982_v1 }
 0xaee   : > { %6093 = vrcp.f32 %v2979_v5 }
 0xaf1   : > { %v2991_v13 = vpop.xlane.xlu0 %2990 }
 0xaf3   : > { %v2994_v26 = vpop.xlane.xlu1 %2993 }
 0xaf4   : > { %v6088_v29 = vpop.eup %6087  ;;  %6095 = vrcp.f32 %v2994_v26 }
 0xaf5   : > { %v3011_v39 = vmul.f32 %v6088_v29, %v7457_v3  ;;  %6097 = vrcp.f32 %v2991_v13 }
 0xaf6   : > { %v6090_v40 = vpop.eup %6089 }
 0xaf7   : > { %v3012_v7 = vmul.f32 %v6090_v40, %v7461_v57  ;;  %v3069_v43 = vpop.permute.xlu1 %3068  ;;  %v6092_v6 = vpop.eup %6091 }
 0xaf8   : > { %5613 = vmatpush3.bf16.msra.mxu1 %v3069_v43  ;;  %v6094_v49 = vpop.eup %6093  ;;  %v3010_v24 = vmul.f32 %v6092_v6, %v7453_v37 }
 0xaf9   : > { %v2997_v44 = vpop.xlane.xlu0 %2996  ;;  %v3018_v46 = vpack.c.bf16 %v3012_v7, %v3011_v39  ;;  %5624 = vmatprep.subr.bf16.mxu1 %v6565_v32  ;;  %v3009_v30 = vmul.f32 %v6094_v49, %v7449_v31 }
 0xafa   : > { %6099 = vrcp.f32 %v2997_v44 }
 0xafb   : > { %5615 = vmatmul.mubr.msk.bf16.vlgmr.msra.gmra.mrb[60].mxu1 %vm1758_vm3, %v3018_v46  ;;  %v3017_v51 = vpack.c.bf16 %v3010_v24, %v3009_v30  ;;  %v3116_v34 = vpop.permute.xlu1 %3115 }
 0xafc   : > { %5626 = vmatprep.mubr.msk.bf16.mxu1 %vm6566_vm1, %v6565_v32 }
 0xafd   : > { %v3022_v18 = vpop.permute.xlu0 %3021 }
 0xafe   : > { %5607 = vmatpush3.bf16.msra.mxu0 %v3022_v18  ;;  %v6096_v2 = vpop.eup %6095 }
 0xaff   : > { %5618 = vmatprep.subr.bf16.mxu0 %v6565_v32  ;;  %v6098_v19 = vpop.eup %6097  ;;  %v3014_v37 = vmul.f32 %v6096_v2, %v7469_v4 }
 0xb00   : > { %v3013_v31 = vmul.f32 %v6098_v19, %v7465_v22 }
 0xb01   : > { %5609 = vmatmul.mubr.msk.bf16.vlgmr.msra.gmra.mrb[52].mxu0 %vm1758_vm3, %v3017_v51  ;;  %v3313_v0 = vpop.permute.xlu0 %3312 }
 0xb02   : > { %5619 = vmatpush3.bf16.msra.mxu0 %v3116_v34  ;;  %5620 = vmatprep.mubr.msk.bf16.mxu0 %vm6566_vm1, %v6565_v32  ;;  %v3019_v54 = vpack.c.bf16 %v3014_v37, %v3013_v31  ;;  %v3318_v22 = vsel %vm1561_vm2, %v3313_v0, 0 }
 0xb03   : > { %5630 = vmatprep.subr.bf16.mxu0 %v5947_v60 }
 0xb04   : > { %v6100_v45 = vpop.eup %6099 }
 0xb05   : > { %v3015_v14 = vmul.f32 %v6100_v45, %v7473_v35  ;;  %v3364_v10 = vpop.permute.xlu0 %3363 }
 0xb06   : > { %v3369_v35 = vsel %vm1561_vm2, %v3364_v10, 0 }
 0xb09   : > { %5621 = vmatmul.mubr.msk.bf16.vlgmr.msra.gmra.mrb[56].mxu0 %vm1758_vm3, %v3019_v54  ;;  %v3415_v38 = vpop.permute.xlu0 %3414 }
 0xb0a   : > { %5631 = vmatpush3.bf16.msra.mxu0 %v5947_v60  ;;  %v3420_v56 = vsel %vm1561_vm2, %v3415_v38, 0 }
 0xb0b   : > { %5632 = vmatprep.subr.bf16.mxu0 %v5948_v11 }
 0xb0d   : > { %v3413_v18 = vpop.permute.xlu0 %3412 }
 0xb0e   : > { %5633 = vmatpush3.bf16.msra.mxu0 %v5948_v11 }
 0xb0f   : > { %5654 = vmatprep.subr.bf16.mxu0 %v6565_v32 }
 0xb2c   : > { %v3000_v3 = vpop.xlane.xlu1 %2999 }
 0xb2d   : > { %6101 = vrcp.f32 %v3000_v3 }
 0xb30   : > { %v3163_v52 = vpop.permute.xlu1 %3162 }
 0xb31   : > { %5625 = vmatpush3.bf16.msra.mxu1 %v3163_v52 }
 0xb32   : > { %5642 = vmatprep.subr.bf16.mxu1 %v6565_v32 }
 0xb34   : > { %v3311_v4 = vpop.permute.xlu1 %3310 }
 0xb37   : > { %v6102_v57 = vpop.eup %6101 }
 0xb38   : > { %v3016_v33 = vmul.f32 %v6102_v57, %v7501_v47  ;;  %v3362_v63 = vpop.permute.xlu1 %3361 }
 0xb3a   : > { %v3020_v42 = vpack.c.bf16 %v3016_v33, %v3015_v14 }
 0xb3c   : > { %5627 = vmatmul.mubr.msk.bf16.vlgmr.msra.gmra.mrb[64].mxu1 %vm1758_vm3, %v3020_v42  ;;  %v3466_v21 = vpop.permute.xlu1 %3465 }
 0xb3d   : > { %5643 = vmatpush3.bf16.xpose.msra.mxu1 %v3318_v22  ;;  %5644 = vmatprep.mubr.msk.bf16.mxu1 %vm6566_vm1, %v6565_v32  ;;  %v3471_v27 = vsel %vm1561_vm2, %v3466_v21, 0 }
 0xb3e   : > { %5648 = vmatprep.subr.bf16.mxu1 %v6565_v32 }
 0xb40   : > { %v3464_v20 = vpop.permute.xlu1 %3463 }
 0xb44   : > { %5645 = vmatmul.mubr.msk.bf16.vlgmr.msra.gmra.mrb[68].mxu1 %vm1561_vm2, %v3311_v4 }
 0xb45   : > { %5649 = vmatpush3.bf16.xpose.msra.mxu1 %v3369_v35  ;;  %5650 = vmatprep.mubr.msk.bf16.mxu1 %vm6566_vm1, %v6565_v32 }
 0xb46   : > { %5660 = vmatprep.subr.bf16.mxu1 %v6565_v32 }
 0xb4c   : > { %5651 = vmatmul.mubr.msk.bf16.vlgmr.msra.gmra.mrb[72].mxu1 %vm1561_vm2, %v3362_v63 }
 0xb4d   : > { %5661 = vmatpush3.bf16.xpose.msra.mxu1 %v3471_v27  ;;  %5662 = vmatprep.mubr.msk.bf16.mxu1 %vm6566_vm1, %v6565_v32 }
 0xb4e   : > { %5672 = vmatprep.subr.bf16.mxu1 %v6565_v32 }
 0xb54   : > { %5663 = vmatmul.mubr.msk.bf16.vlgmr.msra.gmra.mrb[76].mxu1 %vm1561_vm2, %v3464_v20 }
 0xb55   : > { %5674 = vmatprep.mubr.msk.bf16.mxu1 %vm6566_vm1, %v6565_v32 }
 0xbce   : > { %v3108_v36 = vpop.f32.mrb[60].mxu1 }
 0xbcf   : > { %v5616_v53 = vpop.f32.mrb[61].mxu1 }
 0xbd0   : > { %v3111_v23 = vpop.f32.mrb[62].mxu1 }
 0xbd1   : > { %v3210_v16 = vpack.c.bf16 %v3111_v23, %v3108_v36  ;;  %v5617_v50 = vpop.f32.mrb[63].mxu1 }
 0xbd4   : > { %v3061_v15 = vpop.f32.mrb[52].mxu0 }
 0xbd5   : > { %v5610_v41 = vpop.f32.mrb[53].mxu0 }
 0xbd6   : > { %v3064_v25 = vpop.f32.mrb[54].mxu0 }
 0xbd7   : > { %v3209_v9 = vpack.c.bf16 %v3064_v25, %v3061_v15  ;;  %v5611_v47 = vpop.f32.mrb[55].mxu0 }
 0xbd9   : > { %5634 = vmatprep.mubr.msk.bf16.mxu0 %vm1561_vm2, %v3209_v9 }
 0xbda   : > { %5635 = vmatmul.mubr.msk.bf16.vlgmr.msra.gmra.mrb[44].mxu0 %vm1561_vm2, %v3210_v16 }
 0xbdb   : > { %5655 = vmatpush3.bf16.xpose.msra.mxu0 %v3420_v56 }
 0xbdc   : > { %v3155_v5 = vpop.f32.mrb[56].mxu0  ;;  %5666 = vmatprep.subr.bf16.mxu0 %v6565_v32 }
 0xbdd   : > { %v5622_v1 = vpop.f32.mrb[57].mxu0 }
 0xbde   : > { %v3158_v12 = vpop.f32.mrb[58].mxu0 }
 0xbdf   : > { %v3211_v62 = vpack.c.bf16 %v3158_v12, %v3155_v5  ;;  %v5623_v26 = vpop.f32.mrb[59].mxu0 }
 0xbe1   : > { %5638 = vmatprep.mubr.msk.bf16.mxu0 %vm1561_vm2, %v3211_v62 }
 0xc0f   : > { %v3202_v29 = vpop.f32.mrb[64].mxu1 }
 0xc10   : > { %v5628_v13 = vpop.f32.mrb[65].mxu1 }
 0xc11   : > { %v3205_v40 = vpop.f32.mrb[66].mxu1 }
 0xc12   : > { %v3212_v39 = vpack.c.bf16 %v3205_v40, %v3202_v29  ;;  %v5629_v7 = vpop.f32.mrb[67].mxu1 }
 0xc14   : > { %5639 = vmatmul.mubr.msk.bf16.gmra.mrb[48].mxu0 %vm1561_vm2, %v3212_v39 }
 0xc15   : > { %5656 = vmatprep.mubr.msk.bf16.mxu0 %vm6566_vm1, %v6565_v32 }
 0xc17   : > { %v3354_v43 = vpop.f32.mrb[68].mxu1 }
 0xc18   : > { %v3514_v6 = vmul.f32 0.17677669, %v3354_v43  ;;  %v5646_v44 = vpop.f32.mrb[69].mxu1 }
 0xc19   : > { %v3357_v46 = vpop.f32.mrb[70].mxu1 }
 0xc1a   : > { %v3515_v49 = vmul.f32 0.17677669, %v3357_v46  ;;  %v5647_v24 = vpop.f32.mrb[71].mxu1  ;;  %v3522_v30 = vsel %vm1758_vm3, %v3514_v6, -inf }
 0xc1b   : > { %3523 = vmax.xlane.f32.xlu0 %v3522_v30 }
 0xc1c   : > { %5657 = vmatmul.mubr.msk.bf16.vlgmr.msra.gmra.mrb[60].mxu0 %vm1561_vm2, %v3413_v18  ;;  %v3525_v51 = vsel %vm1758_vm3, %v3515_v49, -inf }
 0xc1d   : > { %3526 = vmax.xlane.f32.xlu1 %v3525_v51  ;;  %5668 = vmatprep.mubr.msk.bf16.mxu0 %vm6566_vm1, %v6565_v32 }
 0xc1f   : > { %v3405_v60 = vpop.f32.mrb[72].mxu1 }
 0xc20   : > { %v3516_v2 = vmul.f32 0.17677669, %v3405_v60  ;;  %v5652_v34 = vpop.f32.mrb[73].mxu1 }
 0xc21   : > { %v3408_v19 = vpop.f32.mrb[74].mxu1 }
 0xc22   : > { %v3517_v37 = vmul.f32 0.17677669, %v3408_v19  ;;  %v5653_v31 = vpop.f32.mrb[75].mxu1  ;;  %v3528_v54 = vsel %vm1758_vm3, %v3516_v2, -inf }
 0xc23   : > { %3529 = vmax.xlane.f32.xlu0 %v3528_v54 }
 0xc24   : > { %v3531_v3 = vsel %vm1758_vm3, %v3517_v37, -inf }
 0xc27   : > { %3532 = vmax.xlane.f32.xlu0 %v3531_v3  ;;  %v3507_v52 = vpop.f32.mrb[76].mxu1 }
 0xc28   : > { %v5664_v45 = vpop.f32.mrb[77].mxu1  ;;  %v3520_v50 = vmul.f32 0.17677669, %v3507_v52 }
 0xc29   : > { %v3510_v57 = vpop.f32.mrb[78].mxu1 }
 0xc2a   : > { %v5665_v14 = vpop.f32.mrb[79].mxu1  ;;  %v3521_v38 = vmul.f32 0.17677669, %v3510_v57  ;;  %v3540_v47 = vsel %vm1758_vm3, %v3520_v50, -inf }
 0xc2c   : > { %v3543_v5 = vsel %vm1758_vm3, %v3521_v38, -inf }
 0xca8   : > { %v3524_v33 = vpop.xlane.xlu0 %3523 }
 0xca9   : > { %v3546_v22 = vsub.f32 %v3514_v6, %v3524_v33 }
 0xcaa   : > { %v3527_v42 = vpop.xlane.xlu1 %3526 }
 0xcab   : > { %v3547_v4 = vsub.f32 %v3515_v49, %v3527_v42  ;;  %v3554_v63 = vmul.f32 1.442695, %v3546_v22 }
 0xcad   : > { %v3556_v21 = vmul.f32 1.442695, %v3547_v4  ;;  %6103 = vpow2.f32 %v3554_v63 }
 0xcaf   : > { %6105 = vpow2.f32 %v3556_v21 }
 0xcb0   : > { %v3530_v0 = vpop.xlane.xlu0 %3529 }
 0xcb1   : > { %v3548_v35 = vsub.f32 %v3516_v2, %v3530_v0 }
 0xcb3   : > { %v3558_v11 = vmul.f32 1.442695, %v3548_v35 }
 0xcb4   : > { %v3533_v10 = vpop.xlane.xlu0 %3532 }
 0xcb5   : > { %v3549_v27 = vsub.f32 %v3517_v37, %v3533_v10  ;;  %6107 = vpow2.f32 %v3558_v11 }
 0xcb7   : > { %v3560_v20 = vmul.f32 1.442695, %v3549_v27  ;;  %v7594_v56 = vpop.eup %6103 }
 0xcb8   : > { %v3570_v12 = vsel %vm1758_vm3, %v7594_v56, 0.0 }
 0xcb9   : > { %6109 = vpow2.f32 %v3560_v20  ;;  %v6106_v1 = vpop.eup %6105 }
 0xcba   : > { %v3573_v26 = vsel %vm1758_vm3, %v6106_v1, 0.0 }
 0xcbf   : > { %v6108_v62 = vpop.eup %6107 }
 0xcc0   : > { %v3576_v13 = vsel %vm1758_vm3, %v6108_v62, 0.0 }
 0xcc3   : > { %v6110_v29 = vpop.eup %6109 }
 0xcc4   : > { %v3579_v40 = vsel %vm1758_vm3, %v6110_v29, 0.0 }
 0xcef   : > { %v3456_v36 = vpop.f32.mrb[60].mxu0 }
 0xcf0   : > { %v3518_v53 = vmul.f32 0.17677669, %v3456_v36  ;;  %v5658_v23 = vpop.f32.mrb[61].mxu0 }
 0xcf1   : > { %v3459_v16 = vpop.f32.mrb[62].mxu0 }
 0xcf2   : > { %v3519_v15 = vmul.f32 0.17677669, %v3459_v16  ;;  %v5659_v41 = vpop.f32.mrb[63].mxu0  ;;  %v3534_v25 = vsel %vm1758_vm3, %v3518_v53, -inf }
 0xcf3   : > { %3535 = vmax.xlane.f32.xlu0 %v3534_v25 }
 0xcf4   : > { %v3537_v9 = vsel %vm1758_vm3, %v3519_v15, -inf }
 0xcf5   : > { %3538 = vmax.xlane.f32.xlu1 %v3537_v9 }
 0xcf7   : > { %3541 = vmax.xlane.f32.xlu0 %v3540_v47 }
 0xcf9   : > { %3544 = vmax.xlane.f32.xlu1 %v3543_v5  ;;  %v5949_v5 = vld [vmem:[%s7035_s29 + $0x30] sm:$0xff]  }
 0xcfb   : > { %3571 = vadd.xlane.f32.xlu0 %v3570_v12 }
 0xcfd   : > { %3574 = vadd.xlane.f32.xlu1 %v3573_v26 }
 0xcff   : > { %3577 = vadd.xlane.f32.xlu0 %v3576_v13 }
 0xd01   : > { %3580 = vadd.xlane.f32.xlu1 %v3579_v40 }
 0xd80   : > { %v3536_v39 = vpop.xlane.xlu0 %3535 }
 0xd81   : > { %v3550_v7 = vsub.f32 %v3518_v53, %v3536_v39 }
 0xd82   : > { %v3539_v43 = vpop.xlane.xlu1 %3538 }
 0xd83   : > { %v3562_v46 = vmul.f32 1.442695, %v3550_v7  ;;  %v3551_v31 = vsub.f32 %v3519_v15, %v3539_v43 }
 0xd84   : > { %v3542_v6 = vpop.xlane.xlu0 %3541 }
 0xd85   : > { %v3552_v44 = vsub.f32 %v3520_v50, %v3542_v6  ;;  %v3564_v54 = vmul.f32 1.442695, %v3551_v31 }
 0xd86   : > { %v3545_v49 = vpop.xlane.xlu1 %3544 }
 0xd87   : > { %v3566_v24 = vmul.f32 1.442695, %v3552_v44  ;;  %v3553_v30 = vsub.f32 %v3521_v38, %v3545_v49 }
 0xd88   : > { %v3572_v57 = vpop.xlane.xlu0 %3571 }
 0xd89   : > { %6111 = vpow2.f32 %v3566_v24  ;;  %v3568_v18 = vmul.f32 1.442695, %v3553_v30 }
 0xd8a   : > { %6113 = vpow2.f32 %v3562_v46  ;;  %v3575_v45 = vpop.xlane.xlu1 %3574 }
 0xd8b   : > { %6115 = vpow2.f32 %v3568_v18 }
 0xd8c   : > { %6117 = vpow2.f32 %v3564_v54  ;;  %v6215_v54 = vld [vmem:[#allocation14] sm:$0xff] }
 0xd8e   : > { %v3581_v14 = vpop.xlane.xlu1 %3580 }
 0xd8f   : > { %6119 = vrcp.f32 %v3581_v14 }
 0xd90   : > { %6121 = vrcp.f32 %v3575_v45 }
 0xd93   : > { %v6112_v51 = vpop.eup %6111 }
 0xd94   : > { %v7602_v60 = vpop.eup %6113  ;;  %v3588_v2 = vsel %vm1758_vm3, %v6112_v51, 0.0 }
 0xd95   : > { %v6116_v34 = vpop.eup %6115  ;;  %3589 = vadd.xlane.f32.xlu0 %v3588_v2  ;;  %v3582_v37 = vsel %vm1758_vm3, %v7602_v60, 0.0 }
 0xd96   : > { %v3591_v19 = vsel %vm1758_vm3, %v6116_v34, 0.0  ;;  %v6118_v3 = vpop.eup %6117 }
 0xd97   : > { %3592 = vadd.xlane.f32.xlu1 %v3591_v19  ;;  %v3585_v52 = vsel %vm1758_vm3, %v6118_v3, 0.0 }
 0xd99   : > { %3583 = vadd.xlane.f32.xlu0 %v3582_v37  ;;  %v5255_v37 = vld [vmem:[%s824_s30] ss:$0 sm:$0xff] }
 0xda8   : > { %3661 = vrot.lane.b32.xlu1 %v7154_v28, %s6569_s21  ;;  %v3578_v28 = vpop.xlane.xlu0 %3577 }
 0xda9   : > { %6123 = vrcp.f32 %v3578_v28 }
 0xdaa   : > { %6125 = vrcp.f32 %v3572_v57  ;;  %v6216_v57 = vld [vmem:[#allocation14 + $0x10] sm:$0xff] }
 0xdac   : > { %3708 = vrot.lane.b32.xlu1 %v7175_v17, %s6569_s21 }
 0xdaf   : > { %3614 = vrot.lane.b32.xlu0 %v7156_v8, %s6569_s21  ;;  %v6120_v8 = vpop.eup %6119 }
 0xdb0   : > { %v6122_v33 = vpop.eup %6121  ;;  %v3605_v22 = vmul.f32 %v6120_v8, %v6110_v29 }
 0xdb1   : > { %v3603_v63 = vmul.f32 %v6122_v33, %v6106_v1  ;;  %v5950_v1 = vld [vmem:[%s7035_s29 + $0x38] sm:$0xff]  }
 0xdb3   : > { %v6124_v42 = vpop.eup %6123 }
 0xdb4   : > { %v6126_v10 = vpop.eup %6125  ;;  %v3604_v35 = vmul.f32 %v6124_v42, %v6108_v62  ;;  %v6218_v42 = vld [vmem:[#allocation14 + $0x18] sm:$0xff] }
 0xdb6   : > { %v3611_v11 = vpack.c.bf16 %v3605_v22, %v3604_v35  ;;  %v6219_v35 = vld [vmem:[#allocation14 + $0x20] sm:$0xff] }
 0xdd0   : > { %3586 = vadd.xlane.f32.xlu1 %v3585_v52 }
 0xde1   : > { %3755 = vrot.lane.b32.xlu1 %v7171_v48, %s6569_s21  ;;  %v3602_v48 = vmul.f32 %v6126_v10, %v7594_v56 }
 0xde3   : > { %v3610_v20 = vpack.c.bf16 %v3603_v63, %v3602_v48 }
 0xe22   : > { %v3590_v17 = vpop.xlane.xlu0 %3589 }
 0xe24   : > { %v3593_v0 = vpop.xlane.xlu1 %3592 }
 0xe25   : > { %6127 = vrcp.f32 %v3593_v0 }
 0xe26   : > { %v3584_v4 = vpop.xlane.xlu0 %3583  ;;  %6129 = vrcp.f32 %v3590_v17  ;;  %v6217_v17 = vld [vmem:[#allocation14 + $0x8] sm:$0xff] }
 0xe27   : > { %6131 = vrcp.f32 %v3584_v4 }
 0xe28   : > { %v3662_v21 = vpop.permute.xlu1 %3661 }
 0xe29   : > { %5673 = vmatpush3.bf16.msra.mxu1 %v3662_v21 }
 0xe2a   : > { %v3615_v27 = vpop.permute.xlu0 %3614  ;;  %5684 = vmatprep.subr.bf16.mxu1 %v6565_v32 }
 0xe2b   : > { %5667 = vmatpush3.bf16.msra.mxu0 %v3615_v27 }
 0xe2c   : > { %5675 = vmatmul.mubr.msk.bf16.vlgmr.msra.gmra.mrb[80].mxu1 %vm1758_vm3, %v3611_v11  ;;  %5678 = vmatprep.subr.bf16.mxu0 %v6565_v32  ;;  %v3709_v36 = vpop.permute.xlu1 %3708  ;;  %v6220_v11 = vld [vmem:[#allocation14 + $0x30] sm:$0xff] }
 0xe2d   : > { %5686 = vmatprep.mubr.msk.bf16.mxu1 %vm6566_vm1, %v6565_v32 }
 0xe2e   : > { %5669 = vmatmul.mubr.msk.bf16.vlgmr.msra.gmra.mrb[64].mxu0 %vm1758_vm3, %v3610_v20 }
 0xe2f   : > { %5679 = vmatpush3.bf16.msra.mxu0 %v3709_v36  ;;  %5680 = vmatprep.mubr.msk.bf16.mxu0 %vm6566_vm1, %v6565_v32  ;;  %v6128_v53 = vpop.eup %6127 }
 0xe30   : > { %v6130_v16 = vpop.eup %6129  ;;  %v3609_v50 = vmul.f32 %v6128_v53, %v6116_v34  ;;  %5690 = vmatprep.subr.bf16.mxu0 %v5949_v5  ;;  %v6221_v53 = vld [vmem:[#allocation14 + $0x28] sm:$0xff] }
 0xe31   : > { %v3608_v15 = vmul.f32 %v6130_v16, %v6112_v51  ;;  %v6132_v38 = vpop.eup %6131  ;;  %v6222_v16 = vld [vmem:[#allocation14 + $0x38] sm:$0xff] }
 0xe32   : > { %v3606_v9 = vmul.f32 %v6132_v38, %v7602_v60  ;;  %v5951_v38 = vld [vmem:[%s7037_s10] ss:$8 sps:$4 sm:$0xff]  }
 0xe33   : > { %v3613_v25 = vpack.c.bf16 %v3609_v50, %v3608_v15 }
 0xe5d   : > { %v3587_v23 = vpop.xlane.xlu1 %3586 }
 0xe5e   : > { %6133 = vrcp.f32 %v3587_v23 }
 0xe61   : > { %v3756_v41 = vpop.permute.xlu1 %3755 }
 0xe62   : > { %5685 = vmatpush3.bf16.msra.mxu1 %v3756_v41 }
 0xe65   : > { %5687 = vmatmul.mubr.msk.bf16.vlgmr.msra.gmra.mrb[84].mxu1 %vm1758_vm3, %v3613_v25 }
 0xe66   : > { %4188 = vmatprep.mubr.bf16.mxu1 %v6564_v55 }
 0xe68   : > { %v6134_v32 = vpop.eup %6133 }
 0xe69   : > { %v3607_v47 = vmul.f32 %v6134_v32, %v6118_v3  ;;  %v5953_v32 = vld [vmem:[%s7037_s10 + $0x4] ss:$8 sps:$4 sm:$0xff]  }
 0xe6a   : > { %4156 = vmatprep.subr.bf16.mxu1 %v5953_v32 }
 0xe6b   : > { %v3612_v56 = vpack.c.bf16 %v3607_v47, %v3606_v9  ;;  %v5956_v9 = vld [vmem:[%s7037_s10 + $0x14] ss:$8 sps:$4 sm:$0xff]   ;;  %4157 = vmatpush1.bf16.msra.mxu1 %v5951_v38  ;;  %v5954_v47 = vld [vmem:[%s7037_s10 + $0x10] ss:$8 sps:$4 sm:$0xff]  }
 0xe6c   : > { %4158 = vmatprep.subr.bf16.mxu1 %v5956_v9 }
 0xe6d   : > { %5681 = vmatmul.mubr.msk.bf16.vlgmr.msra.gmra.mrb[68].mxu0 %vm1758_vm3, %v3612_v56 }
 0xe6e   : > { %5691 = vmatpush3.bf16.msra.mxu0 %v5949_v5 }
 0xe6f   : > { %5692 = vmatprep.subr.bf16.mxu0 %v5950_v1  ;;  %4159 = vmatpush1.bf16.msra.mxu1 %v5954_v47 }
 0xe72   : > { %5693 = vmatpush3.bf16.msra.mxu0 %v5950_v1 }
 0xeff   : > { %v3701_v12 = vpop.f32.mrb[80].mxu1 }
 0xf00   : > { %v5676_v62 = vpop.f32.mrb[81].mxu1 }
 0xf01   : > { %v3654_v26 = vpop.f32.mrb[64].mxu0  ;;  %v3704_v29 = vpop.f32.mrb[82].mxu1 }
 0xf02   : > { %v3803_v13 = vpack.c.bf16 %v3704_v29, %v3701_v12  ;;  %v5670_v40 = vpop.f32.mrb[65].mxu0  ;;  %v5677_v39 = vpop.f32.mrb[83].mxu1 }
 0xf03   : > { %v3657_v7 = vpop.f32.mrb[66].mxu0 }
 0xf04   : > { %v3802_v43 = vpack.c.bf16 %v3657_v7, %v3654_v26  ;;  %v5671_v6 = vpop.f32.mrb[67].mxu0 }
 0xf06   : > { %5694 = vmatprep.mubr.msk.bf16.mxu0 %vm1561_vm2, %v3802_v43 }
 0xf07   : > { %5695 = vmatmul.mubr.msk.bf16.vlgmr.msra.gmra.mrb[44].mxu0 %vm1561_vm2, %v3803_v13 }
 0xf38   : > { %v3795_v44 = vpop.f32.mrb[84].mxu1 }
 0xf39   : > { %v5688_v46 = vpop.f32.mrb[85].mxu1 }
 0xf3a   : > { %v3798_v49 = vpop.f32.mrb[86].mxu1 }
 0xf3b   : > { %v3805_v24 = vpack.c.bf16 %v3798_v49, %v3795_v44  ;;  %v5689_v30 = vpop.f32.mrb[87].mxu1 }
 0xf3c   : > { %v5957_v30 = vld [vmem:[%s7037_s10 + $0x20] ss:$8 sps:$4 sm:$0xff]  }
 0xf40   : > { %v3748_v18 = vpop.f32.mrb[68].mxu0 }
 0xf41   : > { %v5682_v51 = vpop.f32.mrb[69].mxu0 }
 0xf42   : > { %v3751_v60 = vpop.f32.mrb[70].mxu0  ;;  %v5960_v51 = vld [vmem:[%s7037_s10 + $0x30] ss:$8 sps:$4 sm:$0xff]  }
 0xf43   : > { %v3804_v2 = vpack.c.bf16 %v3751_v60, %v3748_v18  ;;  %v5683_v34 = vpop.f32.mrb[71].mxu0  ;;  %v5962_v18 = vld [vmem:[%s7037_s10 + $0x34] ss:$8 sps:$4 sm:$0xff]   ;;  %v5965_v60 = vld [vmem:[%s7037_s10 + $0x44] ss:$8 sps:$4 sm:$0xff]  }
 0xf44   : > { %v5968_v34 = vld [vmem:[%s7037_s10 + $0x54] ss:$8 sps:$4 sm:$0xff]  }
 0xf45   : > { %5698 = vmatprep.mubr.msk.bf16.mxu0 %vm1561_vm2, %v3804_v2  ;;  %v5963_v2 = vld [vmem:[%s7037_s10 + $0x40] ss:$8 sps:$4 sm:$0xff]  }
 0xf46   : > { %5699 = vmatmul.mubr.msk.bf16.gmra.mrb[48].mxu0 %vm1561_vm2, %v3805_v24  ;;  %v5959_v24 = vld [vmem:[%s7037_s10 + $0x24] ss:$8 sps:$4 sm:$0xff]  }
 0xf47   : > { %4160 = vmatprep.subr.bf16.mxu1 %v5959_v24 }
 0xf48   : > { %4161 = vmatpush1.bf16.msra.mxu1 %v5957_v30 }
 0xf49   : > { %4162 = vmatprep.subr.bf16.mxu1 %v5962_v18 }
 0xf4c   : > { %4163 = vmatpush1.bf16.msra.mxu1 %v5960_v51 }
 0xf4d   : > { %4164 = vmatprep.subr.bf16.mxu1 %v5965_v60 }
 0xf50   : > { %4165 = vmatpush1.bf16.msra.mxu1 %v5963_v2 }
 0xf51   : > { %4166 = vmatprep.subr.bf16.mxu1 %v5968_v34 }
 0xfda   : > { %v5696_v19 = vpop.f32.mrb[44].mxu0 }
 0xfdb   : > { %v3864_v31 = vpop.f32.mrb[45].mxu0  ;;  %v3905_v14 = vadd.f32 %v6216_v57, %v5696_v19  ;;  %v5966_v19 = vld [vmem:[%s7037_s10 + $0x50] ss:$8 sps:$4 sm:$0xff]  }
 0xfdc   : > { %v3903_v3 = vadd.f32 %v6215_v54, %v3864_v31  ;;  %v5697_v52 = vpop.f32.mrb[46].mxu0  ;;  %4167 = vmatpush1.bf16.msra.mxu1 %v5966_v19  ;;  %v5969_v31 = vld [vmem:[%s7037_s10 + $0x60] ss:$8 sps:$4 sm:$0xff]   ;;  %v5974_v54 = vld [vmem:[%s7037_s10 + $0x74] ss:$8 sps:$4 sm:$0xff]  }
 0xfdd   : > { %v3867_v45 = vpop.f32.mrb[47].mxu0  ;;  %v7646_v0 = vadd.f32 %v5255_v37, %v3905_v14  ;;  %v3906_v22 = vadd.f32 %v6218_v42, %v5697_v52 }
 0xfde   : > { %v7641_v28 = vadd.f32 %v5255_v37, %v3903_v3  ;;  %v3904_v8 = vadd.f32 %v6217_v17, %v3867_v45  ;;  %v5972_v3 = vld [vmem:[%s7037_s10 + $0x70] ss:$8 sps:$4 sm:$0xff]  }
 0xfdf   : > { %v7650_v4 = vadd.f32 %v5255_v37, %v3906_v22 }
 0xfe0   : > { %v7643_v33 = vadd.f32 %v5255_v37, %v3904_v8  ;;  %3928 = vadd.xlane.f32.xlu0 %v7641_v28 }
 0xfe2   : > { %3930 = vadd.xlane.f32.xlu1 %v7643_v33 }
 0xfe4   : > { %3932 = vadd.xlane.f32.xlu0 %v7646_v0 }
 0xfe8   : > { %3934 = vadd.xlane.f32.xlu0 %v7650_v4 }
0x1019   : > { %v5700_v10 = vpop.f32.mrb[48].mxu0 }
0x101a   : > { %v3880_v63 = vpop.f32.mrb[49].mxu0  ;;  %v3909_v20 = vadd.f32 %v6220_v11, %v5700_v10 }
0x101b   : > { %v3907_v21 = vadd.f32 %v6219_v35, %v3880_v63  ;;  %v5701_v48 = vpop.f32.mrb[50].mxu0 }
0x101c   : > { %v3883_v27 = vpop.f32.mrb[51].mxu0  ;;  %v3910_v50 = vadd.f32 %v6222_v16, %v5701_v48  ;;  %v7658_v41 = vadd.f32 %v5255_v37, %v3909_v20 }
0x101d   : > { %v7653_v36 = vadd.f32 %v5255_v37, %v3907_v21  ;;  %v3908_v23 = vadd.f32 %v6221_v53, %v3883_v27 }
0x101e   : > { %v7661_v25 = vadd.f32 %v5255_v37, %v3910_v50 }
0x101f   : > { %v7655_v15 = vadd.f32 %v5255_v37, %v3908_v23  ;;  %3936 = vadd.xlane.f32.xlu0 %v7653_v36  ;;  %v5971_v37 = vld [vmem:[%s7037_s10 + $0x64] ss:$8 sps:$4 sm:$0xff]  }
0x1020   : > { %4168 = vmatprep.subr.bf16.mxu1 %v5971_v37 }
0x1021   : > { %3938 = vadd.xlane.f32.xlu1 %v7655_v15  ;;  %4169 = vmatpush1.bf16.msra.mxu1 %v5969_v31 }
0x1022   : > { %4170 = vmatprep.subr.bf16.mxu1 %v5974_v54 }
0x1023   : > { %3940 = vadd.xlane.f32.xlu0 %v7658_v41 }
0x1025   : > { %3942 = vadd.xlane.f32.xlu1 %v7661_v25  ;;  %4171 = vmatpush1.bf16.msra.mxu1 %v5972_v3 }
0x106d   : > { %v3929_v56 = vpop.xlane.xlu0 %3928 }
0x106e   : > { %v3944_v5 = vmul.f32 0.0078125, %v3929_v56 }
0x106f   : > { %v3931_v1 = vpop.xlane.xlu1 %3930 }
0x1070   : > { %v7670_v12 = vsub.f32 %v7641_v28, %v3944_v5  ;;  %v3945_v62 = vmul.f32 0.0078125, %v3931_v1 }
0x1071   : > { %v3933_v26 = vpop.xlane.xlu0 %3932 }
0x1072   : > { %v7673_v29 = vsub.f32 %v7643_v33, %v3945_v62  ;;  %v3946_v13 = vmul.f32 0.0078125, %v3933_v26  ;;  %v3960_v40 = vmul.f32 %v7670_v12, %v7670_v12 }
0x1074   : > { %v7678_v39 = vsub.f32 %v7646_v0, %v3946_v13  ;;  %3968 = vadd.xlane.f32.xlu0 %v3960_v40  ;;  %v3961_v7 = vmul.f32 %v7673_v29, %v7673_v29  ;;  %v5256_v13 = vld [vmem:[%s827_s15] ss:$0 sm:$0xff] }
0x1075   : > { %v3935_v43 = vpop.xlane.xlu0 %3934 }
0x1076   : > { %v3947_v6 = vmul.f32 0.0078125, %v3935_v43  ;;  %3970 = vadd.xlane.f32.xlu1 %v3961_v7  ;;  %v3962_v44 = vmul.f32 %v7678_v39, %v7678_v39 }
0x1078   : > { %v7685_v46 = vsub.f32 %v7650_v4, %v3947_v6  ;;  %3972 = vadd.xlane.f32.xlu0 %v3962_v44 }
0x107a   : > { %v3963_v49 = vmul.f32 %v7685_v46, %v7685_v46 }
0x107c   : > { %3974 = vadd.xlane.f32.xlu1 %v3963_v49  ;;  %v5257_v49 = vld [vmem:[%s830_s1] ss:$0 sm:$0xff] }
0x10ac   : > { %v3937_v52 = vpop.xlane.xlu0 %3936 }
0x10ad   : > { %v3948_v45 = vmul.f32 0.0078125, %v3937_v52 }
0x10ae   : > { %v3939_v57 = vpop.xlane.xlu1 %3938 }
0x10af   : > { %v7702_v14 = vsub.f32 %v7653_v36, %v3948_v45  ;;  %v3949_v17 = vmul.f32 0.0078125, %v3939_v57 }
0x10b0   : > { %v3941_v8 = vpop.xlane.xlu0 %3940 }
0x10b1   : > { %v7705_v42 = vsub.f32 %v7655_v15, %v3949_v17  ;;  %v3950_v22 = vmul.f32 0.0078125, %v3941_v8  ;;  %v3964_v10 = vmul.f32 %v7702_v14, %v7702_v14 }
0x10b2   : > { %v3943_v63 = vpop.xlane.xlu1 %3942 }
0x10b3   : > { %v7710_v35 = vsub.f32 %v7658_v41, %v3950_v22  ;;  %v3951_v21 = vmul.f32 0.0078125, %v3943_v63  ;;  %3976 = vadd.xlane.f32.xlu0 %v3964_v10  ;;  %v3965_v48 = vmul.f32 %v7705_v42, %v7705_v42 }
0x10b5   : > { %v7715_v27 = vsub.f32 %v7661_v25, %v3951_v21  ;;  %3978 = vadd.xlane.f32.xlu1 %v3965_v48  ;;  %v3966_v11 = vmul.f32 %v7710_v35, %v7710_v35 }
0x10b7   : > { %3980 = vadd.xlane.f32.xlu0 %v3966_v11  ;;  %v3967_v20 = vmul.f32 %v7715_v27, %v7715_v27 }
0x10b9   : > { %3982 = vadd.xlane.f32.xlu1 %v3967_v20 }
0x1101   : > { %v3969_v53 = vpop.xlane.xlu0 %3968 }
0x1102   : > { %v3984_v23 = vmul.f32 0.0078125, %v3969_v53 }
0x1103   : > { %v3971_v16 = vpop.xlane.xlu1 %3970 }
0x1104   : > { %v3992_v50 = vadd.f32 1e-05, %v3984_v23  ;;  %v3985_v38 = vmul.f32 0.0078125, %v3971_v16 }
0x1105   : > { %v3973_v32 = vpop.xlane.xlu0 %3972 }
0x1106   : > { %6135 = vrsqrt.f32 %v3992_v50  ;;  %v3993_v9 = vadd.f32 1e-05, %v3985_v38  ;;  %v3986_v47 = vmul.f32 0.0078125, %v3973_v32 }
0x1108   : > { %6137 = vrsqrt.f32 %v3993_v9  ;;  %v3994_v56 = vadd.f32 1e-05, %v3986_v47 }
0x1109   : > { %v3975_v5 = vpop.xlane.xlu1 %3974 }
0x110a   : > { %6139 = vrsqrt.f32 %v3994_v56  ;;  %v3987_v1 = vmul.f32 0.0078125, %v3975_v5 }
0x110c   : > { %v3995_v62 = vadd.f32 1e-05, %v3987_v1 }
0x110e   : > { %6141 = vrsqrt.f32 %v3995_v62 }
0x1110   : > { %v6136_v26 = vpop.eup %6135 }
0x1111   : > { %v4008_v40 = vmul.f32 %v6136_v26, %v7670_v12  ;;  %v5975_v26 = vld [vmem:[%s7039_s9 + $0x40] sm:$0xff]  }
0x1112   : > { %v6138_v7 = vpop.eup %6137  ;;  %5398 = vmatprep.subr.bf16.mxu0 %v5975_v26 }
0x1113   : > { %v4009_v43 = vmul.f32 %v6138_v7, %v7673_v29  ;;  %v4022_v6 = vmul.f32 %v5256_v13, %v4008_v40  ;;  %v5978_v40 = vld [vmem:[%s7039_s9 + $0x8] sm:$0xff]   ;;  %v5981_v7 = vld [vmem:[%s7039_s9 + $0x58] sm:$0xff]  }
0x1114   : > { %v6140_v44 = vpop.eup %6139 }
0x1115   : > { %v4023_v24 = vmul.f32 %v5256_v13, %v4009_v43  ;;  %v4036_v30 = vadd.f32 %v5257_v49, %v4022_v6  ;;  %v4010_v51 = vmul.f32 %v6140_v44, %v7678_v39  ;;  %v5982_v43 = vld [vmem:[%s7039_s9 + $0x18] sm:$0xff]   ;;  %v5983_v6 = vld [vmem:[%s7039_s9 + $0x60] sm:$0xff]  }
0x1116   : > { %v5984_v44 = vld [vmem:[%s7039_s9 + $0x20] sm:$0xff]  }
0x1117   : > { %v4037_v18 = vadd.f32 %v5257_v49, %v4023_v24  ;;  %v4024_v12 = vmul.f32 %v5256_v13, %v4010_v51  ;;  %v5986_v24 = vld [vmem:[%s7039_s9 + $0x28] sm:$0xff]   ;;  %v5989_v51 = vld [vmem:[%s7039_s9 + $0x78] sm:$0xff]  }
0x1118   : > { %v6142_v60 = vpop.eup %6141 }
0x1119   : > { %v4044_v2 = vpack.c.bf16 %v4037_v18, %v4036_v30  ;;  %v4011_v34 = vmul.f32 %v6142_v60, %v7685_v46  ;;  %v4038_v37 = vadd.f32 %v5257_v49, %v4024_v12  ;;  %v5987_v30 = vld [vmem:[%s7039_s9 + $0x70] sm:$0xff]   ;;  %v5990_v60 = vld [vmem:[%s7039_s9 + $0x38] sm:$0xff]  }
0x111a   : > { %v5988_v18 = vld [vmem:[%s7039_s9 + $0x30] sm:$0xff]  }
0x111b   : > { %4189 = vmatmul.mubr.bf16.vlgmr.msra.gmra.mrb[88].mxu1 %v4044_v2  ;;  %v4025_v19 = vmul.f32 %v5256_v13, %v4011_v34  ;;  %v4064_v2 = vld [vmem:[%s7029_s12] sm:$0x3] }
0x111c   : > { %4198 = vmatprep.mubr.bf16.mxu1 %v6564_v55  ;;  %v7761_v34 = vrot.slane %v4064_v2, %v1254_v59  ;;  %v7765_v12 = vrot.slane %v4064_v2, %v1258_v61 }
0x111d   : > { %v4039_v29 = vadd.f32 %v5257_v49, %v4025_v19 }
0x111f   : > { %v4045_v31 = vpack.c.bf16 %v4039_v29, %v4038_v37 }
0x1123   : > { %4199 = vmatmul.mubr.bf16.gmra.mrb[92].mxu1 %v4045_v31 }
0x1124   : > { %4208 = vmatprep.mubr.bf16.mxu1 %v6564_v55 }
0x1140   : > { %v3977_v54 = vpop.xlane.xlu0 %3976 }
0x1141   : > { %v3988_v3 = vmul.f32 0.0078125, %v3977_v54 }
0x1142   : > { %v3979_v52 = vpop.xlane.xlu1 %3978 }
0x1143   : > { %v3996_v45 = vadd.f32 1e-05, %v3988_v3  ;;  %v3989_v39 = vmul.f32 0.0078125, %v3979_v52 }
0x1144   : > { %v3981_v57 = vpop.xlane.xlu0 %3980 }
0x1145   : > { %6143 = vrsqrt.f32 %v3996_v45  ;;  %v3997_v17 = vadd.f32 1e-05, %v3989_v39  ;;  %v3990_v46 = vmul.f32 0.0078125, %v3981_v57 }
0x1146   : > { %v3983_v8 = vpop.xlane.xlu1 %3982 }
0x1147   : > { %6145 = vrsqrt.f32 %v3997_v17  ;;  %v3998_v22 = vadd.f32 1e-05, %v3990_v46  ;;  %v3991_v10 = vmul.f32 0.0078125, %v3983_v8 }
0x1149   : > { %6147 = vrsqrt.f32 %v3998_v22  ;;  %v3999_v63 = vadd.f32 1e-05, %v3991_v10 }
0x114b   : > { %6149 = vrsqrt.f32 %v3999_v63 }
0x114f   : > { %v6144_v21 = vpop.eup %6143 }
0x1150   : > { %v4012_v48 = vmul.f32 %v6144_v21, %v7702_v14 }
0x1151   : > { %v6146_v11 = vpop.eup %6145 }
0x1152   : > { %v4013_v20 = vmul.f32 %v6146_v11, %v7705_v42  ;;  %v4026_v53 = vmul.f32 %v5256_v13, %v4012_v48 }
0x1153   : > { %v6148_v23 = vpop.eup %6147 }
0x1154   : > { %v4027_v16 = vmul.f32 %v5256_v13, %v4013_v20  ;;  %v4040_v38 = vadd.f32 %v5257_v49, %v4026_v53  ;;  %v4014_v9 = vmul.f32 %v6148_v23, %v7710_v35  ;;  %v5976_v35 = vld [vmem:[%s7039_s9] sm:$0xff]  }
0x1155   : > { %v6150_v50 = vpop.eup %6149  ;;  %5399 = vmatpush3.bf16.msra.mxu0 %v5976_v35 }
0x1156   : > { %v4041_v32 = vadd.f32 %v5257_v49, %v4027_v16  ;;  %v4015_v47 = vmul.f32 %v6150_v50, %v7715_v27  ;;  %v4028_v14 = vmul.f32 %v5256_v13, %v4014_v9  ;;  %v5977_v27 = vld [vmem:[%s7039_s9 + $0x48] sm:$0xff]  }
0x1157   : > { %5400 = vmatprep.subr.bf16.mxu0 %v5977_v27 }
0x1158   : > { %v4046_v56 = vpack.c.bf16 %v4041_v32, %v4040_v38  ;;  %v4029_v5 = vmul.f32 %v5256_v13, %v4015_v47  ;;  %v4042_v1 = vadd.f32 %v5257_v49, %v4028_v14  ;;  %v5979_v13 = vld [vmem:[%s7039_s9 + $0x50] sm:$0xff]  }
0x1159   : > { %5401 = vmatpush3.bf16.msra.mxu0 %v5978_v40 }
0x115a   : > { %4209 = vmatmul.mubr.bf16.gmra.mrb[96].mxu1 %v4046_v56  ;;  %v4043_v42 = vadd.f32 %v5257_v49, %v4029_v5  ;;  %5402 = vmatprep.subr.bf16.mxu0 %v5979_v13  ;;  %v5985_v49 = vld [vmem:[%s7039_s9 + $0x68] sm:$0xff]  }
0x115b   : > { %4218 = vmatprep.mubr.bf16.mxu1 %v6564_v55  ;;  %v5980_v55 = vld [vmem:[%s7039_s9 + $0x10] sm:$0xff]  }
0x115c   : > { %v4047_v62 = vpack.c.bf16 %v4043_v42, %v4042_v1 }
0x115d   : > { %5403 = vmatpush3.bf16.msra.mxu0 %v5980_v55 }
0x115e   : > { %5404 = vmatprep.subr.bf16.mxu0 %v5981_v7 }
0x1161   : > { %5405 = vmatpush3.bf16.msra.mxu0 %v5982_v43 }
0x1162   : > { %4219 = vmatmul.mubr.bf16.gmra.mrb[100].mxu1 %v4047_v62  ;;  %5406 = vmatprep.subr.bf16.mxu0 %v5983_v6 }
0x1165   : > { %5407 = vmatpush3.bf16.msra.mxu0 %v5984_v44 }
0x1166   : > { %5408 = vmatprep.subr.bf16.mxu0 %v5985_v49 }
0x1169   : > { %5409 = vmatpush3.bf16.msra.mxu0 %v5986_v24 }
0x116a   : > { %5410 = vmatprep.subr.bf16.mxu0 %v5987_v30 }
0x116d   : > { %5411 = vmatpush3.bf16.msra.mxu0 %v5988_v18 }
0x116e   : > { %5412 = vmatprep.subr.bf16.mxu0 %v5989_v51 }
0x1171   : > { %5413 = vmatpush3.bf16.msra.mxu0 %v5990_v60 }
0x11ee   : > { %v4190_v19 = vpop.f32.mrb[88].mxu1 }
0x11ef   : > { %v4191_v29 = vadd.f32 %v4190_v19, %v7761_v34  ;;  %v4192_v37 = vpop.f32.mrb[89].mxu1 }
0x11f0   : > { %v7769_v31 = vadd.f32 %v4192_v37, %v7765_v12  ;;  %v4194_v54 = vpop.f32.mrb[90].mxu1 }
0x11f1   : > { %v7771_v3 = vmul.f32 0.70710677, %v4191_v29  ;;  %v7774_v52 = vadd.f32 %v4194_v54, %v7761_v34  ;;  %v4196_v45 = vpop.f32.mrb[91].mxu1  ;;  %v7819_v43 = vmul.f32 0.5, %v4191_v29 }
0x11f2   : > { %v7777_v59 = vmul.f32 0.70710677, %v7769_v31  ;;  %v7780_v58 = vadd.f32 %v4196_v45, %v7765_v12 }
0x11f3   : > { %v4261_v61 = vand.u32 2147483647, %v7771_v3  ;;  %v7784_v39 = vmul.f32 0.70710677, %v7774_v52  ;;  %vm4565_vm4 = vcmp.ge.f32.partialorder %v7771_v3, 0.0 }
0x11f4   : > { %v4262_v57 = vand.u32 2147483647, %v7777_v59  ;;  %v7788_v17 = vmul.f32 0.70710677, %v7780_v58  ;;  %vm4566_vm5 = vcmp.ge.f32.partialorder %v7777_v59, 0.0 }
0x11f5   : > { %v4277_v46 = vmul.f32 0.3275911, %v4261_v61  ;;  %v4263_v8 = vand.u32 2147483647, %v7784_v39  ;;  %v4469_v14 = vsub.f32 0.0, %v4261_v61  ;;  %vm4567_vm6 = vcmp.ge.f32.partialorder %v7784_v39, 0.0 }
0x11f6   : > { %v4278_v22 = vmul.f32 0.3275911, %v4262_v57  ;;  %v4264_v10 = vand.u32 2147483647, %v7788_v17  ;;  %v4200_v48 = vpop.f32.mrb[92].mxu1  ;;  %v4470_v62 = vsub.f32 0.0, %v4262_v57 }
0x11f7   : > { %v4293_v63 = vadd.f32 1.0, %v4277_v46  ;;  %v4279_v21 = vmul.f32 0.3275911, %v4263_v8  ;;  %v4202_v53 = vpop.f32.mrb[93].mxu1  ;;  %v7793_v32 = vadd.f32 %v4200_v48, %v7761_v34  ;;  %v4471_v35 = vsub.f32 0.0, %v4263_v8 }
0x11f8   : > { %v4294_v11 = vadd.f32 1.0, %v4278_v22  ;;  %v4280_v20 = vmul.f32 0.3275911, %v4264_v10  ;;  %v4204_v16 = vpop.f32.mrb[94].mxu1  ;;  %v7796_v9 = vadd.f32 %v4202_v53, %v7765_v12  ;;  %v4472_v27 = vsub.f32 0.0, %v4264_v10 }
0x11f9   : > { %6151 = vrcp.f32 %v4293_v63  ;;  %v4295_v23 = vadd.f32 1.0, %v4279_v21  ;;  %v4206_v50 = vpop.f32.mrb[95].mxu1  ;;  %v7799_v47 = vadd.f32 %v4204_v16, %v7761_v34  ;;  %v7802_v56 = vmul.f32 0.70710677, %v7793_v32 }
0x11fa   : > { %6153 = vrcp.f32 %v4294_v11  ;;  %v4296_v38 = vadd.f32 1.0, %v4280_v20  ;;  %v7805_v5 = vadd.f32 %v4206_v50, %v7765_v12  ;;  %v7808_v42 = vmul.f32 0.70710677, %v7796_v9 }
0x11fb   : > { %6155 = vrcp.f32 %v4295_v23  ;;  %v7811_v1 = vmul.f32 0.70710677, %v7799_v47  ;;  %v4265_v26 = vand.u32 2147483647, %v7802_v56  ;;  %v4485_v6 = vmul.f32 %v4469_v14, %v4261_v61 }
0x11fc   : > { %6157 = vrcp.f32 %v4296_v38  ;;  %v4266_v40 = vand.u32 2147483647, %v7808_v42  ;;  %v7817_v7 = vmul.f32 0.70710677, %v7805_v5  ;;  %v4486_v30 = vmul.f32 %v4470_v62, %v4262_v57 }
0x11fd   : > { %v4267_v13 = vand.u32 2147483647, %v7811_v1  ;;  %v4281_v55 = vmul.f32 0.3275911, %v4265_v26  ;;  %v4473_v51 = vsub.f32 0.0, %v4265_v26  ;;  %v4487_v37 = vmul.f32 %v4471_v35, %v4263_v8 }
0x11fe   : > { %v4282_v44 = vmul.f32 0.3275911, %v4266_v40  ;;  %v4268_v60 = vand.u32 2147483647, %v7817_v7  ;;  %v4488_v54 = vmul.f32 %v4472_v27, %v4264_v10  ;;  %v4474_v61 = vsub.f32 0.0, %v4266_v40 }
0x11ff   : > { %v4283_v49 = vmul.f32 0.3275911, %v4267_v13  ;;  %v4297_v18 = vadd.f32 1.0, %v4281_v55  ;;  %v4501_v63 = vmul.f32 1.442695, %v4485_v6  ;;  %v4489_v20 = vmul.f32 %v4473_v51, %v4265_v26 }
0x1200   : > { %v4298_v45 = vadd.f32 1.0, %v4282_v44  ;;  %v4284_v57 = vmul.f32 0.3275911, %v4268_v60  ;;  %v4503_v11 = vmul.f32 1.442695, %v4486_v30  ;;  %v4475_v53 = vsub.f32 0.0, %v4267_v13 }
0x1201   : > { %6159 = vrcp.f32 %v4297_v18  ;;  %v4299_v46 = vadd.f32 1.0, %v4283_v49  ;;  %v4505_v10 = vmul.f32 1.442695, %v4487_v37  ;;  %v4507_v14 = vmul.f32 1.442695, %v4488_v54 }
0x1202   : > { %6161 = vrcp.f32 %v4298_v45  ;;  %v4300_v16 = vadd.f32 1.0, %v4284_v57  ;;  %v4490_v62 = vmul.f32 %v4474_v61, %v4266_v40  ;;  %v4509_v6 = vmul.f32 1.442695, %v4489_v20 }
0x1203   : > { %v7821_v24 = vpop.eup %6151  ;;  %6163 = vrcp.f32 %v4299_v46  ;;  %v4491_v44 = vmul.f32 %v4475_v53, %v4267_v13  ;;  %v7843_v13 = vmul.f32 0.5, %v7769_v31  ;;  %vm4568_vm7 = vcmp.ge.f32.partialorder %v7788_v17, 0.0 }
0x1204   : > { %v7824_v2 = vpop.eup %6153  ;;  %v4325_v19 = vmul.f32 1.0614054, %v7821_v24  ;;  %6165 = vpow2.f32 %v4501_v63  ;;  %v4511_v40 = vmul.f32 1.442695, %v4490_v62  ;;  %v7857_v62 = vmul.f32 0.5, %v7774_v52 }
0x1205   : > { %v4326_v29 = vmul.f32 1.0614054, %v7824_v2  ;;  %v7828_v21 = vpop.eup %6155  ;;  %6167 = vrcp.f32 %v4300_v16  ;;  %v4513_v46 = vmul.f32 1.442695, %v4491_v44  ;;  %vm4569_vm8 = vcmp.ge.f32.partialorder %v7802_v56, 0.0 }
0x1206   : > { %v4341_v22 = vadd.f32 -1.4531521, %v4325_v19  ;;  %v4327_v8 = vmul.f32 1.0614054, %v7828_v21  ;;  %v7832_v50 = vpop.eup %6157  ;;  %6169 = vpow2.f32 %v4503_v11  ;;  %v4476_v19 = vsub.f32 0.0, %v4268_v60 }
0x1207   : > { %v4342_v48 = vadd.f32 -1.4531521, %v4326_v29  ;;  %v4328_v55 = vmul.f32 1.0614054, %v7832_v50  ;;  %6171 = vpow2.f32 %v4505_v10  ;;  %vm4571_vm9 = vcmp.ge.f32.partialorder %v7811_v1, 0.0 }
0x1208   : > { %v4357_v23 = vmul.f32 %v7821_v24, %v4341_v22  ;;  %v4343_v27 = vadd.f32 -1.4531521, %v4327_v8  ;;  %6173 = vpow2.f32 %v4507_v14  ;;  %vm4570_vm10 = vcmp.ge.f32.partialorder %v7808_v42, 0.0 }
0x1209   : > { %v4358_v38 = vmul.f32 %v7824_v2, %v4342_v48  ;;  %v4344_v18 = vadd.f32 -1.4531521, %v4328_v55  ;;  %6175 = vpow2.f32 %v4509_v6  ;;  %v4235_v56 = vmul.f32 0.5, %v7799_v47 }
0x120a   : > { %v4373_v35 = vadd.f32 1.4214138, %v4357_v23  ;;  %v4359_v30 = vmul.f32 %v7828_v21, %v4343_v27  ;;  %6177 = vpow2.f32 %v4511_v40  ;;  %v4492_v23 = vmul.f32 %v4476_v19, %v4268_v60 }
0x120b   : > { %v4374_v26 = vadd.f32 1.4214138, %v4358_v38  ;;  %v4360_v45 = vmul.f32 %v7832_v50, %v4344_v18  ;;  %v7840_v29 = vpop.eup %6159  ;;  %6179 = vpow2.f32 %v4513_v46  ;;  %vm4572_vm11 = vcmp.ge.f32.partialorder %v7817_v7, 0.0 }
0x120c   : > { %v4389_v49 = vmul.f32 %v7821_v24, %v4373_v35  ;;  %v4375_v54 = vadd.f32 1.4214138, %v4359_v30  ;;  %v7845_v22 = vpop.eup %6161  ;;  %v4329_v11 = vmul.f32 1.0614054, %v7840_v29  ;;  %v4515_v18 = vmul.f32 1.442695, %v4492_v23 }
0x120d   : > { %v4390_v51 = vmul.f32 %v7824_v2, %v4374_v26  ;;  %v4376_v48 = vadd.f32 1.4214138, %v4360_v45  ;;  %v4330_v53 = vmul.f32 1.0614054, %v7845_v22  ;;  %v7853_v38 = vpop.eup %6163 }
0x120e   : > { %v4405_v37 = vadd.f32 -0.28449672, %v4389_v49  ;;  %v4391_v57 = vmul.f32 %v7828_v21, %v4375_v54  ;;  %v4345_v16 = vadd.f32 -1.4531521, %v4329_v11  ;;  %v6166_v27 = vpop.eup %6165  ;;  %v4331_v52 = vmul.f32 1.0614054, %v7853_v38 }
0x120f   : > { %v4406_v61 = vadd.f32 -0.28449672, %v4390_v51  ;;  %v4392_v10 = vmul.f32 %v7832_v50, %v4376_v48  ;;  %v4346_v35 = vadd.f32 -1.4531521, %v4330_v53  ;;  %v7863_v44 = vpop.eup %6167  ;;  %6181 = vpow2.f32 %v4515_v18 }
0x1210   : > { %v4421_v63 = vmul.f32 %v7821_v24, %v4405_v37  ;;  %v4407_v8 = vadd.f32 -0.28449672, %v4391_v57  ;;  %v4361_v6 = vmul.f32 %v7840_v29, %v4345_v16  ;;  %v6170_v51 = vpop.eup %6169  ;;  %v4347_v46 = vadd.f32 -1.4531521, %v4331_v52 }
0x1211   : > { %v4422_v20 = vmul.f32 %v7824_v2, %v4406_v61  ;;  %v4408_v26 = vadd.f32 -0.28449672, %v4392_v10  ;;  %v4362_v30 = vmul.f32 %v7845_v22, %v4346_v35  ;;  %v6172_v54 = vpop.eup %6171 }
0x1212   : > { %v4437_v31 = vadd.f32 0.2548296, %v4421_v63  ;;  %v4423_v60 = vmul.f32 %v7828_v21, %v4407_v8  ;;  %v4377_v37 = vadd.f32 1.4214138, %v4361_v6  ;;  %v4332_v63 = vmul.f32 1.0614054, %v7863_v44 }
0x1213   : > { %v4438_v14 = vadd.f32 0.2548296, %v4422_v20  ;;  %v4378_v61 = vadd.f32 1.4214138, %v4362_v30  ;;  %v4363_v8 = vmul.f32 %v7853_v38, %v4347_v46 }
0x1214   : > { %v4453_v55 = vmul.f32 %v7821_v24, %v4437_v31  ;;  %v4439_v19 = vadd.f32 0.2548296, %v4423_v60  ;;  %v4424_v24 = vmul.f32 %v7832_v50, %v4408_v26  ;;  %v4393_v20 = vmul.f32 %v7840_v29, %v4377_v37 }
0x1215   : > { %v4454_v49 = vmul.f32 %v7824_v2, %v4438_v14  ;;  %v6174_v2 = vpop.eup %6173  ;;  %v4394_v31 = vmul.f32 %v7845_v22, %v4378_v61  ;;  %v4348_v10 = vadd.f32 -1.4531521, %v4332_v63  ;;  %v4379_v6 = vadd.f32 1.4214138, %v4363_v8 }
0x1216   : > { %v4533_v40 = vmul.f32 %v6166_v27, %v4453_v55  ;;  %v4455_v48 = vmul.f32 %v7828_v21, %v4439_v19  ;;  %v4440_v11 = vadd.f32 0.2548296, %v4424_v24  ;;  %v6176_v53 = vpop.eup %6175  ;;  %v4409_v27 = vadd.f32 -0.28449672, %v4393_v20 }
0x1217   : > { %v4534_v45 = vmul.f32 %v6170_v51, %v4454_v49  ;;  %v6178_v55 = vpop.eup %6177  ;;  %v4410_v26 = vadd.f32 -0.28449672, %v4394_v31  ;;  %v4364_v21 = vmul.f32 %v7863_v44, %v4348_v10  ;;  %v4395_v24 = vmul.f32 %v7853_v38, %v4379_v6 }
0x1218   : > { %v4549_v57 = vsub.f32 1.0, %v4533_v40  ;;  %v4535_v14 = vmul.f32 %v6172_v54, %v4455_v48  ;;  %v4456_v35 = vmul.f32 %v7832_v50, %v4440_v11  ;;  %v4425_v51 = vmul.f32 %v7840_v29, %v4409_v27  ;;  %v6180_v40 = vpop.eup %6179 }
0x1219   : > { %v4550_v23 = vsub.f32 1.0, %v4534_v45  ;;  %v4426_v50 = vmul.f32 %v7845_v22, %v4410_v26  ;;  %v4411_v46 = vadd.f32 -0.28449672, %v4395_v24  ;;  %v4380_v63 = vadd.f32 1.4214138, %v4364_v21 }
0x121a   : > { %v4581_v16 = vsub.f32 0.0, %v4549_v57  ;;  %v4551_v30 = vsub.f32 1.0, %v4535_v14  ;;  %v4536_v52 = vmul.f32 %v6174_v2, %v4456_v35  ;;  %v4441_v61 = vadd.f32 0.2548296, %v4425_v51 }
0x121b   : > { %v4582_v60 = vsub.f32 0.0, %v4550_v23  ;;  %v4442_v3 = vadd.f32 0.2548296, %v4426_v50  ;;  %v4396_v31 = vmul.f32 %v7863_v44, %v4380_v63  ;;  %v4232_v10 = vmul.f32 0.5, %v7780_v58 }
0x121c   : > { %v4597_v49 = vsel %vm4565_vm4, %v4549_v57, %v4581_v16  ;;  %v4583_v54 = vsub.f32 0.0, %v4551_v30  ;;  %v4552_v45 = vsub.f32 1.0, %v4536_v52  ;;  %v4457_v48 = vmul.f32 %v7840_v29, %v4441_v61 }
0x121d   : > { %v4598_v19 = vsel %vm4566_vm5, %v4550_v23, %v4582_v60  ;;  %v4613_v37 = vadd.f32 1.0, %v4597_v49  ;;  %v4458_v20 = vmul.f32 %v7845_v22, %v4442_v3  ;;  %v4427_v23 = vmul.f32 %v7853_v38, %v4411_v46 }
0x121e   : > { %v4614_v2 = vadd.f32 1.0, %v4598_v19  ;;  %v4599_v57 = vsel %vm4567_vm6, %v4551_v30, %v4583_v54  ;;  %v4584_v59 = vsub.f32 0.0, %v4552_v45  ;;  %v4537_v16 = vmul.f32 %v6176_v53, %v4457_v48  ;;  %v6182_v53 = vpop.eup %6181 }
0x121f   : > { %v4615_v11 = vadd.f32 1.0, %v4599_v57  ;;  %v4629_v8 = vmul.f32 %v4613_v37, %v7819_v43  ;;  %v4538_v35 = vmul.f32 %v6178_v55, %v4458_v20  ;;  %v4443_v29 = vadd.f32 0.2548296, %v4427_v23 }
0x1220   : > { %v4600_v18 = vsel %vm4568_vm7, %v4552_v45, %v4584_v59  ;;  %v4553_v27 = vsub.f32 1.0, %v4537_v16  ;;  %v4412_v60 = vadd.f32 -0.28449672, %v4396_v31  ;;  %v4630_v22 = vmul.f32 %v4614_v2, %v7843_v13 }
0x1221   : > { %v4631_v39 = vmul.f32 %v4615_v11, %v7857_v62  ;;  %v4616_v14 = vadd.f32 1.0, %v4600_v18  ;;  %v4459_v21 = vmul.f32 %v7853_v38, %v4443_v29  ;;  %v4554_v49 = vsub.f32 1.0, %v4538_v35 }
0x1222   : > { %v4585_v43 = vsub.f32 0.0, %v4553_v27  ;;  %v4428_v58 = vmul.f32 %v7863_v44, %v4412_v60  ;;  %v4233_v24 = vmul.f32 0.5, %v7793_v32  ;;  %v4234_v31 = vmul.f32 0.5, %v7796_v9 }
0x1223   : > { %v4645_v26 = vpack.c.bf16 %v4631_v39, %v4629_v8  ;;  %v4632_v6 = vmul.f32 %v4616_v14, %v4232_v10  ;;  %v4539_v17 = vmul.f32 %v6180_v40, %v4459_v21  ;;  %v4586_v51 = vsub.f32 0.0, %v4554_v49 }
0x1224   : > { %v4444_v62 = vadd.f32 0.2548296, %v4428_v58  ;;  %v4601_v55 = vsel %vm4569_vm8, %v4553_v27, %v4585_v43  ;;  %v4236_v8 = vmul.f32 0.5, %v7805_v5 }
0x1225   : > { %v4646_v30 = vpack.c.bf16 %v4632_v6, %v4630_v22  ;;  %v4555_v52 = vsub.f32 1.0, %v4539_v17  ;;  %v4617_v50 = vadd.f32 1.0, %v4601_v55  ;;  %v4602_v54 = vsel %vm4570_vm10, %v4554_v49, %v4586_v51 }
0x1226   : > { %v4460_v13 = vmul.f32 %v7863_v44, %v4444_v62  ;;  %v4618_v57 = vadd.f32 1.0, %v4602_v54 }
0x1227   : > { %4820 = vmatprep.mubr.bf16.mxu0 %v4646_v30  ;;  %v4587_v19 = vsub.f32 0.0, %v4555_v52  ;;  %v4633_v63 = vmul.f32 %v4617_v50, %v4233_v24 }
0x1228   : > { %4821 = vmatmul.mubr.bf16.vlgmr.msra.gmra.mrb[72].mxu0 %v4645_v26  ;;  %v4540_v38 = vmul.f32 %v6182_v53, %v4460_v13  ;;  %v4634_v14 = vmul.f32 %v4618_v57, %v4234_v31 }
0x1229   : > { %v4603_v40 = vsel %vm4571_vm9, %v4555_v52, %v4587_v19 }
0x122a   : > { %v4619_v45 = vadd.f32 1.0, %v4603_v40  ;;  %v4556_v61 = vsub.f32 1.0, %v4540_v38 }
0x122c   : > { %v4635_v32 = vmul.f32 %v4619_v45, %v4235_v56  ;;  %v4588_v2 = vsub.f32 0.0, %v4556_v61 }
0x122d   : > { %v4210_v37 = vpop.f32.mrb[96].mxu1 }
0x122e   : > { %v4211_v3 = vadd.f32 %v4210_v37, %v7761_v34  ;;  %v4212_v44 = vpop.f32.mrb[97].mxu1  ;;  %v4604_v7 = vsel %vm4572_vm11, %v4556_v61, %v4588_v2  ;;  %v4647_v23 = vpack.c.bf16 %v4635_v32, %v4633_v63 }
0x122f   : > { %v7908_v46 = vadd.f32 %v4212_v44, %v7765_v12  ;;  %v4214_v1 = vpop.f32.mrb[98].mxu1  ;;  %v4620_v10 = vadd.f32 1.0, %v4604_v7 }
0x1230   : > { %v7910_v42 = vmul.f32 0.70710677, %v4211_v3  ;;  %v4216_v47 = vpop.f32.mrb[99].mxu1  ;;  %v7916_v48 = vadd.f32 %v4214_v1, %v7761_v34 }
0x1231   : > { %v7913_v59 = vmul.f32 0.70710677, %v7908_v46  ;;  %v7919_v11 = vadd.f32 %v4216_v47, %v7765_v12  ;;  %v4636_v35 = vmul.f32 %v4620_v10, %v4236_v8 }
0x1232   : > { %v4269_v20 = vand.u32 2147483647, %v7910_v42  ;;  %v7926_v39 = vmul.f32 0.70710677, %v7916_v48  ;;  %vm4573_vm12 = vcmp.ge.f32.partialorder %v7910_v42, 0.0 }
0x1233   : > { %v4270_v18 = vand.u32 2147483647, %v7913_v59  ;;  %v7929_v27 = vmul.f32 0.70710677, %v7919_v11  ;;  %v4648_v5 = vpack.c.bf16 %v4636_v35, %v4634_v14  ;;  %vm4574_vm13 = vcmp.ge.f32.partialorder %v7913_v59, 0.0 }
0x1234   : > { %v4285_v16 = vmul.f32 0.3275911, %v4269_v20  ;;  %v4271_v26 = vand.u32 2147483647, %v7926_v39  ;;  %v4477_v49 = vsub.f32 0.0, %v4269_v20  ;;  %vm4575_vm14 = vcmp.ge.f32.partialorder %v7926_v39, 0.0 }
0x1235   : > { %v4286_v29 = vmul.f32 0.3275911, %v4270_v18  ;;  %v4220_v60 = vpop.f32.mrb[100].mxu1  ;;  %v4272_v21 = vand.u32 2147483647, %v7929_v27  ;;  %4828 = vmatprep.mubr.bf16.mxu0 %v4648_v5  ;;  %v4478_v62 = vsub.f32 0.0, %v4270_v18 }
0x1236   : > { %v4301_v22 = vadd.f32 1.0, %v4285_v16  ;;  %v4222_v9 = vpop.f32.mrb[101].mxu1  ;;  %v4287_v58 = vmul.f32 0.3275911, %v4271_v26  ;;  %4829 = vmatmul.mubr.bf16.gmra.mrb[76].mxu0 %v4647_v23  ;;  %v7934_v52 = vadd.f32 %v4220_v60, %v7761_v34  ;;  %v4493_v51 = vmul.f32 %v4477_v49, %v4269_v20 }
0x1237   : > { %v4302_v6 = vadd.f32 1.0, %v4286_v29  ;;  %v4224_v43 = vpop.f32.mrb[102].mxu1  ;;  %v4288_v30 = vmul.f32 0.3275911, %v4272_v21  ;;  %v7937_v13 = vadd.f32 %v4222_v9, %v7765_v12  ;;  %v4494_v38 = vmul.f32 %v4478_v62, %v4270_v18 }
0x1238   : > { %6183 = vrcp.f32 %v4301_v22  ;;  %v4226_v17 = vpop.f32.mrb[103].mxu1  ;;  %v4303_v53 = vadd.f32 1.0, %v4287_v58  ;;  %v7940_v19 = vadd.f32 %v4224_v43, %v7761_v34  ;;  %v7943_v50 = vmul.f32 0.70710677, %v7934_v52 }
0x1239   : > { %6185 = vrcp.f32 %v4302_v6  ;;  %v4304_v55 = vadd.f32 1.0, %v4288_v30  ;;  %v7946_v24 = vmul.f32 0.70710677, %v7937_v13  ;;  %v4517_v37 = vmul.f32 1.442695, %v4493_v51 }
0x123a   : > { %6187 = vrcp.f32 %v4303_v53  ;;  %v4273_v56 = vand.u32 2147483647, %v7943_v50  ;;  %v7950_v40 = vmul.f32 0.70710677, %v7940_v19  ;;  %v7954_v45 = vadd.f32 %v4226_v17, %v7765_v12 }
0x123b   : > { %6189 = vrcp.f32 %v4304_v55  ;;  %v4274_v54 = vand.u32 2147483647, %v7946_v24  ;;  %v7956_v34 = vmul.f32 0.5, %v4211_v3  ;;  %v4479_v61 = vsub.f32 0.0, %v4271_v26 }
0x123c   : > { %v4289_v44 = vmul.f32 0.3275911, %v4273_v56  ;;  %v7959_v1 = vand.u32 2147483647, %v7950_v40  ;;  %v4519_v32 = vmul.f32 1.442695, %v4494_v38  ;;  %6191 = vpow2.f32 %v4517_v37 }
0x123d   : > { %v4290_v2 = vmul.f32 0.3275911, %v4274_v54  ;;  %v7964_v47 = vmul.f32 0.70710677, %v7954_v45  ;;  %v4480_v12 = vsub.f32 0.0, %v4272_v21  ;;  %v4481_v31 = vsub.f32 0.0, %v4273_v56 }
0x123e   : > { %v4305_v20 = vadd.f32 1.0, %v4289_v44  ;;  %v4291_v3 = vmul.f32 0.3275911, %v7959_v1  ;;  %v7972_v18 = vmul.f32 0.5, %v7908_v46  ;;  %v4495_v29 = vmul.f32 %v4479_v61, %v4271_v26 }
0x123f   : > { %v4306_v8 = vadd.f32 1.0, %v4290_v2  ;;  %v4482_v60 = vsub.f32 0.0, %v4274_v54  ;;  %v4496_v5 = vmul.f32 %v4480_v12, %v4272_v21  ;;  %v7981_v43 = vand.u32 2147483647, %v7964_v47 }
0x1240   : > { %6193 = vrcp.f32 %v4305_v20  ;;  %v4307_v16 = vadd.f32 1.0, %v4291_v3  ;;  %v4497_v58 = vmul.f32 %v4481_v31, %v4273_v56  ;;  %v4521_v53 = vmul.f32 1.442695, %v4495_v29 }
0x1241   : > { %6195 = vrcp.f32 %v4306_v8  ;;  %v4292_v30 = vmul.f32 0.3275911, %v7981_v43  ;;  %v4498_v51 = vmul.f32 %v4482_v60, %v4274_v54  ;;  %v4523_v37 = vmul.f32 1.442695, %v4496_v5 }
0x1242   : > { %v7961_v63 = vpop.eup %6183  ;;  %6197 = vpow2.f32 %v4519_v32  ;;  %v7990_v32 = vmul.f32 0.5, %v7916_v48  ;;  %v4483_v2 = vsub.f32 0.0, %v7959_v1  ;;  %v4525_v20 = vmul.f32 1.442695, %v4497_v58 }
0x1243   : > { %v7966_v57 = vpop.eup %6185  ;;  %v4333_v7 = vmul.f32 1.0614054, %v7961_v63  ;;  %6199 = vrcp.f32 %v4307_v16  ;;  %v4308_v61 = vadd.f32 1.0, %v4292_v30  ;;  %v4527_v31 = vmul.f32 1.442695, %v4498_v51 }
0x1244   : > { %v4334_v23 = vmul.f32 1.0614054, %v7966_v57  ;;  %v7974_v14 = vpop.eup %6187  ;;  %v7999_v16 = vmul.f32 0.5, %v7919_v11  ;;  %vm4576_vm15 = vcmp.ge.f32.partialorder %v7929_v27, 0.0  ;;  %vm4577_vm0 = vcmp.ge.f32.partialorder %v7943_v50, 0.0 }
0x1245   : > { %v4349_v10 = vadd.f32 -1.4531521, %v4333_v7  ;;  %v7976_v22 = vpop.eup %6189  ;;  %v4335_v6 = vmul.f32 1.0614054, %v7974_v14  ;;  %6201 = vrcp.f32 %v4308_v61  ;;  %vm4579_vm1 = vcmp.ge.f32.partialorder %v7950_v40, 0.0 }
0x1246   : > { %v4350_v35 = vadd.f32 -1.4531521, %v4334_v23  ;;  %v4336_v49 = vmul.f32 1.0614054, %v7976_v22  ;;  %v6192_v54 = vpop.eup %6191  ;;  %6203 = vpow2.f32 %v4521_v53  ;;  %vm4578_vm2 = vcmp.ge.f32.partialorder %v7946_v24, 0.0 }
0x1247   : > { %v4365_v9 = vmul.f32 %v7961_v63, %v4349_v10  ;;  %v4351_v26 = vadd.f32 -1.4531521, %v4335_v6  ;;  %6205 = vpow2.f32 %v4523_v37  ;;  %v4499_v6 = vmul.f32 %v4483_v2, %v7959_v1 }
0x1248   : > { %v4366_v46 = vmul.f32 %v7966_v57, %v4350_v35  ;;  %v4352_v55 = vadd.f32 -1.4531521, %v4336_v49  ;;  %6207 = vpow2.f32 %v4525_v20  ;;  %v4243_v50 = vmul.f32 0.5, %v7940_v19 }
0x1249   : > { %v4381_v17 = vadd.f32 1.4214138, %v4365_v9  ;;  %v4367_v38 = vmul.f32 %v7974_v14, %v4351_v26  ;;  %6209 = vpow2.f32 %v4527_v31  ;;  %vm4580_vm3 = vcmp.ge.f32.partialorder %v7964_v47, 0.0 }
0x124a   : > { %v4382_v62 = vadd.f32 1.4214138, %v4366_v46  ;;  %v4368_v56 = vmul.f32 %v7976_v22, %v4352_v55  ;;  %v7994_v8 = vpop.eup %6193  ;;  %v4484_v55 = vsub.f32 0.0, %v7981_v43 }
0x124b   : > { %v4397_v21 = vmul.f32 %v7961_v63, %v4381_v17  ;;  %v4383_v12 = vadd.f32 1.4214138, %v4367_v38  ;;  %v8001_v35 = vpop.eup %6195  ;;  %v4337_v9 = vmul.f32 1.0614054, %v7994_v8 }
0x124c   : > { %v4398_v44 = vmul.f32 %v7966_v57, %v4382_v62  ;;  %v4384_v23 = vadd.f32 1.4214138, %v4368_v56  ;;  %v4338_v49 = vmul.f32 1.0614054, %v8001_v35  ;;  %v6198_v58 = vpop.eup %6197 }
0x124d   : > { %v4413_v7 = vadd.f32 -0.28449672, %v4397_v21  ;;  %v4399_v48 = vmul.f32 %v7974_v14, %v4383_v12  ;;  %v4353_v26 = vadd.f32 -1.4531521, %v4337_v9  ;;  %v8009_v30 = vpop.eup %6199 }
0x124e   : > { %v4414_v3 = vadd.f32 -0.28449672, %v4398_v44  ;;  %v4400_v60 = vmul.f32 %v7976_v22, %v4384_v23  ;;  %v4354_v53 = vadd.f32 -1.4531521, %v4338_v49  ;;  %v4339_v37 = vmul.f32 1.0614054, %v8009_v30 }
0x124f   : > { %v4429_v10 = vmul.f32 %v7961_v63, %v4413_v7  ;;  %v4415_v46 = vadd.f32 -0.28449672, %v4399_v48  ;;  %v4369_v38 = vmul.f32 %v7994_v8, %v4353_v26 }
0x1250   : > { %v4430_v29 = vmul.f32 %v7966_v57, %v4414_v3  ;;  %v4416_v17 = vadd.f32 -0.28449672, %v4400_v60  ;;  %v4370_v56 = vmul.f32 %v8001_v35, %v4354_v53  ;;  %v4355_v20 = vadd.f32 -1.4531521, %v4339_v37  ;;  %v8021_v3 = vpop.eup %6201 }
0x1251   : > { %v4445_v5 = vadd.f32 0.2548296, %v4429_v10  ;;  %v4431_v1 = vmul.f32 %v7974_v14, %v4415_v46  ;;  %v4385_v12 = vadd.f32 1.4214138, %v4369_v38  ;;  %v6204_v10 = vpop.eup %6203 }
0x1252   : > { %v4446_v11 = vadd.f32 0.2548296, %v4430_v29  ;;  %v4432_v21 = vmul.f32 %v7976_v22, %v4416_v17  ;;  %v4386_v31 = vadd.f32 1.4214138, %v4370_v56  ;;  %v4371_v9 = vmul.f32 %v8009_v30, %v4355_v20 }
0x1253   : > { %v4461_v62 = vmul.f32 %v7961_v63, %v4445_v5  ;;  %v4447_v44 = vadd.f32 0.2548296, %v4431_v1  ;;  %v4529_v63 = vmul.f32 1.442695, %v4499_v6  ;;  %v4401_v60 = vmul.f32 %v7994_v8, %v4385_v12  ;;  %v6206_v6 = vpop.eup %6205 }
0x1254   : > { %v4462_v51 = vmul.f32 %v7966_v57, %v4446_v11  ;;  %v4448_v7 = vadd.f32 0.2548296, %v4432_v21  ;;  %v4402_v49 = vmul.f32 %v8001_v35, %v4386_v31  ;;  %v4387_v26 = vadd.f32 1.4214138, %v4371_v9 }
0x1255   : > { %v4541_v61 = vmul.f32 %v6192_v54, %v4461_v62  ;;  %v4463_v23 = vmul.f32 %v7974_v14, %v4447_v44  ;;  %v4500_v54 = vmul.f32 %v4484_v55, %v7981_v43  ;;  %v4340_v14 = vmul.f32 1.0614054, %v8021_v3  ;;  %v6208_v43 = vpop.eup %6207 }
0x1256   : > { %v4542_v2 = vmul.f32 %v6198_v58, %v4462_v51  ;;  %v4464_v29 = vmul.f32 %v7976_v22, %v4448_v7  ;;  %v4417_v17 = vadd.f32 -0.28449672, %v4401_v60  ;;  %v4418_v1 = vadd.f32 -0.28449672, %v4402_v49  ;;  %v6210_v55 = vpop.eup %6209 }
0x1257   : > { %v4557_v57 = vsub.f32 1.0, %v4541_v61  ;;  %v4543_v46 = vmul.f32 %v6204_v10, %v4463_v23  ;;  %v4356_v53 = vadd.f32 -1.4531521, %v4340_v14  ;;  %6211 = vpow2.f32 %v4529_v63 }
0x1258   : > { %v4558_v48 = vsub.f32 1.0, %v4542_v2  ;;  %v4544_v11 = vmul.f32 %v6206_v6, %v4464_v29  ;;  %v4433_v38 = vmul.f32 %v7994_v8, %v4417_v17  ;;  %v4434_v61 = vmul.f32 %v8001_v35, %v4418_v1 }
0x1259   : > { %v4589_v5 = vsub.f32 0.0, %v4557_v57  ;;  %v4559_v22 = vsub.f32 1.0, %v4543_v46  ;;  %v4403_v44 = vmul.f32 %v8009_v30, %v4387_v26  ;;  %v4531_v56 = vmul.f32 1.442695, %v4500_v54 }
0x125a   : > { %v4590_v58 = vsub.f32 0.0, %v4558_v48  ;;  %v4560_v21 = vsub.f32 1.0, %v4544_v11  ;;  %v4449_v7 = vadd.f32 0.2548296, %v4433_v38  ;;  %v4372_v12 = vmul.f32 %v8021_v3, %v4356_v53 }
0x125b   : > { %v4605_v62 = vsel %vm4573_vm12, %v4557_v57, %v4589_v5  ;;  %v4591_v37 = vsub.f32 0.0, %v4559_v22  ;;  %v4450_v57 = vadd.f32 0.2548296, %v4434_v61  ;;  %v4419_v23 = vadd.f32 -0.28449672, %v4403_v44 }
0x125c   : > { %v4606_v51 = vsel %vm4574_vm13, %v4558_v48, %v4590_v58  ;;  %v4621_v2 = vadd.f32 1.0, %v4605_v62  ;;  %v4592_v42 = vsub.f32 0.0, %v4560_v21  ;;  %v4465_v10 = vmul.f32 %v7994_v8, %v4449_v7 }
0x125d   : > { %v4622_v20 = vadd.f32 1.0, %v4606_v51  ;;  %v4607_v59 = vsel %vm4575_vm14, %v4559_v22, %v4591_v37  ;;  %v4388_v48 = vadd.f32 1.4214138, %v4372_v12  ;;  %v4466_v54 = vmul.f32 %v8001_v35, %v4450_v57 }
0x125e   : > { %v4623_v31 = vadd.f32 1.0, %v4607_v59  ;;  %v4608_v63 = vsel %vm4576_vm15, %v4560_v21, %v4592_v42  ;;  %v4435_v60 = vmul.f32 %v8009_v30, %v4419_v23  ;;  %6213 = vpow2.f32 %v4531_v56 }
0x125f   : > { %v4624_v29 = vadd.f32 1.0, %v4608_v63  ;;  %v4637_v9 = vmul.f32 %v4621_v2, %v7956_v34  ;;  %v4545_v6 = vmul.f32 %v6208_v43, %v4465_v10  ;;  %v4404_v5 = vmul.f32 %v8021_v3, %v4388_v48 }
0x1260   : > { %v4639_v39 = vmul.f32 %v4623_v31, %v7990_v32  ;;  %v4638_v46 = vmul.f32 %v4622_v20, %v7972_v18  ;;  %v4546_v49 = vmul.f32 %v6210_v55, %v4466_v54  ;;  %v4451_v8 = vadd.f32 0.2548296, %v4435_v60  ;;  %v5274_v31 = vld [vmem:[%s837_s6] ss:$0 sm:$0xff]  ;;  %s4879_s6 = sshll.u32 %s6570_s17, 4  ;;  %s4880_s6 = int_to_ptr.vmem [resolvable:$true] %s4879_s6 }
0x1261   : > { %v4640_v27 = vmul.f32 %v4624_v29, %v7999_v16  ;;  %v4561_v14 = vsub.f32 1.0, %v4545_v6  ;;  %v4420_v58 = vadd.f32 -0.28449672, %v4404_v5  ;;  %v6212_v26 = vpop.eup %6211  ;;  %v4241_v38 = vmul.f32 0.5, %v7934_v52  ;;  %s6455_s10 = scalar_lea.vmem %s4880_s6, 1024  ;;  %p6462_p0 = scmp.lt.s32.totalorder %s4880_s6, %s4880_s6 }
0x1262   : > { %v4649_v11 = vpack.c.bf16 %v4639_v39, %v4637_v9  ;;  %v4467_v35 = vmul.f32 %v8009_v30, %v4451_v8  ;;  %v4562_v34 = vsub.f32 1.0, %v4546_v49  ;;  %v4242_v20 = vmul.f32 0.5, %v7937_v13  ;;  %p6456_p1 = scmp.ne.s32.totalorder %s4880_s6, %s6455_s10  ;;  %p6463_p11 = scmp.lt.s32.totalorder %s6455_s10, %s6455_s10 }
0x1263   : > { %v4650_v17 = vpack.c.bf16 %v4640_v27, %v4638_v46  ;;  %v4593_v62 = vsub.f32 0.0, %v4561_v14  ;;  %v4436_v32 = vmul.f32 %v8021_v3, %v4420_v58  ;;  %v4244_v52 = vmul.f32 0.5, %v7954_v45 }
0x1264   : > { %v4547_v43 = vmul.f32 %v6212_v26, %v4467_v35  ;;  %v4594_v1 = vsub.f32 0.0, %v4562_v34  ;;  %p6457_p7 = pnand %p6456_p1, %p5817_p8  ;;  %p6464_p9 = por %p6463_p11, %p6462_p0 }
0x1265   : > { %4836 = vmatprep.mubr.bf16.mxu0 %v4650_v17  ;;  %v4452_v18 = vadd.f32 0.2548296, %v4436_v32  ;;  %v4609_v16 = vsel %vm4577_vm0, %v4561_v14, %v4593_v62 }
0x1266   : > { %4837 = vmatmul.mubr.bf16.gmra.mrb[80].mxu0 %v4649_v11  ;;  %v4563_v22 = vsub.f32 1.0, %v4547_v43  ;;  %v4625_v30 = vadd.f32 1.0, %v4609_v16  ;;  %v4610_v61 = vsel %vm4578_vm2, %v4562_v34, %v4594_v1  ;;  %p6458_p3 = pneg %p6457_p7 }
0x1267   : > { %v4468_v53 = vmul.f32 %v8021_v3, %v4452_v18  ;;  %v4626_v7 = vadd.f32 1.0, %v4610_v61 }
0x1268   : > { %v6214_v55 = vpop.eup %6213  ;;  %v4595_v51 = vsub.f32 0.0, %v4563_v22  ;;  %v4641_v2 = vmul.f32 %v4625_v30, %v4241_v38  ;;  %p6465_p4 = pnand %p6464_p9, %p6458_p3 }
0x1269   : > { %v4548_v21 = vmul.f32 %v6214_v55, %v4468_v53  ;;  %v4642_v59 = vmul.f32 %v4626_v7, %v4242_v20 }
0x126a   : > { %v4611_v37 = vsel %vm4579_vm1, %v4563_v22, %v4595_v51 }
0x126b   : > { %v4627_v44 = vadd.f32 1.0, %v4611_v37  ;;  %v4564_v56 = vsub.f32 1.0, %v4548_v21 }
0x126d   : > { %v4643_v42 = vmul.f32 %v4627_v44, %v4243_v50  ;;  %v4596_v3 = vsub.f32 0.0, %v4564_v56 }
0x126f   : > { %v4612_v12 = vsel %vm4580_vm3, %v4564_v56, %v4596_v3  ;;  %v4651_v40 = vpack.c.bf16 %v4643_v42, %v4641_v2 }
0x1270   : > { %v4628_v24 = vadd.f32 1.0, %v4612_v12 }
0x1272   : > { %v4644_v57 = vmul.f32 %v4628_v24, %v4244_v52 }
0x1274   : > { %v4652_v23 = vpack.c.bf16 %v4644_v57, %v4642_v59 }
0x1276   : > { %4844 = vmatprep.mubr.bf16.mxu0 %v4652_v23 }
0x1277   : > { %4845 = vmatmul.mubr.bf16.gmra.mrb[84].mxu0 %v4651_v40 }
0x12fb   : > { %v5414_v19 = vpop.f32.mrb[72].mxu0 }
0x12fc   : > { %v5415_v63 = vpop.f32.mrb[73].mxu0 }
0x12fd   : > { %v5416_v47 = vadd.f32 %v5415_v63, %v5414_v19  ;;  %v5417_v10 = vpop.f32.mrb[74].mxu0 }
0x12fe   : > { %v5418_v48 = vpop.f32.mrb[75].mxu0 }
0x12ff   : > { %v4823_v29 = vadd.f32 %v5416_v47, %v5274_v31  ;;  %v5419_v13 = vadd.f32 %v5418_v48, %v5417_v10 }
0x1301   : > { %v4853_v45 = vadd.f32 %v4823_v29, %v7641_v28  ;;  %v4826_v54 = vadd.f32 %v5419_v13, %v5274_v31 }
0x1303   : > { %4861 = vst [vmem:[#allocation14] sm:$0xff] %v4853_v45  ;;  %v4854_v60 = vadd.f32 %v4826_v54, %v7643_v33 }
0x1305   : > { %4862 = vst [vmem:[#allocation14 + $0x8] sm:$0xff] %v4854_v60 }
0x1309   : > { %v5420_v9 = vpop.f32.mrb[76].mxu0 }
0x130a   : > { %v5421_v39 = vpop.f32.mrb[77].mxu0 }
0x130b   : > { %v5422_v6 = vadd.f32 %v5421_v39, %v5420_v9  ;;  %v5423_v5 = vpop.f32.mrb[78].mxu0 }
0x130c   : > { %v5424_v46 = vpop.f32.mrb[79].mxu0 }
0x130d   : > { %v4831_v27 = vadd.f32 %v5422_v6, %v5274_v31  ;;  %v5425_v49 = vadd.f32 %v5424_v46, %v5423_v5 }
0x130f   : > { %v4855_v8 = vadd.f32 %v4831_v27, %v7646_v0  ;;  %v4834_v14 = vadd.f32 %v5425_v49, %v5274_v31 }
0x1311   : > { %4863 = vst [vmem:[#allocation14 + $0x10] sm:$0xff] %v4855_v8  ;;  %v4856_v58 = vadd.f32 %v4834_v14, %v7650_v4 }
0x1313   : > { %4864 = vst [vmem:[#allocation14 + $0x18] sm:$0xff] %v4856_v58 }
0x1339   : > { %v5426_v28 = vpop.f32.mrb[80].mxu0 }
0x133a   : > { %v5427_v11 = vpop.f32.mrb[81].mxu0 }
0x133b   : > { %v5428_v35 = vadd.f32 %v5427_v11, %v5426_v28  ;;  %v5429_v17 = vpop.f32.mrb[82].mxu0 }
0x133c   : > { %v5430_v33 = vpop.f32.mrb[83].mxu0 }
0x133d   : > { %v4839_v26 = vadd.f32 %v5428_v35, %v5274_v31  ;;  %v5431_v62 = vadd.f32 %v5430_v33, %v5429_v17 }
0x133f   : > { %v4857_v34 = vadd.f32 %v4839_v26, %v7653_v36  ;;  %v4842_v32 = vadd.f32 %v5431_v62, %v5274_v31 }
0x1341   : > { %4865 = vst [vmem:[#allocation14 + $0x20] sm:$0xff] %v4857_v34  ;;  %v4858_v43 = vadd.f32 %v4842_v32, %v7655_v15 }
0x1343   : > { %4866 = vst [vmem:[#allocation14 + $0x28] sm:$0xff] %v4858_v43 }
0x134a   : > { %v5432_v0 = vpop.f32.mrb[84].mxu0 }
0x134b   : > { %v5433_v18 = vpop.f32.mrb[85].mxu0 }
0x134c   : > { %v5434_v16 = vadd.f32 %v5433_v18, %v5432_v0  ;;  %v5435_v4 = vpop.f32.mrb[86].mxu0 }
0x134d   : > { %v5436_v22 = vpop.f32.mrb[87].mxu0 }
0x134e   : > { %v4847_v1 = vadd.f32 %v5434_v16, %v5274_v31  ;;  %v5437_v53 = vadd.f32 %v5436_v22, %v5435_v4 }
0x1350   : > { %v4859_v55 = vadd.f32 %v4847_v1, %v7658_v41  ;;  %v4850_v51 = vadd.f32 %v5437_v53, %v5274_v31 }
0x1352   : > { %4867 = vst [vmem:[#allocation14 + $0x30] sm:$0xff] %v4859_v55  ;;  %v4860_v36 = vadd.f32 %v4850_v51, %v7661_v25 }
0x1354   : > { %4868 = vst [vmem:[#allocation14 + $0x38] sm:$0xff] %v4860_v36 }
0x1355   : > { %6468 = shalt.err (!%p6465_p4)
}
0x1356   : > { %s8225_s3 = sld [smem:[#allocation39_spill]] }
0x135c   : > { %s6469_s24 = scalar_lea.hbm %s8225_s3, 1024 }
0x135d   : > { %p6470_p5 = scmp.ne.s32.totalorder %s8225_s3, %s6469_s24  ;;  %p6475_p13 = scmp.lt.u32.totalorder %s6469_s24, %s8225_s3 }
0x135f   : > { %p6471_p12 = pnand %p6470_p5, %p5817_p8 }
0x1361   : > { %p6472_p10 = pneg %p6471_p12 }
0x1363   : > { %p6477_p2 = pnand %p6475_p13, %p6472_p10 }
0x1365   : > { %6480 = shalt.err (!%p6477_p2)
}
0x1366   : > { %s6571_s19 = smov 128   ;;  %s6572_s28 = smov 8  }
0x1367   : > { %5779 = dma.vmem_to_hbm [thread:$0]  (%p5817_p8), %s4880_s6, 1024, %s8225_s3, [#allocation4], %s6571_s19, %s6571_s19, %s6572_s28  }
0x1368   : > { %6522 = dma.done.wait (%p5817_p8), [#allocation4], 1024  }
0x1369   : > { %6524 = vsyncadd (%p5817_p8), [#allocation4], 4294966272 }
0x136a PF: > { %s8226_s26 = sld [smem:[#allocation21_spill]]  ;;  %s8227_s13 = sld [smem:[#allocation20_spill]] }
0x136b   : > { %s8228_s23 = sld [smem:[#allocation23_spill]]  ;;  %s8229_s4 = sld [smem:[#allocation22_spill]] }
0x136c   : > { %s8230_s21 = smov %s6531_s22  ;;  %s8232_s24 = smov %s6543_s25 }
0x1370   : > { %s30_s26 = sadd.s32 1, %s8226_s26   ;;  %s8231_s22 = smov %s8227_s13 }
0x1371   : > { %p27_p6 = scmp.ge.s32.totalorder %s30_s26, 4   ;;  %s8233_s25 = smov %s8229_s4 }
0x1373   :  { %29 = sbr.rel (!%p27_p6) target bundleno = 23 (0x17), region = 199 }
0x137a   :  { %4895 = vsyncpa [#allocation3], 1 }
0x137b   :  { %4897 = vsyncpa [#allocation3 + $0x1], 1 }
0x137c   :  { %4898 = vsyncpa [#allocation6], 1 }
0x137d   :  { %4899 = vsyncpa [#allocation9], 1 }
0x137e   :  { %4900 = vsyncpa [#allocation4], 1 }
0x137f   :  { %4902 = vsyncpa [#allocation4 + $0x1], 1 }

</bundles_post_ra>
